<compile_context>
chip_gen: v7x
topology: tpu7x:2x2x1
jax: 0.10.0
libtpu: 0.0.40
codegen_flags: <defaults>
</compile_context>

<pallas_src>
import numpy as np
import jax
import jax.numpy as jnp
from jax import lax
from jax.experimental import pallas as pl
from jax.experimental.pallas import tpu as pltpu

_TAPS3 = [(kh - 1, kw - 1) for kh in range(3) for kw in range(3)]   # 3x3, pad 1
# 2x2 'SAME' (pad 0 before / 1 after) taps = the (dy, dx) >= 0 subset of the
# 3x3 taps, in kh-major / kw-minor order (matches the 2x2 weight flattening).
_TAPS2_IDX = [t for t, (dy, dx) in enumerate(_TAPS3) if dy >= 0 and dx >= 0]


def _rup(n, m):
    return (n + m - 1) // m * m


def _interp_matrix(n_in, n_out):
    """1-D bilinear interpolation matrix, align_corners=True (as in the module)."""
    A = np.zeros((n_out, n_in), dtype=np.float32)
    if n_out == 1 or n_in == 1:
        A[:, 0] = 1.0
        return jnp.asarray(A)
    for o in range(n_out):
        src = o * (n_in - 1) / (n_out - 1)
        i0 = min(int(np.floor(src)), n_in - 1)
        i1 = min(i0 + 1, n_in - 1)
        f = src - i0
        A[o, i0] += 1.0 - f
        A[o, i1] += f
    return jnp.asarray(A)


def _tap_masks(H2, W2, L):
    """(9, L) 0/1 f32 per-image edge masks for the 3x3 taps (batch folded on lanes)."""
    p = np.arange(L, dtype=np.int64) % (H2 * W2)
    y, x = p // W2, p % W2
    m = np.zeros((9, L), dtype=np.float32)
    for t, (dy, dx) in enumerate(_TAPS3):
        m[t] = ((y + dy >= 0) & (y + dy < H2) & (x + dx >= 0) & (x + dx < W2))
    return jnp.asarray(m)


def _make_kernel(Cin_p, Cskip_p, Cb_p, W2, L):
    shifts = [(L - (dy * W2 + dx)) % L for (dy, dx) in _TAPS3]

    def kernel(m_ref, x1_ref, x2_ref, mt_ref, w1_ref, b1_ref,
               w2h_ref, w2x_ref, b2_ref, w3_ref, b3_ref,
               out_ref, pcol, pskip):
        # Mask rows loaded once; reused by conv1 / conv2-h1 / conv2-x2 / conv3.
        mrows = [m_ref[t:t + 1, :] for t in range(9)]

        def tap(v, t):
            """v: (C, L) f32 -> tap (dy,dx) of v, zeroed outside each image, bf16."""
            dy, dx = _TAPS3[t]
            r = pltpu.roll(v, shifts[t], axis=1) if shifts[t] != 0 else v
            if dy == 0 and dx == 0:
                return r.astype(jnp.bfloat16)          # center tap: no mask needed
            return (r * mrows[t]).astype(jnp.bfloat16)

        # ---- x2 (skip) taps -> their own scratch; independent of conv1 ----
        x2b = x2_ref[0]                                            # (Cskip_p, L) f32
        for t in range(9):
            pskip[t * Cskip_p:(t + 1) * Cskip_p, :] = tap(x2b, t)

        # ---- bilinear 2x upsample (align_corners) as one lane-dense matmul ----
        up = jnp.dot(x1_ref[0], mt_ref[...],
                     preferred_element_type=jnp.float32)           # (Cin_p, L)

        # ---- conv1: 2x2 'SAME' conv -> ReLU (one matmul) ----
        # TODO(synk): Conv2dWithPadding source not shown; assuming TF-style SAME
        # for k=2/s=1 (pad 0 before, 1 after).  The pure-JAX reference matches.
        for j, t in enumerate(_TAPS2_IDX):
            pcol[j * Cin_p:(j + 1) * Cin_p, :] = tap(up, t)
        h1 = jnp.maximum(
            jnp.dot(w1_ref[...], pcol[0:4 * Cin_p, :],
                    preferred_element_type=jnp.float32) + b1_ref[...], 0.0)

        # ---- cat([h1, x2], C) + conv2 (3x3, pad 1) -> ReLU ----
        # Channel concat = two accumulated matmuls (h1 part + skip part), so the
        # skip-tap fill never aliases the buffer conv1's matmul reads.
        for t in range(9):
            pcol[t * Cb_p:(t + 1) * Cb_p, :] = tap(h1, t)
        h2 = jnp.maximum(
            jnp.dot(w2h_ref[...], pcol[0:9 * Cb_p, :],
                    preferred_element_type=jnp.float32)
            + jnp.dot(w2x_ref[...], pskip[...],
                      preferred_element_type=jnp.float32)
            + b2_ref[...], 0.0)

        # ---- conv3 (3x3, pad 1) -> ReLU ----
        for t in range(9):
            pcol[t * Cb_p:(t + 1) * Cb_p, :] = tap(h2, t)
        out_ref[0] = jnp.maximum(
            jnp.dot(w3_ref[...], pcol[0:9 * Cb_p, :],
                    preferred_element_type=jnp.float32) + b3_ref[...], 0.0)

    return kernel


def _flat_w(w, ci_p, co_p):
    """OIHW -> (co_p, Kh*Kw*ci_p) bf16: tap-major, channel-minor, zero padded."""
    co, ci, kh, kw = w.shape
    wt = jnp.transpose(w, (0, 2, 3, 1))                            # (co, kh, kw, ci)
    wt = jnp.pad(wt, ((0, co_p - co), (0, 0), (0, 0), (0, ci_p - ci)))
    return wt.reshape(co_p, kh * kw * ci_p).astype(jnp.bfloat16)


def _fold_batch(a, G, BG):
    """(B, C, S) -> (G, C, BG*S): BG images concatenated along the lane axis."""
    _, C, S = a.shape
    return a.reshape(G, BG, C, S).transpose(0, 2, 1, 3).reshape(G, C, BG * S)


def upblock_forward(x1, x2, params, num_groups=1):
    """x1: (B, Cin, H1, W1), x2: (B, Cskip, 2*H1, 2*W1); weights OIHW (PyTorch)."""
    B, Cin, H1, W1 = x1.shape
    _, Cskip, H2, W2 = x2.shape
    assert H2 == 2 * H1 and W2 == 2 * W1
    assert B % num_groups == 0
    # num_groups=1 on v5e/v6e (single TensorCore -> fewer, larger steps);
    # use >=2 on v7x so both TensorCores get a 'parallel' grid step.
    G, BG = num_groups, B // num_groups

    w1, b1, w2, b2, w3, b3 = (params[k] for k in ("w1", "b1", "w2", "b2", "w3", "b3"))
    Cb, Cout = w1.shape[0], w3.shape[0]
    assert w2.shape[1] == Cb + Cskip            # cat([conv1(out), x2]) feeds conv2

    # Sublane padding: 16 rows = one full packed bf16 tile for everything that
    # lands in the im2col scratch / MXU; 8 rows = one f32 tile for the output.
    Cin_p, Cskip_p, Cb_p = _rup(Cin, 16), _rup(Cskip, 16), _rup(Cb, 16)
    Cout_p = _rup(Cout, 8)
    HW, L = H2 * W2, BG * H2 * W2

    # Bilinear upsample (align_corners) = kron of two 1-D interpolation
    # matrices; block-diagonal over the BG folded images so the kernel does a
    # single (Cin_p, BG*H1W1) @ (BG*H1W1, L) matmul straight into folded layout.
    # TODO(synk): at real UNet sizes switch to separable 1-D interpolation plus
    # an HW-tiled grid axis with an explicit vmem_limit (this matrix and the
    # full-HW im2col scratch do not scale; fatal on v7x's 64 MiB VMEM).
    Mt = jnp.kron(_interp_matrix(H1, H2), _interp_matrix(W1, W2)).T    # (H1W1, HW)
    Mbig = jnp.kron(jnp.eye(BG, dtype=jnp.float32), Mt).astype(jnp.bfloat16)

    w1f = _flat_w(w1, Cin_p, Cb_p)                       # (Cb_p, 4*Cin_p)
    w2hf = _flat_w(w2[:, :Cb], Cb_p, Cb_p)               # (Cb_p, 9*Cb_p)
    w2xf = _flat_w(w2[:, Cb:], Cskip_p, Cb_p)            # (Cb_p, 9*Cskip_p)
    w3f = _flat_w(w3, Cb_p, Cout_p)                      # (Cout_p, 9*Cb_p)
    b1c = jnp.pad(b1, (0, Cb_p - Cb)).reshape(-1, 1)
    b2c = jnp.pad(b2, (0, Cb_p - Cb)).reshape(-1, 1)
    b3c = jnp.pad(b3, (0, Cout_p - Cout)).reshape(-1, 1)

    # Lane-dense kernel I/O: pad channels, flatten spatial, fold BG images onto
    # the lane axis (pure layout plumbing, done once outside the kernel).
    x1f = jnp.pad(x1.reshape(B, Cin, H1 * W1), ((0, 0), (0, Cin_p - Cin), (0, 0)))
    x1f = _fold_batch(x1f, G, BG).astype(jnp.bfloat16)             # (G, Cin_p, BG*H1W1)
    x2f = jnp.pad(x2.reshape(B, Cskip, HW), ((0, 0), (0, Cskip_p - Cskip), (0, 0)))
    x2f = _fold_batch(x2f, G, BG)                                  # (G, Cskip_p, L) f32

    masks = _tap_masks(H2, W2, L)                                  # (9, L) f32

    kernel = _make_kernel(Cin_p, Cskip_p, Cb_p, W2, L)

    def const_spec(shape):
        n = len(shape)
        return pl.BlockSpec(shape, lambda g, _n=n: (0,) * _n)

    pcol_rows = max(4 * Cin_p, 9 * Cb_p)
    grid_spec = pltpu.PrefetchScalarGridSpec(
        num_scalar_prefetch=0,
        grid=(G,),
        in_specs=[
            const_spec(masks.shape),
            pl.BlockSpec((1, Cin_p, BG * H1 * W1), lambda g: (g, 0, 0)),
            pl.BlockSpec((1, Cskip_p, L), lambda g: (g, 0, 0)),
            const_spec(Mbig.shape),
            const_spec(w1f.shape), const_spec(b1c.shape),
            const_spec(w2hf.shape), const_spec(w2xf.shape), const_spec(b2c.shape),
            const_spec(w3f.shape), const_spec(b3c.shape),
        ],
        out_specs=pl.BlockSpec((1, Cout_p, L), lambda g: (g, 0, 0)),
        scratch_shapes=[
            pltpu.VMEM((pcol_rows, L), jnp.bfloat16),     # conv1 / conv2-h1 / conv3 im2col
            pltpu.VMEM((9 * Cskip_p, L), jnp.bfloat16),   # skip (x2) im2col
        ],
    )
    out_flat = pl.pallas_call(
        kernel,
        out_shape=jax.ShapeDtypeStruct((G, Cout_p, L), jnp.float32),
        grid_spec=grid_spec,
        compiler_params=pltpu.CompilerParams(dimension_semantics=("parallel",)),
    )(masks, x1f, x2f, Mbig, w1f, b1c, w2hf, w2xf, b2c, w3f, b3c)

    out = out_flat.reshape(G, Cout_p, BG, HW).transpose(0, 2, 1, 3)
    return out.reshape(B, Cout_p, HW)[:, :Cout].reshape(B, Cout, H2, W2)


def upblock_reference(x1, x2, params):
    """Pure-JAX reference matching the PyTorch forward (NCHW / OIHW)."""
    w1, b1, w2, b2, w3, b3 = (params[k] for k in ("w1", "b1", "w2", "b2", "w3", "b3"))
    _, _, H1, W1 = x1.shape
    A_h = _interp_matrix(H1, 2 * H1)
    A_w = _interp_matrix(W1, 2 * W1)
    up = jnp.einsum("oh,pw,bchw->bcop", A_h, A_w, x1,
                    precision=lax.Precision.HIGHEST)

    def conv(x, w, b, pad):
        y = lax.conv_general_dilated(
            x, w, (1, 1), pad,
            dimension_numbers=("NCHW", "OIHW", "NCHW"),
            precision=lax.Precision.HIGHEST)
        return y + b.reshape(1, -1, 1, 1)

    h = jax.nn.relu(conv(up, w1, b1, ((0, 1), (0, 1))))      # 2x2 'SAME' conv
    cat = jnp.concatenate([h, x2], axis=1)
    h = jax.nn.relu(conv(cat, w2, b2, ((1, 1), (1, 1))))     # 3x3, pad 1
    h = jax.nn.relu(conv(h, w3, b3, ((1, 1), (1, 1))))       # 3x3, pad 1
    return h


if __name__ == "__main__":
    key = jax.random.PRNGKey(0)
    B = 2
    in_channels, block_channels, out_channels = 8, 4, 4
    skip_channels = in_channels - block_channels   # cat -> in_channels for conv2
    H1 = W1 = 8
    H2, W2 = 2 * H1, 2 * W1

    ks = jax.random.split(key, 8)
    x1 = jax.random.normal(ks[0], (B, in_channels, H1, W1), jnp.float32)
    x2 = jax.random.normal(ks[1], (B, skip_channels, H2, W2), jnp.float32)
    params = dict(
        w1=0.1 * jax.random.normal(ks[2], (block_channels, in_channels, 2, 2), jnp.float32),
        b1=0.1 * jax.random.normal(ks[3], (block_channels,), jnp.float32),
        w2=0.1 * jax.random.normal(ks[4], (block_channels, in_channels, 3, 3), jnp.float32),
        b2=0.1 * jax.random.normal(ks[5], (block_channels,), jnp.float32),
        w3=0.1 * jax.random.normal(ks[6], (out_channels, block_channels, 3, 3), jnp.float32),
        b3=0.1 * jax.random.normal(ks[7], (out_channels,), jnp.float32),
    )

    out = jax.block_until_ready(upblock_forward(x1, x2, params))
    ref = jax.block_until_ready(upblock_reference(x1, x2, params))
    assert out.shape == (B, out_channels, H2, W2)
    if not jnp.allclose(out, ref, atol=3e-2, rtol=3e-2):
        raise AssertionError(
            f"mismatch vs reference, max abs err = {jnp.max(jnp.abs(out - ref))}")
    print("KERNEL_OK")
</pallas_src>

<mosaic_0001>
module attributes {stable_mosaic.version = 11 : i64} {
  func.func @kernel(%arg0: i32, %arg1: memref<9x512xf32, #tpu.memory_space<vmem>>, %arg2: memref<1x16x128xbf16, #tpu.memory_space<vmem>>, %arg3: memref<1x16x512xf32, #tpu.memory_space<vmem>>, %arg4: memref<128x512xbf16, #tpu.memory_space<vmem>>, %arg5: memref<16x64xbf16, #tpu.memory_space<vmem>>, %arg6: memref<16x1xf32, #tpu.memory_space<vmem>>, %arg7: memref<16x144xbf16, #tpu.memory_space<vmem>>, %arg8: memref<16x144xbf16, #tpu.memory_space<vmem>>, %arg9: memref<16x1xf32, #tpu.memory_space<vmem>>, %arg10: memref<8x144xbf16, #tpu.memory_space<vmem>>, %arg11: memref<8x1xf32, #tpu.memory_space<vmem>>, %arg12: memref<1x8x512xf32, #tpu.memory_space<vmem>>, %arg13: memref<144x512xbf16, #tpu.memory_space<vmem>>, %arg14: memref<144x512xbf16, #tpu.memory_space<vmem>>) attributes {dimension_semantics = [#tpu.dimension_semantics<parallel>], iteration_bounds = array<i64: 1>, scalar_prefetch = 0 : i64, scratch_operands = 2 : i64, tpu.core_type = #tpu.core_type<tc>, window_params = [{pipeline_mode = #tpu.pipeline_mode<synchronous>, transform_indices = @transform_0, window_bounds = array<i64: 9, 512>}, {transform_indices = @transform_1, window_bounds = array<i64: 1, 16, 128>}, {transform_indices = @transform_2, window_bounds = array<i64: 1, 16, 512>}, {pipeline_mode = #tpu.pipeline_mode<synchronous>, transform_indices = @transform_3, window_bounds = array<i64: 128, 512>}, {pipeline_mode = #tpu.pipeline_mode<synchronous>, transform_indices = @transform_4, window_bounds = array<i64: 16, 64>}, {pipeline_mode = #tpu.pipeline_mode<synchronous>, transform_indices = @transform_5, window_bounds = array<i64: 16, 1>}, {pipeline_mode = #tpu.pipeline_mode<synchronous>, transform_indices = @transform_6, window_bounds = array<i64: 16, 144>}, {pipeline_mode = #tpu.pipeline_mode<synchronous>, transform_indices = @transform_7, window_bounds = array<i64: 16, 144>}, {pipeline_mode = #tpu.pipeline_mode<synchronous>, transform_indices = @transform_8, window_bounds = array<i64: 16, 1>}, {pipeline_mode = #tpu.pipeline_mode<synchronous>, transform_indices = @transform_9, window_bounds = array<i64: 8, 144>}, {pipeline_mode = #tpu.pipeline_mode<synchronous>, transform_indices = @transform_10, window_bounds = array<i64: 8, 1>}, {transform_indices = @transform_11, window_bounds = array<i64: 1, 8, 512>}]} {
    %c0 = arith.constant 0 : index
    %c0_0 = arith.constant 0 : index
    %0 = vector.load %arg1[%c0, %c0_0] : memref<9x512xf32, #tpu.memory_space<vmem>>, vector<1x512xf32>
    %c1 = arith.constant 1 : index
    %c0_1 = arith.constant 0 : index
    %1 = vector.load %arg1[%c1, %c0_1] : memref<9x512xf32, #tpu.memory_space<vmem>>, vector<1x512xf32>
    %c2 = arith.constant 2 : index
    %c0_2 = arith.constant 0 : index
    %2 = vector.load %arg1[%c2, %c0_2] : memref<9x512xf32, #tpu.memory_space<vmem>>, vector<1x512xf32>
    %c3 = arith.constant 3 : index
    %c0_3 = arith.constant 0 : index
    %3 = vector.load %arg1[%c3, %c0_3] : memref<9x512xf32, #tpu.memory_space<vmem>>, vector<1x512xf32>
    %c5 = arith.constant 5 : index
    %c0_4 = arith.constant 0 : index
    %4 = vector.load %arg1[%c5, %c0_4] : memref<9x512xf32, #tpu.memory_space<vmem>>, vector<1x512xf32>
    %c6 = arith.constant 6 : index
    %c0_5 = arith.constant 0 : index
    %5 = vector.load %arg1[%c6, %c0_5] : memref<9x512xf32, #tpu.memory_space<vmem>>, vector<1x512xf32>
    %c7 = arith.constant 7 : index
    %c0_6 = arith.constant 0 : index
    %6 = vector.load %arg1[%c7, %c0_6] : memref<9x512xf32, #tpu.memory_space<vmem>>, vector<1x512xf32>
    %c8 = arith.constant 8 : index
    %c0_7 = arith.constant 0 : index
    %7 = vector.load %arg1[%c8, %c0_7] : memref<9x512xf32, #tpu.memory_space<vmem>>, vector<1x512xf32>
    %c0_8 = arith.constant 0 : index
    %c0_9 = arith.constant 0 : index
    %c0_10 = arith.constant 0 : index
    %8 = vector.load %arg3[%c0_8, %c0_9, %c0_10] : memref<1x16x512xf32, #tpu.memory_space<vmem>>, vector<1x16x512xf32>
    %9 = vector.shape_cast %8 : vector<1x16x512xf32> to vector<16x512xf32>
    %c17_i32 = arith.constant 17 : i32
    %10 = tpu.dynamic_rotate %9 by %c17_i32 dim 1 : vector<16x512xf32>, i32 -> vector<16x512xf32>
    %11 = vector.broadcast %0 : vector<1x512xf32> to vector<16x512xf32>
    %12 = arith.mulf %10, %11 : vector<16x512xf32>
    %13 = arith.truncf %12 : vector<16x512xf32> to vector<16x512xbf16>
    %c0_11 = arith.constant 0 : index
    %c0_12 = arith.constant 0 : index
    %14 = vector.load %arg14[%c0_11, %c0_12] : memref<144x512xbf16, #tpu.memory_space<vmem>>, vector<16x512xbf16>
    tpu.vector_store %arg14[%c0_11, %c0_12], %13 {strides = array<i32>} : memref<144x512xbf16, #tpu.memory_space<vmem>>, vector<16x512xbf16>,
    %c16_i32 = arith.constant 16 : i32
    %15 = tpu.dynamic_rotate %9 by %c16_i32 dim 1 : vector<16x512xf32>, i32 -> vector<16x512xf32>
    %16 = vector.broadcast %1 : vector<1x512xf32> to vector<16x512xf32>
    %17 = arith.mulf %15, %16 : vector<16x512xf32>
    %18 = arith.truncf %17 : vector<16x512xf32> to vector<16x512xbf16>
    %c16 = arith.constant 16 : index
    %c0_13 = arith.constant 0 : index
    %19 = vector.load %arg14[%c16, %c0_13] : memref<144x512xbf16, #tpu.memory_space<vmem>>, vector<16x512xbf16>
    tpu.vector_store %arg14[%c16, %c0_13], %18 {strides = array<i32>} : memref<144x512xbf16, #tpu.memory_space<vmem>>, vector<16x512xbf16>,
    %c15_i32 = arith.constant 15 : i32
    %20 = tpu.dynamic_rotate %9 by %c15_i32 dim 1 : vector<16x512xf32>, i32 -> vector<16x512xf32>
    %21 = vector.broadcast %2 : vector<1x512xf32> to vector<16x512xf32>
    %22 = arith.mulf %20, %21 : vector<16x512xf32>
    %23 = arith.truncf %22 : vector<16x512xf32> to vector<16x512xbf16>
    %c32 = arith.constant 32 : index
    %c0_14 = arith.constant 0 : index
    %24 = vector.load %arg14[%c32, %c0_14] : memref<144x512xbf16, #tpu.memory_space<vmem>>, vector<16x512xbf16>
    tpu.vector_store %arg14[%c32, %c0_14], %23 {strides = array<i32>} : memref<144x512xbf16, #tpu.memory_space<vmem>>, vector<16x512xbf16>,
    %c1_i32 = arith.constant 1 : i32
    %25 = tpu.dynamic_rotate %9 by %c1_i32 dim 1 : vector<16x512xf32>, i32 -> vector<16x512xf32>
    %26 = vector.broadcast %3 : vector<1x512xf32> to vector<16x512xf32>
    %27 = arith.mulf %25, %26 : vector<16x512xf32>
    %28 = arith.truncf %27 : vector<16x512xf32> to vector<16x512xbf16>
    %c48 = arith.constant 48 : index
    %c0_15 = arith.constant 0 : index
    %29 = vector.load %arg14[%c48, %c0_15] : memref<144x512xbf16, #tpu.memory_space<vmem>>, vector<16x512xbf16>
    tpu.vector_store %arg14[%c48, %c0_15], %28 {strides = array<i32>} : memref<144x512xbf16, #tpu.memory_space<vmem>>, vector<16x512xbf16>,
    %30 = arith.truncf %9 : vector<16x512xf32> to vector<16x512xbf16>
    %c64 = arith.constant 64 : index
    %c0_16 = arith.constant 0 : index
    %31 = vector.load %arg14[%c64, %c0_16] : memref<144x512xbf16, #tpu.memory_space<vmem>>, vector<16x512xbf16>
    tpu.vector_store %arg14[%c64, %c0_16], %30 {strides = array<i32>} : memref<144x512xbf16, #tpu.memory_space<vmem>>, vector<16x512xbf16>,
    %c511_i32 = arith.constant 511 : i32
    %32 = tpu.dynamic_rotate %9 by %c511_i32 dim 1 : vector<16x512xf32>, i32 -> vector<16x512xf32>
    %33 = vector.broadcast %4 : vector<1x512xf32> to vector<16x512xf32>
    %34 = arith.mulf %32, %33 : vector<16x512xf32>
    %35 = arith.truncf %34 : vector<16x512xf32> to vector<16x512xbf16>
    %c80 = arith.constant 80 : index
    %c0_17 = arith.constant 0 : index
    %36 = vector.load %arg14[%c80, %c0_17] : memref<144x512xbf16, #tpu.memory_space<vmem>>, vector<16x512xbf16>
    tpu.vector_store %arg14[%c80, %c0_17], %35 {strides = array<i32>} : memref<144x512xbf16, #tpu.memory_space<vmem>>, vector<16x512xbf16>,
    %c497_i32 = arith.constant 497 : i32
    %37 = tpu.dynamic_rotate %9 by %c497_i32 dim 1 : vector<16x512xf32>, i32 -> vector<16x512xf32>
    %38 = vector.broadcast %5 : vector<1x512xf32> to vector<16x512xf32>
    %39 = arith.mulf %37, %38 : vector<16x512xf32>
    %40 = arith.truncf %39 : vector<16x512xf32> to vector<16x512xbf16>
    %c96 = arith.constant 96 : index
    %c0_18 = arith.constant 0 : index
    %41 = vector.load %arg14[%c96, %c0_18] : memref<144x512xbf16, #tpu.memory_space<vmem>>, vector<16x512xbf16>
    tpu.vector_store %arg14[%c96, %c0_18], %40 {strides = array<i32>} : memref<144x512xbf16, #tpu.memory_space<vmem>>, vector<16x512xbf16>,
    %c496_i32 = arith.constant 496 : i32
    %42 = tpu.dynamic_rotate %9 by %c496_i32 dim 1 : vector<16x512xf32>, i32 -> vector<16x512xf32>
    %43 = vector.broadcast %6 : vector<1x512xf32> to vector<16x512xf32>
    %44 = arith.mulf %42, %43 : vector<16x512xf32>
    %45 = arith.truncf %44 : vector<16x512xf32> to vector<16x512xbf16>
    %c112 = arith.constant 112 : index
    %c0_19 = arith.constant 0 : index
    %46 = vector.load %arg14[%c112, %c0_19] : memref<144x512xbf16, #tpu.memory_space<vmem>>, vector<16x512xbf16>
    tpu.vector_store %arg14[%c112, %c0_19], %45 {strides = array<i32>} : memref<144x512xbf16, #tpu.memory_space<vmem>>, vector<16x512xbf16>,
    %c495_i32 = arith.constant 495 : i32
    %47 = tpu.dynamic_rotate %9 by %c495_i32 dim 1 : vector<16x512xf32>, i32 -> vector<16x512xf32>
    %48 = vector.broadcast %7 : vector<1x512xf32> to vector<16x512xf32>
    %49 = arith.mulf %47, %48 : vector<16x512xf32>
    %50 = arith.truncf %49 : vector<16x512xf32> to vector<16x512xbf16>
    %c128 = arith.constant 128 : index
    %c0_20 = arith.constant 0 : index
    %51 = vector.load %arg14[%c128, %c0_20] : memref<144x512xbf16, #tpu.memory_space<vmem>>, vector<16x512xbf16>
    tpu.vector_store %arg14[%c128, %c0_20], %50 {strides = array<i32>} : memref<144x512xbf16, #tpu.memory_space<vmem>>, vector<16x512xbf16>,
    %c0_21 = arith.constant 0 : index
    %c0_22 = arith.constant 0 : index
    %c0_23 = arith.constant 0 : index
    %52 = vector.load %arg2[%c0_21, %c0_22, %c0_23] : memref<1x16x128xbf16, #tpu.memory_space<vmem>>, vector<1x16x128xbf16>
    %53 = vector.shape_cast %52 : vector<1x16x128xbf16> to vector<16x128xbf16>
    %c0_24 = arith.constant 0 : index
    %c0_25 = arith.constant 0 : index
    %54 = vector.load %arg4[%c0_24, %c0_25] : memref<128x512xbf16, #tpu.memory_space<vmem>>, vector<128x512xbf16>
    %cst = arith.constant dense<0.000000e+00> : vector<16x512xf32>
    %55 = tpu.matmul %53, %54, %cst {dimension_numbers = #tpu.dot_dimension_numbers<[1], [0], [0], [1], [0, 0, 1, 1], [], []>} : vector<16x128xbf16>, vector<128x512xbf16>, vector<16x512xf32> -> vector<16x512xf32>
    %56 = arith.truncf %55 : vector<16x512xf32> to vector<16x512xbf16>
    %c0_26 = arith.constant 0 : index
    %c0_27 = arith.constant 0 : index
    %57 = vector.load %arg13[%c0_26, %c0_27] : memref<144x512xbf16, #tpu.memory_space<vmem>>, vector<16x512xbf16>
    tpu.vector_store %arg13[%c0_26, %c0_27], %56 {strides = array<i32>} : memref<144x512xbf16, #tpu.memory_space<vmem>>, vector<16x512xbf16>,
    %c511_i32_28 = arith.constant 511 : i32
    %58 = tpu.dynamic_rotate %55 by %c511_i32_28 dim 1 : vector<16x512xf32>, i32 -> vector<16x512xf32>
    %59 = vector.broadcast %4 : vector<1x512xf32> to vector<16x512xf32>
    %60 = arith.mulf %58, %59 : vector<16x512xf32>
    %61 = arith.truncf %60 : vector<16x512xf32> to vector<16x512xbf16>
    %c16_29 = arith.constant 16 : index
    %c0_30 = arith.constant 0 : index
    %62 = vector.load %arg13[%c16_29, %c0_30] : memref<144x512xbf16, #tpu.memory_space<vmem>>, vector<16x512xbf16>
    tpu.vector_store %arg13[%c16_29, %c0_30], %61 {strides = array<i32>} : memref<144x512xbf16, #tpu.memory_space<vmem>>, vector<16x512xbf16>,
    %c496_i32_31 = arith.constant 496 : i32
    %63 = tpu.dynamic_rotate %55 by %c496_i32_31 dim 1 : vector<16x512xf32>, i32 -> vector<16x512xf32>
    %64 = vector.broadcast %6 : vector<1x512xf32> to vector<16x512xf32>
    %65 = arith.mulf %63, %64 : vector<16x512xf32>
    %66 = arith.truncf %65 : vector<16x512xf32> to vector<16x512xbf16>
    %c32_32 = arith.constant 32 : index
    %c0_33 = arith.constant 0 : index
    %67 = vector.load %arg13[%c32_32, %c0_33] : memref<144x512xbf16, #tpu.memory_space<vmem>>, vector<16x512xbf16>
    tpu.vector_store %arg13[%c32_32, %c0_33], %66 {strides = array<i32>} : memref<144x512xbf16, #tpu.memory_space<vmem>>, vector<16x512xbf16>,
    %c495_i32_34 = arith.constant 495 : i32
    %68 = tpu.dynamic_rotate %55 by %c495_i32_34 dim 1 : vector<16x512xf32>, i32 -> vector<16x512xf32>
    %69 = vector.broadcast %7 : vector<1x512xf32> to vector<16x512xf32>
    %70 = arith.mulf %68, %69 : vector<16x512xf32>
    %71 = arith.truncf %70 : vector<16x512xf32> to vector<16x512xbf16>
    %c48_35 = arith.constant 48 : index
    %c0_36 = arith.constant 0 : index
    %72 = vector.load %arg13[%c48_35, %c0_36] : memref<144x512xbf16, #tpu.memory_space<vmem>>, vector<16x512xbf16>
    tpu.vector_store %arg13[%c48_35, %c0_36], %71 {strides = array<i32>} : memref<144x512xbf16, #tpu.memory_space<vmem>>, vector<16x512xbf16>,
    %c0_37 = arith.constant 0 : index
    %c0_38 = arith.constant 0 : index
    %73 = vector.load %arg5[%c0_37, %c0_38] : memref<16x64xbf16, #tpu.memory_space<vmem>>, vector<16x64xbf16>
    %c0_39 = arith.constant 0 : index
    %c0_40 = arith.constant 0 : index
    %74 = vector.load %arg13[%c0_39, %c0_40] : memref<144x512xbf16, #tpu.memory_space<vmem>>, vector<64x512xbf16>
    %cst_41 = arith.constant dense<0.000000e+00> : vector<16x512xf32>
    %75 = tpu.matmul %73, %74, %cst_41 {dimension_numbers = #tpu.dot_dimension_numbers<[1], [0], [0], [1], [0, 0, 1, 1], [], []>} : vector<16x64xbf16>, vector<64x512xbf16>, vector<16x512xf32> -> vector<16x512xf32>
    %c0_42 = arith.constant 0 : index
    %c0_43 = arith.constant 0 : index
    %76 = vector.load %arg6[%c0_42, %c0_43] : memref<16x1xf32, #tpu.memory_space<vmem>>, vector<16x1xf32>
    %77 = vector.broadcast %76 : vector<16x1xf32> to vector<16x512xf32>
    %78 = arith.addf %75, %77 : vector<16x512xf32>
    %cst_44 = arith.constant 0.000000e+00 : f32
    %79 = vector.broadcast %cst_44 : f32 to vector<16x512xf32>
    %80 = arith.maximumf %78, %79 : vector<16x512xf32>
    %c17_i32_45 = arith.constant 17 : i32
    %81 = tpu.dynamic_rotate %80 by %c17_i32_45 dim 1 : vector<16x512xf32>, i32 -> vector<16x512xf32>
    %82 = vector.broadcast %0 : vector<1x512xf32> to vector<16x512xf32>
    %83 = arith.mulf %81, %82 : vector<16x512xf32>
    %84 = arith.truncf %83 : vector<16x512xf32> to vector<16x512xbf16>
    %c0_46 = arith.constant 0 : index
    %c0_47 = arith.constant 0 : index
    %85 = vector.load %arg13[%c0_46, %c0_47] : memref<144x512xbf16, #tpu.memory_space<vmem>>, vector<16x512xbf16>
    tpu.vector_store %arg13[%c0_46, %c0_47], %84 {strides = array<i32>} : memref<144x512xbf16, #tpu.memory_space<vmem>>, vector<16x512xbf16>,
    %c16_i32_48 = arith.constant 16 : i32
    %86 = tpu.dynamic_rotate %80 by %c16_i32_48 dim 1 : vector<16x512xf32>, i32 -> vector<16x512xf32>
    %87 = vector.broadcast %1 : vector<1x512xf32> to vector<16x512xf32>
    %88 = arith.mulf %86, %87 : vector<16x512xf32>
    %89 = arith.truncf %88 : vector<16x512xf32> to vector<16x512xbf16>
    %c16_49 = arith.constant 16 : index
    %c0_50 = arith.constant 0 : index
    %90 = vector.load %arg13[%c16_49, %c0_50] : memref<144x512xbf16, #tpu.memory_space<vmem>>, vector<16x512xbf16>
    tpu.vector_store %arg13[%c16_49, %c0_50], %89 {strides = array<i32>} : memref<144x512xbf16, #tpu.memory_space<vmem>>, vector<16x512xbf16>,
    %c15_i32_51 = arith.constant 15 : i32
    %91 = tpu.dynamic_rotate %80 by %c15_i32_51 dim 1 : vector<16x512xf32>, i32 -> vector<16x512xf32>
    %92 = vector.broadcast %2 : vector<1x512xf32> to vector<16x512xf32>
    %93 = arith.mulf %91, %92 : vector<16x512xf32>
    %94 = arith.truncf %93 : vector<16x512xf32> to vector<16x512xbf16>
    %c32_52 = arith.constant 32 : index
    %c0_53 = arith.constant 0 : index
    %95 = vector.load %arg13[%c32_52, %c0_53] : memref<144x512xbf16, #tpu.memory_space<vmem>>, vector<16x512xbf16>
    tpu.vector_store %arg13[%c32_52, %c0_53], %94 {strides = array<i32>} : memref<144x512xbf16, #tpu.memory_space<vmem>>, vector<16x512xbf16>,
    %c1_i32_54 = arith.constant 1 : i32
    %96 = tpu.dynamic_rotate %80 by %c1_i32_54 dim 1 : vector<16x512xf32>, i32 -> vector<16x512xf32>
    %97 = vector.broadcast %3 : vector<1x512xf32> to vector<16x512xf32>
    %98 = arith.mulf %96, %97 : vector<16x512xf32>
    %99 = arith.truncf %98 : vector<16x512xf32> to vector<16x512xbf16>
    %c48_55 = arith.constant 48 : index
    %c0_56 = arith.constant 0 : index
    %100 = vector.load %arg13[%c48_55, %c0_56] : memref<144x512xbf16, #tpu.memory_space<vmem>>, vector<16x512xbf16>
    tpu.vector_store %arg13[%c48_55, %c0_56], %99 {strides = array<i32>} : memref<144x512xbf16, #tpu.memory_space<vmem>>, vector<16x512xbf16>,
    %101 = arith.truncf %80 : vector<16x512xf32> to vector<16x512xbf16>
    %c64_57 = arith.constant 64 : index
    %c0_58 = arith.constant 0 : index
    %102 = vector.load %arg13[%c64_57, %c0_58] : memref<144x512xbf16, #tpu.memory_space<vmem>>, vector<16x512xbf16>
    tpu.vector_store %arg13[%c64_57, %c0_58], %101 {strides = array<i32>} : memref<144x512xbf16, #tpu.memory_space<vmem>>, vector<16x512xbf16>,
    %c511_i32_59 = arith.constant 511 : i32
    %103 = tpu.dynamic_rotate %80 by %c511_i32_59 dim 1 : vector<16x512xf32>, i32 -> vector<16x512xf32>
    %104 = vector.broadcast %4 : vector<1x512xf32> to vector<16x512xf32>
    %105 = arith.mulf %103, %104 : vector<16x512xf32>
    %106 = arith.truncf %105 : vector<16x512xf32> to vector<16x512xbf16>
    %c80_60 = arith.constant 80 : index
    %c0_61 = arith.constant 0 : index
    %107 = vector.load %arg13[%c80_60, %c0_61] : memref<144x512xbf16, #tpu.memory_space<vmem>>, vector<16x512xbf16>
    tpu.vector_store %arg13[%c80_60, %c0_61], %106 {strides = array<i32>} : memref<144x512xbf16, #tpu.memory_space<vmem>>, vector<16x512xbf16>,
    %c497_i32_62 = arith.constant 497 : i32
    %108 = tpu.dynamic_rotate %80 by %c497_i32_62 dim 1 : vector<16x512xf32>, i32 -> vector<16x512xf32>
    %109 = vector.broadcast %5 : vector<1x512xf32> to vector<16x512xf32>
    %110 = arith.mulf %108, %109 : vector<16x512xf32>
    %111 = arith.truncf %110 : vector<16x512xf32> to vector<16x512xbf16>
    %c96_63 = arith.constant 96 : index
    %c0_64 = arith.constant 0 : index
    %112 = vector.load %arg13[%c96_63, %c0_64] : memref<144x512xbf16, #tpu.memory_space<vmem>>, vector<16x512xbf16>
    tpu.vector_store %arg13[%c96_63, %c0_64], %111 {strides = array<i32>} : memref<144x512xbf16, #tpu.memory_space<vmem>>, vector<16x512xbf16>,
    %c496_i32_65 = arith.constant 496 : i32
    %113 = tpu.dynamic_rotate %80 by %c496_i32_65 dim 1 : vector<16x512xf32>, i32 -> vector<16x512xf32>
    %114 = vector.broadcast %6 : vector<1x512xf32> to vector<16x512xf32>
    %115 = arith.mulf %113, %114 : vector<16x512xf32>
    %116 = arith.truncf %115 : vector<16x512xf32> to vector<16x512xbf16>
    %c112_66 = arith.constant 112 : index
    %c0_67 = arith.constant 0 : index
    %117 = vector.load %arg13[%c112_66, %c0_67] : memref<144x512xbf16, #tpu.memory_space<vmem>>, vector<16x512xbf16>
    tpu.vector_store %arg13[%c112_66, %c0_67], %116 {strides = array<i32>} : memref<144x512xbf16, #tpu.memory_space<vmem>>, vector<16x512xbf16>,
    %c495_i32_68 = arith.constant 495 : i32
    %118 = tpu.dynamic_rotate %80 by %c495_i32_68 dim 1 : vector<16x512xf32>, i32 -> vector<16x512xf32>
    %119 = vector.broadcast %7 : vector<1x512xf32> to vector<16x512xf32>
    %120 = arith.mulf %118, %119 : vector<16x512xf32>
    %121 = arith.truncf %120 : vector<16x512xf32> to vector<16x512xbf16>
    %c128_69 = arith.constant 128 : index
    %c0_70 = arith.constant 0 : index
    %122 = vector.load %arg13[%c128_69, %c0_70] : memref<144x512xbf16, #tpu.memory_space<vmem>>, vector<16x512xbf16>
    tpu.vector_store %arg13[%c128_69, %c0_70], %121 {strides = array<i32>} : memref<144x512xbf16, #tpu.memory_space<vmem>>, vector<16x512xbf16>,
    %c0_71 = arith.constant 0 : index
    %c0_72 = arith.constant 0 : index
    %123 = vector.load %arg7[%c0_71, %c0_72] : memref<16x144xbf16, #tpu.memory_space<vmem>>, vector<16x144xbf16>
    %c0_73 = arith.constant 0 : index
    %c0_74 = arith.constant 0 : index
    %124 = vector.load %arg13[%c0_73, %c0_74] : memref<144x512xbf16, #tpu.memory_space<vmem>>, vector<144x512xbf16>
    %cst_75 = arith.constant dense<0.000000e+00> : vector<16x512xf32>
    %125 = tpu.matmul %123, %124, %cst_75 {dimension_numbers = #tpu.dot_dimension_numbers<[1], [0], [0], [1], [0, 0, 1, 1], [], []>} : vector<16x144xbf16>, vector<144x512xbf16>, vector<16x512xf32> -> vector<16x512xf32>
    %c0_76 = arith.constant 0 : index
    %c0_77 = arith.constant 0 : index
    %126 = vector.load %arg8[%c0_76, %c0_77] : memref<16x144xbf16, #tpu.memory_space<vmem>>, vector<16x144xbf16>
    %c0_78 = arith.constant 0 : index
    %c0_79 = arith.constant 0 : index
    %127 = vector.load %arg14[%c0_78, %c0_79] : memref<144x512xbf16, #tpu.memory_space<vmem>>, vector<144x512xbf16>
    %cst_80 = arith.constant dense<0.000000e+00> : vector<16x512xf32>
    %128 = tpu.matmul %126, %127, %cst_80 {dimension_numbers = #tpu.dot_dimension_numbers<[1], [0], [0], [1], [0, 0, 1, 1], [], []>} : vector<16x144xbf16>, vector<144x512xbf16>, vector<16x512xf32> -> vector<16x512xf32>
    %129 = arith.addf %125, %128 : vector<16x512xf32>
    %c0_81 = arith.constant 0 : index
    %c0_82 = arith.constant 0 : index
    %130 = vector.load %arg9[%c0_81, %c0_82] : memref<16x1xf32, #tpu.memory_space<vmem>>, vector<16x1xf32>
    %131 = vector.broadcast %130 : vector<16x1xf32> to vector<16x512xf32>
    %132 = arith.addf %129, %131 : vector<16x512xf32>
    %cst_83 = arith.constant 0.000000e+00 : f32
    %133 = vector.broadcast %cst_83 : f32 to vector<16x512xf32>
    %134 = arith.maximumf %132, %133 : vector<16x512xf32>
    %c17_i32_84 = arith.constant 17 : i32
    %135 = tpu.dynamic_rotate %134 by %c17_i32_84 dim 1 : vector<16x512xf32>, i32 -> vector<16x512xf32>
    %136 = vector.broadcast %0 : vector<1x512xf32> to vector<16x512xf32>
    %137 = arith.mulf %135, %136 : vector<16x512xf32>
    %138 = arith.truncf %137 : vector<16x512xf32> to vector<16x512xbf16>
    %c0_85 = arith.constant 0 : index
    %c0_86 = arith.constant 0 : index
    %139 = vector.load %arg13[%c0_85, %c0_86] : memref<144x512xbf16, #tpu.memory_space<vmem>>, vector<16x512xbf16>
    tpu.vector_store %arg13[%c0_85, %c0_86], %138 {strides = array<i32>} : memref<144x512xbf16, #tpu.memory_space<vmem>>, vector<16x512xbf16>,
    %c16_i32_87 = arith.constant 16 : i32
    %140 = tpu.dynamic_rotate %134 by %c16_i32_87 dim 1 : vector<16x512xf32>, i32 -> vector<16x512xf32>
    %141 = vector.broadcast %1 : vector<1x512xf32> to vector<16x512xf32>
    %142 = arith.mulf %140, %141 : vector<16x512xf32>
    %143 = arith.truncf %142 : vector<16x512xf32> to vector<16x512xbf16>
    %c16_88 = arith.constant 16 : index
    %c0_89 = arith.constant 0 : index
    %144 = vector.load %arg13[%c16_88, %c0_89] : memref<144x512xbf16, #tpu.memory_space<vmem>>, vector<16x512xbf16>
    tpu.vector_store %arg13[%c16_88, %c0_89], %143 {strides = array<i32>} : memref<144x512xbf16, #tpu.memory_space<vmem>>, vector<16x512xbf16>,
    %c15_i32_90 = arith.constant 15 : i32
    %145 = tpu.dynamic_rotate %134 by %c15_i32_90 dim 1 : vector<16x512xf32>, i32 -> vector<16x512xf32>
    %146 = vector.broadcast %2 : vector<1x512xf32> to vector<16x512xf32>
    %147 = arith.mulf %145, %146 : vector<16x512xf32>
    %148 = arith.truncf %147 : vector<16x512xf32> to vector<16x512xbf16>
    %c32_91 = arith.constant 32 : index
    %c0_92 = arith.constant 0 : index
    %149 = vector.load %arg13[%c32_91, %c0_92] : memref<144x512xbf16, #tpu.memory_space<vmem>>, vector<16x512xbf16>
    tpu.vector_store %arg13[%c32_91, %c0_92], %148 {strides = array<i32>} : memref<144x512xbf16, #tpu.memory_space<vmem>>, vector<16x512xbf16>,
    %c1_i32_93 = arith.constant 1 : i32
    %150 = tpu.dynamic_rotate %134 by %c1_i32_93 dim 1 : vector<16x512xf32>, i32 -> vector<16x512xf32>
    %151 = vector.broadcast %3 : vector<1x512xf32> to vector<16x512xf32>
    %152 = arith.mulf %150, %151 : vector<16x512xf32>
    %153 = arith.truncf %152 : vector<16x512xf32> to vector<16x512xbf16>
    %c48_94 = arith.constant 48 : index
    %c0_95 = arith.constant 0 : index
    %154 = vector.load %arg13[%c48_94, %c0_95] : memref<144x512xbf16, #tpu.memory_space<vmem>>, vector<16x512xbf16>
    tpu.vector_store %arg13[%c48_94, %c0_95], %153 {strides = array<i32>} : memref<144x512xbf16, #tpu.memory_space<vmem>>, vector<16x512xbf16>,
    %155 = arith.truncf %134 : vector<16x512xf32> to vector<16x512xbf16>
    %c64_96 = arith.constant 64 : index
    %c0_97 = arith.constant 0 : index
    %156 = vector.load %arg13[%c64_96, %c0_97] : memref<144x512xbf16, #tpu.memory_space<vmem>>, vector<16x512xbf16>
    tpu.vector_store %arg13[%c64_96, %c0_97], %155 {strides = array<i32>} : memref<144x512xbf16, #tpu.memory_space<vmem>>, vector<16x512xbf16>,
    %c511_i32_98 = arith.constant 511 : i32
    %157 = tpu.dynamic_rotate %134 by %c511_i32_98 dim 1 : vector<16x512xf32>, i32 -> vector<16x512xf32>
    %158 = vector.broadcast %4 : vector<1x512xf32> to vector<16x512xf32>
    %159 = arith.mulf %157, %158 : vector<16x512xf32>
    %160 = arith.truncf %159 : vector<16x512xf32> to vector<16x512xbf16>
    %c80_99 = arith.constant 80 : index
    %c0_100 = arith.constant 0 : index
    %161 = vector.load %arg13[%c80_99, %c0_100] : memref<144x512xbf16, #tpu.memory_space<vmem>>, vector<16x512xbf16>
    tpu.vector_store %arg13[%c80_99, %c0_100], %160 {strides = array<i32>} : memref<144x512xbf16, #tpu.memory_space<vmem>>, vector<16x512xbf16>,
    %c497_i32_101 = arith.constant 497 : i32
    %162 = tpu.dynamic_rotate %134 by %c497_i32_101 dim 1 : vector<16x512xf32>, i32 -> vector<16x512xf32>
    %163 = vector.broadcast %5 : vector<1x512xf32> to vector<16x512xf32>
    %164 = arith.mulf %162, %163 : vector<16x512xf32>
    %165 = arith.truncf %164 : vector<16x512xf32> to vector<16x512xbf16>
    %c96_102 = arith.constant 96 : index
    %c0_103 = arith.constant 0 : index
    %166 = vector.load %arg13[%c96_102, %c0_103] : memref<144x512xbf16, #tpu.memory_space<vmem>>, vector<16x512xbf16>
    tpu.vector_store %arg13[%c96_102, %c0_103], %165 {strides = array<i32>} : memref<144x512xbf16, #tpu.memory_space<vmem>>, vector<16x512xbf16>,
    %c496_i32_104 = arith.constant 496 : i32
    %167 = tpu.dynamic_rotate %134 by %c496_i32_104 dim 1 : vector<16x512xf32>, i32 -> vector<16x512xf32>
    %168 = vector.broadcast %6 : vector<1x512xf32> to vector<16x512xf32>
    %169 = arith.mulf %167, %168 : vector<16x512xf32>
    %170 = arith.truncf %169 : vector<16x512xf32> to vector<16x512xbf16>
    %c112_105 = arith.constant 112 : index
    %c0_106 = arith.constant 0 : index
    %171 = vector.load %arg13[%c112_105, %c0_106] : memref<144x512xbf16, #tpu.memory_space<vmem>>, vector<16x512xbf16>
    tpu.vector_store %arg13[%c112_105, %c0_106], %170 {strides = array<i32>} : memref<144x512xbf16, #tpu.memory_space<vmem>>, vector<16x512xbf16>,
    %c495_i32_107 = arith.constant 495 : i32
    %172 = tpu.dynamic_rotate %134 by %c495_i32_107 dim 1 : vector<16x512xf32>, i32 -> vector<16x512xf32>
    %173 = vector.broadcast %7 : vector<1x512xf32> to vector<16x512xf32>
    %174 = arith.mulf %172, %173 : vector<16x512xf32>
    %175 = arith.truncf %174 : vector<16x512xf32> to vector<16x512xbf16>
    %c128_108 = arith.constant 128 : index
    %c0_109 = arith.constant 0 : index
    %176 = vector.load %arg13[%c128_108, %c0_109] : memref<144x512xbf16, #tpu.memory_space<vmem>>, vector<16x512xbf16>
    tpu.vector_store %arg13[%c128_108, %c0_109], %175 {strides = array<i32>} : memref<144x512xbf16, #tpu.memory_space<vmem>>, vector<16x512xbf16>,
    %c0_110 = arith.constant 0 : index
    %c0_111 = arith.constant 0 : index
    %177 = vector.load %arg10[%c0_110, %c0_111] : memref<8x144xbf16, #tpu.memory_space<vmem>>, vector<8x144xbf16>
    %c0_112 = arith.constant 0 : index
    %c0_113 = arith.constant 0 : index
    %178 = vector.load %arg13[%c0_112, %c0_113] : memref<144x512xbf16, #tpu.memory_space<vmem>>, vector<144x512xbf16>
    %cst_114 = arith.constant dense<0.000000e+00> : vector<8x512xf32>
    %179 = tpu.matmul %177, %178, %cst_114 {dimension_numbers = #tpu.dot_dimension_numbers<[1], [0], [0], [1], [0, 0, 1, 1], [], []>} : vector<8x144xbf16>, vector<144x512xbf16>, vector<8x512xf32> -> vector<8x512xf32>
    %c0_115 = arith.constant 0 : index
    %c0_116 = arith.constant 0 : index
    %180 = vector.load %arg11[%c0_115, %c0_116] : memref<8x1xf32, #tpu.memory_space<vmem>>, vector<8x1xf32>
    %181 = vector.broadcast %180 : vector<8x1xf32> to vector<8x512xf32>
    %182 = arith.addf %179, %181 : vector<8x512xf32>
    %cst_117 = arith.constant 0.000000e+00 : f32
    %183 = vector.broadcast %cst_117 : f32 to vector<8x512xf32>
    %184 = arith.maximumf %182, %183 : vector<8x512xf32>
    %c0_118 = arith.constant 0 : index
    %c0_119 = arith.constant 0 : index
    %c0_120 = arith.constant 0 : index
    %185 = vector.load %arg12[%c0_118, %c0_119, %c0_120] : memref<1x8x512xf32, #tpu.memory_space<vmem>>, vector<1x8x512xf32>
    %186 = vector.shape_cast %185 : vector<1x8x512xf32> to vector<8x512xf32>
    %187 = vector.shape_cast %184 : vector<8x512xf32> to vector<1x8x512xf32>
    tpu.vector_store %arg12[%c0_118, %c0_119, %c0_120], %187 {strides = array<i32>} : memref<1x8x512xf32, #tpu.memory_space<vmem>>, vector<1x8x512xf32>,
    return
  }
  func.func @transform_0(%arg0: i32) -> (i32, i32) {
    %c0_i32 = arith.constant 0 : i32
    %c0_i32_0 = arith.constant 0 : i32
    %c0_i32_1 = arith.constant 0 : i32
    return %c0_i32, %c0_i32_0 : i32, i32
  }
  func.func @transform_1(%arg0: i32) -> (i32, i32, i32) {
    %c0_i32 = arith.constant 0 : i32
    %c0_i32_0 = arith.constant 0 : i32
    %c0_i32_1 = arith.constant 0 : i32
    return %arg0, %c0_i32, %c0_i32_0 : i32, i32, i32
  }
  func.func @transform_2(%arg0: i32) -> (i32, i32, i32) {
    %c0_i32 = arith.constant 0 : i32
    %c0_i32_0 = arith.constant 0 : i32
    %c0_i32_1 = arith.constant 0 : i32
    return %arg0, %c0_i32, %c0_i32_0 : i32, i32, i32
  }
  func.func @transform_3(%arg0: i32) -> (i32, i32) {
    %c0_i32 = arith.constant 0 : i32
    %c0_i32_0 = arith.constant 0 : i32
    %c0_i32_1 = arith.constant 0 : i32
    return %c0_i32, %c0_i32_0 : i32, i32
  }
  func.func @transform_4(%arg0: i32) -> (i32, i32) {
    %c0_i32 = arith.constant 0 : i32
    %c0_i32_0 = arith.constant 0 : i32
    %c0_i32_1 = arith.constant 0 : i32
    return %c0_i32, %c0_i32_0 : i32, i32
  }
  func.func @transform_5(%arg0: i32) -> (i32, i32) {
    %c0_i32 = arith.constant 0 : i32
    %c0_i32_0 = arith.constant 0 : i32
    %c0_i32_1 = arith.constant 0 : i32
    return %c0_i32, %c0_i32_0 : i32, i32
  }
  func.func @transform_6(%arg0: i32) -> (i32, i32) {
    %c0_i32 = arith.constant 0 : i32
    %c0_i32_0 = arith.constant 0 : i32
    %c0_i32_1 = arith.constant 0 : i32
    return %c0_i32, %c0_i32_0 : i32, i32
  }
  func.func @transform_7(%arg0: i32) -> (i32, i32) {
    %c0_i32 = arith.constant 0 : i32
    %c0_i32_0 = arith.constant 0 : i32
    %c0_i32_1 = arith.constant 0 : i32
    return %c0_i32, %c0_i32_0 : i32, i32
  }
  func.func @transform_8(%arg0: i32) -> (i32, i32) {
    %c0_i32 = arith.constant 0 : i32
    %c0_i32_0 = arith.constant 0 : i32
    %c0_i32_1 = arith.constant 0 : i32
    return %c0_i32, %c0_i32_0 : i32, i32
  }
  func.func @transform_9(%arg0: i32) -> (i32, i32) {
    %c0_i32 = arith.constant 0 : i32
    %c0_i32_0 = arith.constant 0 : i32
    %c0_i32_1 = arith.constant 0 : i32
    return %c0_i32, %c0_i32_0 : i32, i32
  }
  func.func @transform_10(%arg0: i32) -> (i32, i32) {
    %c0_i32 = arith.constant 0 : i32
    %c0_i32_0 = arith.constant 0 : i32
    %c0_i32_1 = arith.constant 0 : i32
    return %c0_i32, %c0_i32_0 : i32, i32
  }
  func.func @transform_11(%arg0: i32) -> (i32, i32, i32) {
    %c0_i32 = arith.constant 0 : i32
    %c0_i32_0 = arith.constant 0 : i32
    %c0_i32_1 = arith.constant 0 : i32
    return %arg0, %c0_i32, %c0_i32_0 : i32, i32, i32
  }
}

</mosaic_0001>

<bundles_post_ra>
// kernel: tpu_custom_call.1
= control target key start
LH: loop header
LB: loop body
LE: loop exit
PB: predicated region body
PF: predicated region fallthrough
CT: control target
= control target key end

     0   :  { %16 = vsyncpa [#allocation5], 0  ;;  %s4206_s0 = inlined_call_operand.hbm [shape: f32[9,512], index: 0, kind: input, shape index: {}]   ;;  %s4207_s1 = inlined_call_operand.vmem [shape: bf16[1,16,128], index: 1, kind: input, shape index: {}]   ;;  %s4208_s2 = inlined_call_operand.hbm [shape: f32[1,16,512], index: 2, kind: input, shape index: {}]   ;;  %s4209_s3 = inlined_call_operand.hbm [shape: bf16[128,512], index: 3, kind: input, shape index: {}]   ;;  %s4210_s4 = inlined_call_operand.vmem [shape: bf16[16,64], index: 4, kind: input, shape index: {}]   ;;  %s4211_s5 = inlined_call_operand.vmem [shape: f32[16,1], index: 5, kind: input, shape index: {}]   ;;  %s4212_s6 = inlined_call_operand.vmem [shape: bf16[16,144], index: 6, kind: input, shape index: {}]   ;;  %s4213_s7 = inlined_call_operand.vmem [shape: bf16[16,144], index: 7, kind: input, shape index: {}]   ;;  %s4214_s8 = inlined_call_operand.vmem [shape: f32[16,1], index: 8, kind: input, shape index: {}]   ;;  %s4215_s9 = inlined_call_operand.vmem [shape: bf16[8,144], index: 9, kind: input, shape index: {}]   ;;  %s4216_s10 = inlined_call_operand.vmem [shape: f32[8,1], index: 10, kind: input, shape index: {}]   ;;  %s4217_s11 = inlined_call_operand.hbm [shape: f32[1,8,512], index: 11, kind: output, shape index: {}]  }
   0x1   :  { %17 = vsyncpa [#allocation8], 0 }
   0x2   :  { %18 = vsyncpa [#allocation6], 0  ;;  %s2498_s17 = smov [#allocation7]   ;;  %s2499_s19 = smov [#allocation4]  }
   0x3   :  { %s38_s18 = sshll.u32 %s2498_s17, 4  ;;  %s24_s20 = sshll.u32 %s2499_s19, 4  ;;  %s39_s18 = int_to_ptr.vmem [resolvable:$true] %s38_s18  ;;  %s2574_s20 = int_to_ptr.vmem [resolvable:$true] %s24_s20 }
   0x4   :  { %s2404_s23 = scalar_lea.hbm %s4208_s2, 1024 }
   0x5   :  { %p2405_p0 = scmp.ne.s32.totalorder %s4208_s2, %s2404_s23  ;;  %p2408_p1 = scmp.lt.u32.totalorder %s2404_s23, %s4208_s2 }
   0x7   :  { %p2410_p2 = pnand %p2408_p1, %p2405_p0 }
   0x9   :  { %2413 = shalt.err (!%p2410_p2)
}
   0xa   :  { %s2414_s28 = scalar_lea.vmem %s39_s18, 1024  ;;  %p2419_p4 = scmp.lt.s32.totalorder %s39_s18, %s39_s18 }
   0xb   :  { %p2415_p3 = scmp.ne.s32.totalorder %s39_s18, %s2414_s28  ;;  %p2420_p5 = scmp.lt.s32.totalorder %s2414_s28, %s2414_s28 }
   0xd   :  { %p2421_p6 = por %p2420_p5, %p2419_p4 }
   0xf   :  { %p2422_p7 = pnand %p2421_p6, %p2415_p3 }
  0x11   :  { %2425 = shalt.err (!%p2422_p7)
}
  0x12   :  { %s2500_s29 = smov 512   ;;  %s2501_s30 = smov 32  }
  0x13   :  { %44 = dma.hbm_to_vmem [thread:$0]  %s4208_s2, 1024, %s39_s18, [#allocation8], %s2500_s29, %s2500_s29, %s2501_s30  }
  0x14   :  { %s2426_s16 = scalar_lea.hbm %s4206_s0, 1024 }
  0x15   :  { %p2427_p8 = scmp.ne.s32.totalorder %s4206_s0, %s2426_s16  ;;  %p2430_p9 = scmp.lt.u32.totalorder %s2426_s16, %s4206_s0 }
  0x17   :  { %p2432_p10 = pnand %p2430_p9, %p2427_p8 }
  0x19   :  { %2435 = shalt.err (!%p2432_p10)
}
  0x1a   :  { %s2436_s23 = scalar_lea.vmem %s2574_s20, 1024  ;;  %p2441_p12 = scmp.lt.s32.totalorder %s2574_s20, %s2574_s20 }
  0x1b   :  { %p2437_p11 = scmp.ne.s32.totalorder %s2574_s20, %s2436_s23  ;;  %p2442_p13 = scmp.lt.s32.totalorder %s2436_s23, %s2436_s23 }
  0x1d   :  { %p2443_p0 = por %p2442_p13, %p2441_p12 }
  0x1f   :  { %p2444_p1 = pnand %p2443_p0, %p2437_p11 }
  0x21   :  { %2447 = shalt.err (!%p2444_p1)
}
  0x22   :  { %30 = dma.hbm_to_vmem [thread:$0]  %s4206_s0, 1024, %s2574_s20, [#allocation5], %s2500_s29, %s2500_s29, %s2501_s30  }
  0x23   :  { %s2502_s24 = smov [#allocation9]   ;;  %s2448_s28 = scalar_lea.hbm %s4209_s3, 4096 }
  0x24   :  { %s50_s25 = sshll.u32 %s2502_s24, 4  ;;  %p2449_p2 = scmp.ne.s32.totalorder %s4209_s3, %s2448_s28  ;;  %s51_s25 = int_to_ptr.vmem [resolvable:$true] %s50_s25 }
  0x25   :  { %p2452_p3 = scmp.lt.u32.totalorder %s2448_s28, %s4209_s3 }
  0x27   :  { %p2454_p4 = pnand %p2452_p3, %p2449_p2 }
  0x29   :  { %2457 = shalt.err (!%p2454_p4)
}
  0x2a   :  { %s2458_s16 = scalar_lea.vmem %s51_s25, 4096  ;;  %p2463_p6 = scmp.lt.s32.totalorder %s51_s25, %s51_s25 }
  0x2b   :  { %p2459_p5 = scmp.ne.s32.totalorder %s51_s25, %s2458_s16  ;;  %p2464_p7 = scmp.lt.s32.totalorder %s2458_s16, %s2458_s16 }
  0x2d   :  { %p2465_p8 = por %p2464_p7, %p2463_p6 }
  0x2f   :  { %p2466_p9 = pnand %p2465_p8, %p2459_p5 }
  0x31   :  { %2469 = shalt.err (!%p2466_p9)
}
  0x32   :  { %s2503_s0 = smov 256   ;;  %s2504_s20 = smov 16  }
  0x33   :  { %56 = dma.hbm_to_vmem [thread:$0]  %s4209_s3, 4096, %s51_s25, [#allocation8], %s2503_s0, %s2503_s0, %s2504_s20  }
  0x34   :  { %2492 = dma.done.wait [#allocation5], 1024  }
  0x35   :  { %2493 = vsyncadd [#allocation5], 4294966272 }
  0x36   :  { %2494 = dma.done.wait [#allocation8], 5120  }
  0x37   :  { %2495 = vsyncadd [#allocation8], 4294962176  ;;  %v2505_v0 = vmov 0   ;;  %v2346_v1 = vld [vmem:[#allocation9 + $0x4] ss:$16 sps:$4 sm:$0xff]   ;;  %s2506_s19 = smov 127   ;;  %v120_v63 = vlaneseq }
  0x38   :  { %842 = vmatprep.mubr.bf16.mxu0 %v2505_v0  ;;  %885 = vmatprep.mubr.bf16.mxu1 %v2505_v0  ;;  %v2348_v2 = vld [vmem:[#allocation9 + $0xc] ss:$16 sps:$4 sm:$0xff]   ;;  %v2350_v3 = vld [vmem:[#allocation9] ss:$16 sps:$4 sm:$0xff]   ;;  %v2351_v4 = vld [vmem:[#allocation9 + $0x8] ss:$16 sps:$4 sm:$0xff]  }
  0x39   :  { %2345 = vset.pattern.permute.xlu1 %v2505_v0  ;;  %2344 = vset.pattern.permute.xlu0 %v2505_v0  ;;  %v2352_v5 = vld [vmem:[#allocation9 + $0x24] ss:$16 sps:$4 sm:$0xff]   ;;  %v2354_v6 = vld [vmem:[#allocation9 + $0x2c] ss:$16 sps:$4 sm:$0xff]   ;;  %v2356_v7 = vld [vmem:[#allocation9 + $0x20] ss:$16 sps:$4 sm:$0xff]  }
  0x3a   :  { %810 = vmatprep.subr.bf16.mxu0 %v2346_v1  ;;  %853 = vmatprep.subr.bf16.mxu1 %v2348_v2  ;;  %v2357_v8 = vld [vmem:[#allocation9 + $0x28] ss:$16 sps:$4 sm:$0xff]   ;;  %v2358_v9 = vld [vmem:[#allocation9 + $0x44] ss:$16 sps:$4 sm:$0xff]   ;;  %v2360_v10 = vld [vmem:[#allocation9 + $0x4c] ss:$16 sps:$4 sm:$0xff]  }
  0x3b   :  { %811 = vmatpush1.bf16.msra.mxu0 %v2350_v3  ;;  %854 = vmatpush1.bf16.msra.mxu1 %v2351_v4  ;;  %v2362_v11 = vld [vmem:[#allocation9 + $0x40] ss:$16 sps:$4 sm:$0xff]   ;;  %v2363_v12 = vld [vmem:[#allocation9 + $0x48] ss:$16 sps:$4 sm:$0xff]   ;;  %v2364_v13 = vld [vmem:[#allocation9 + $0x64] ss:$16 sps:$4 sm:$0xff]  }
  0x3c   :  { %812 = vmatprep.subr.bf16.mxu0 %v2352_v5  ;;  %855 = vmatprep.subr.bf16.mxu1 %v2354_v6  ;;  %v2366_v14 = vld [vmem:[#allocation9 + $0x6c] ss:$16 sps:$4 sm:$0xff]   ;;  %v2368_v15 = vld [vmem:[#allocation9 + $0x60] ss:$16 sps:$4 sm:$0xff]   ;;  %v2369_v16 = vld [vmem:[#allocation9 + $0x68] ss:$16 sps:$4 sm:$0xff]  }
  0x3d   :  { %v2370_v17 = vld [vmem:[#allocation9 + $0x84] ss:$16 sps:$4 sm:$0xff]   ;;  %v2372_v18 = vld [vmem:[#allocation9 + $0x8c] ss:$16 sps:$4 sm:$0xff]   ;;  %v2374_v19 = vld [vmem:[#allocation9 + $0x80] ss:$16 sps:$4 sm:$0xff]  }
  0x3e   :  { %v2375_v20 = vld [vmem:[#allocation9 + $0x88] ss:$16 sps:$4 sm:$0xff]   ;;  %v2376_v21 = vld [vmem:[#allocation9 + $0xa4] ss:$16 sps:$4 sm:$0xff]   ;;  %v2378_v22 = vld [vmem:[#allocation9 + $0xac] ss:$16 sps:$4 sm:$0xff]  }
  0x3f   :  { %813 = vmatpush1.bf16.msra.mxu0 %v2356_v7  ;;  %856 = vmatpush1.bf16.msra.mxu1 %v2357_v8  ;;  %v2380_v23 = vld [vmem:[#allocation9 + $0xa0] ss:$16 sps:$4 sm:$0xff]   ;;  %v2381_v24 = vld [vmem:[#allocation9 + $0xa8] ss:$16 sps:$4 sm:$0xff]   ;;  %v2382_v25 = vld [vmem:[#allocation9 + $0xc4] ss:$16 sps:$4 sm:$0xff]  }
  0x40   :  { %814 = vmatprep.subr.bf16.mxu0 %v2358_v9  ;;  %857 = vmatprep.subr.bf16.mxu1 %v2360_v10  ;;  %v2384_v26 = vld [vmem:[#allocation9 + $0xcc] ss:$16 sps:$4 sm:$0xff]   ;;  %v2386_v27 = vld [vmem:[#allocation9 + $0xc0] ss:$16 sps:$4 sm:$0xff]   ;;  %v2387_v28 = vld [vmem:[#allocation9 + $0xc8] ss:$16 sps:$4 sm:$0xff]  }
  0x41   :  { %v2388_v29 = vld [vmem:[#allocation9 + $0xe4] ss:$16 sps:$4 sm:$0xff]   ;;  %v2390_v30 = vld [vmem:[#allocation9 + $0xec] ss:$16 sps:$4 sm:$0xff]   ;;  %v2392_v31 = vld [vmem:[#allocation9 + $0xe0] ss:$16 sps:$4 sm:$0xff]  }
  0x42   :  { %v2393_v32 = vld [vmem:[#allocation9 + $0xe8] ss:$16 sps:$4 sm:$0xff]   ;;  %v2394_v33 = vld [vmem:[%s4207_s1] sm:$0xff]   ;;  %s2507_s1 = smov 112   ;;  %s2508_s21 = smov 111   ;;  %v2673_v52 = vld [vmem:[#allocation7 + $0x30] sm:$0xff] }
  0x43   :  { %815 = vmatpush1.bf16.msra.mxu0 %v2362_v11  ;;  %858 = vmatpush1.bf16.msra.mxu1 %v2363_v12  ;;  %v1042_v46 = vld [vmem:[%s4211_s5] sm:$0xff]  ;;  %v1043_v47 = vld [vmem:[%s4211_s5 + $0x8] sm:$0xff]  ;;  %s2509_s24 = smov 17   ;;  %v2675_v53 = vld [vmem:[#allocation7 + $0x10] sm:$0xff]  ;;  %s2510_s5 = smov 15   ;;  %v133_v2 = vshrl.u32 %v120_v63, 7 }
  0x44   :  { %816 = vmatprep.subr.bf16.mxu0 %v2364_v13  ;;  %859 = vmatprep.subr.bf16.mxu1 %v2366_v14  ;;  %v2657_v48 = vld [vmem:[#allocation7 + $0x20] sm:$0xff]  ;;  %v2665_v50 = vld [vmem:[#allocation7 + $0x28] sm:$0xff]  ;;  %v2681_v54 = vld [vmem:[#allocation7 + $0x38] sm:$0xff]  ;;  %s2511_s25 = smov 1   ;;  %s2512_s26 = smov 113   ;;  %v2769_v4 = vand.u32 127, %v120_v63 }
  0x45   :  { %v2659_v49 = vld [vmem:[#allocation7] sm:$0xff]  ;;  %v2667_v51 = vld [vmem:[#allocation7 + $0x8] sm:$0xff]  ;;  %v2683_v55 = vld [vmem:[#allocation7 + $0x18] sm:$0xff]  ;;  %v2771_v5 = vsub.s32 1, %v133_v2  ;;  %v2787_v13 = vsub.s32 0, %v133_v2  ;;  %v2789_v14 = vsub.s32 2, %v133_v2 }
  0x46   :  { %v89_v8 = vld [vmem:[#allocation4 + $0x5] ss:$8 sm:$0xf]  ;;  %vm378_vm0 = vcmp.lt.s32.totalorder %v2769_v4, 127  ;;  %vm502_vm1 = vcmp.lt.s32.totalorder %v2769_v4, 112  ;;  %vm564_vm2 = vcmp.lt.s32.totalorder %v2769_v4, 111 }
  0x47   :  { %817 = vmatpush1.bf16.msra.mxu0 %v2368_v15  ;;  %860 = vmatpush1.bf16.msra.mxu1 %v2369_v16  ;;  %v2781_v9 = vrot.slane %v89_v8, %v2771_v5  ;;  %vm1059_vm3 = vcmask 523264   ;;  %vm122_vm4 = vcmp.lt.s32.totalorder %v2769_v4, 17  ;;  %vm184_vm5 = vcmp.lt.s32.totalorder %v2769_v4, 16 }
  0x48   :  { %818 = vmatprep.subr.bf16.mxu0 %v2370_v17  ;;  %861 = vmatprep.subr.bf16.mxu1 %v2372_v18  ;;  %v2796_v17 = vsub.s32 3, %v133_v2  ;;  %vm246_vm6 = vcmp.lt.s32.totalorder %v2769_v4, 15  ;;  %vm308_vm7 = vcmp.lt.s32.totalorder %v2769_v4, 1  ;;  %vm440_vm8 = vcmp.lt.s32.totalorder %v2769_v4, 113 }
  0x49   :  { %vm1570_vm9 = vcmask 130048  }
  0x4b   :  { %819 = vmatpush1.bf16.msra.mxu0 %v2374_v19  ;;  %862 = vmatpush1.bf16.msra.mxu1 %v2375_v20  ;;  %v93_v19 = vld [vmem:[#allocation4 + $0x7] ss:$8 sm:$0xf] }
  0x4c   :  { %820 = vmatprep.subr.bf16.mxu0 %v2376_v21  ;;  %863 = vmatprep.subr.bf16.mxu1 %v2378_v22 }
  0x4f   :  { %821 = vmatpush1.bf16.msra.mxu0 %v2380_v23  ;;  %864 = vmatpush1.bf16.msra.mxu1 %v2381_v24  ;;  %v2803_v23 = vrot.slane %v89_v8, %v2787_v13  ;;  %v2806_v24 = vrot.slane %v89_v8, %v2789_v14 }
  0x50   :  { %822 = vmatprep.subr.bf16.mxu0 %v2382_v25  ;;  %865 = vmatprep.subr.bf16.mxu1 %v2384_v26  ;;  %v2812_v25 = vrot.slane %v89_v8, %v2796_v17  ;;  %v2815_v26 = vrot.slane %v93_v19, %v2787_v13 }
  0x52   :  { %4281 = vst [vmem:[#allocation14_spill] sm:$0xff] %v2815_v26 }
  0x53   :  { %823 = vmatpush1.bf16.msra.mxu0 %v2386_v27  ;;  %866 = vmatpush1.bf16.msra.mxu1 %v2387_v28  ;;  %v2818_v27 = vrot.slane %v93_v19, %v2771_v5  ;;  %v95_v28 = vld [vmem:[#allocation4 + $0x20] ss:$8 sm:$0xf] }
  0x54   :  { %824 = vmatprep.subr.bf16.mxu0 %v2388_v29  ;;  %867 = vmatprep.subr.bf16.mxu1 %v2390_v30 }
  0x55   :  { %4282 = vst [vmem:[#allocation15_spill] sm:$0xff] %v2818_v27 }
  0x57   :  { %825 = vmatpush1.bf16.msra.mxu0 %v2392_v31  ;;  %868 = vmatpush1.bf16.msra.mxu1 %v2393_v32  ;;  %v2828_v31 = vrot.slane %v93_v19, %v2789_v14 }
  0x59   :  { %4283 = vst [vmem:[#allocation16_spill] sm:$0xff] %v2828_v31 }
  0x5a   :  { %843 = vmatmul.mubr.bf16.vlgmr.msra.gmra.mrb[0].mxu0 %v2394_v33  ;;  %886 = vmatmul.mubr.bf16.vlgmr.msra.gmra.mrb[0].mxu1 %v2394_v33 }
  0x5b   :  { %1095 = vmatprep.mubr.bf16.mxu0 %v2505_v0  ;;  %1138 = vmatprep.mubr.bf16.mxu1 %v2505_v0 }
 0x12d   :  { %v844_v34 = vpop.f32.mrb[0].mxu0  ;;  %v887_v35 = vpop.f32.mrb[0].mxu1 }
 0x12e   :  { %v889_v36 = vpop.f32.mrb[1].mxu1  ;;  %904 = vrot.lane.b32.xlu0 %v844_v34, %s2506_s19  ;;  %v846_v37 = vpop.f32.mrb[1].mxu0 }
 0x12f   :  { %v891_v38 = vpop.f32.mrb[2].mxu1  ;;  %908 = vrot.lane.b32.xlu1 %v846_v37, %s2506_s19  ;;  %v848_v39 = vpop.f32.mrb[2].mxu0 }
 0x130   :  { %v898_v40 = vpack.c.bf16 %v891_v38, %v887_v35  ;;  %v896_v41 = vpack.c.bf16 %v848_v39, %v844_v34  ;;  %v850_v42 = vpop.f32.mrb[3].mxu0  ;;  %v893_v43 = vpop.f32.mrb[3].mxu1 }
 0x131   :  { %v899_v44 = vpack.c.bf16 %v893_v43, %v889_v36  ;;  %v897_v45 = vpack.c.bf16 %v850_v42, %v846_v37 }
 0x132   :  { %912 = vrot.lane.b32.xlu0 %v887_v35, %s2506_s19 }
 0x133   :  { %1106 = vmatprep.subr.bf16.mxu1 %v899_v44  ;;  %914 = vrot.lane.b32.xlu1 %v891_v38, %s2506_s19 }
 0x134   :  { %1063 = vmatprep.subr.bf16.mxu0 %v897_v45  ;;  %1107 = vmatpush1.bf16.msra.mxu1 %v898_v40 }
 0x135   :  { %1064 = vmatpush1.bf16.msra.mxu0 %v896_v41  ;;  %v2851_v41 = vrot.slane %v95_v28, %v2771_v5 }
 0x136   :  { %944 = vrot.lane.b32.xlu0 %v844_v34, %s2507_s1 }
 0x137   :  { %946 = vrot.lane.b32.xlu1 %v848_v39, %s2507_s1  ;;  %4286 = vst [vmem:[#allocation19_spill] sm:$0xff] %v2851_v41 }
 0x13a   :  { %952 = vrot.lane.b32.xlu0 %v887_v35, %s2507_s1 }
 0x13b   :  { %954 = vrot.lane.b32.xlu1 %v891_v38, %s2507_s1 }
 0x13e   :  { %984 = vrot.lane.b32.xlu0 %v844_v34, %s2508_s21 }
 0x13f   :  { %986 = vrot.lane.b32.xlu1 %v848_v39, %s2508_s21 }
 0x142   :  { %916 = vrot.lane.b32.xlu0 %v889_v36, %s2506_s19 }
 0x143   :  { %994 = vrot.lane.b32.xlu1 %v891_v38, %s2508_s21 }
 0x146   :  { %948 = vrot.lane.b32.xlu0 %v846_v37, %s2507_s1 }
 0x147   :  { %910 = vrot.lane.b32.xlu1 %v850_v42, %s2506_s19 }
 0x14a   :  { %956 = vrot.lane.b32.xlu0 %v889_v36, %s2507_s1 }
 0x14b   :  { %918 = vrot.lane.b32.xlu1 %v893_v43, %s2506_s19 }
 0x14e   :  { %988 = vrot.lane.b32.xlu0 %v846_v37, %s2508_s21  ;;  %v2842_v37 = vrot.slane %v93_v19, %v2796_v17 }
 0x14f   :  { %950 = vrot.lane.b32.xlu1 %v850_v42, %s2507_s1 }
 0x150   :  { %4284 = vst [vmem:[#allocation17_spill] sm:$0xff] %v2842_v37 }
 0x152   :  { %906 = vrot.lane.b32.xlu0 %v848_v39, %s2506_s19  ;;  %v2845_v39 = vrot.slane %v95_v28, %v2787_v13 }
 0x153   :  { %958 = vrot.lane.b32.xlu1 %v893_v43, %s2507_s1 }
 0x154   :  { %4285 = vst [vmem:[#allocation18_spill] sm:$0xff] %v2845_v39 }
 0x156   :  { %992 = vrot.lane.b32.xlu0 %v887_v35, %s2508_s21 }
 0x157   :  { %990 = vrot.lane.b32.xlu1 %v850_v42, %s2508_s21  ;;  %v2854_v42 = vrot.slane %v95_v28, %v2789_v14 }
 0x159   :  { %4287 = vst [vmem:[#allocation20_spill] sm:$0xff] %v2854_v42 }
 0x15a   :  { %996 = vrot.lane.b32.xlu0 %v889_v36, %s2508_s21 }
 0x15b   :  { %998 = vrot.lane.b32.xlu1 %v893_v43, %s2508_s21 }
 0x15e   :  { %1046 = vperm.xlu0 %2344, %v1042_v46   ;;  %v2862_v46 = vrot.slane %v95_v28, %v2796_v17 }
 0x15f   :  { %1051 = vperm.xlu1 %2345, %v1043_v47  }
 0x160   :  { %4288 = vst [vmem:[#allocation21_spill] sm:$0xff] %v2862_v46 }
 0x162   :  { %106 = vrot.lane.b32.xlu0 %v2657_v48, %s2509_s24 }
 0x163   :  { %104 = vrot.lane.b32.xlu1 %v2659_v49, %s2509_s24 }
 0x166   :  { %110 = vrot.lane.b32.xlu0 %v2665_v50, %s2509_s24 }
 0x167   :  { %108 = vrot.lane.b32.xlu1 %v2667_v51, %s2509_s24 }
 0x16a   :  { %114 = vrot.lane.b32.xlu0 %v2673_v52, %s2509_s24 }
 0x16b   :  { %112 = vrot.lane.b32.xlu1 %v2675_v53, %s2509_s24 }
 0x16e   :  { %118 = vrot.lane.b32.xlu0 %v2681_v54, %s2509_s24 }
 0x16f   :  { %116 = vrot.lane.b32.xlu1 %v2683_v55, %s2509_s24 }
 0x172   :  { %170 = vrot.lane.b32.xlu0 %v2657_v48, %s2504_s20 }
 0x173   :  { %168 = vrot.lane.b32.xlu1 %v2659_v49, %s2504_s20 }
 0x176   :  { %174 = vrot.lane.b32.xlu0 %v2665_v50, %s2504_s20 }
 0x177   :  { %172 = vrot.lane.b32.xlu1 %v2667_v51, %s2504_s20 }
 0x17a   :  { %178 = vrot.lane.b32.xlu0 %v2673_v52, %s2504_s20 }
 0x17b   :  { %176 = vrot.lane.b32.xlu1 %v2675_v53, %s2504_s20 }
 0x17e   :  { %182 = vrot.lane.b32.xlu0 %v2681_v54, %s2504_s20 }
 0x17f   :  { %180 = vrot.lane.b32.xlu1 %v2683_v55, %s2504_s20 }
 0x182   :  { %232 = vrot.lane.b32.xlu0 %v2657_v48, %s2510_s5 }
 0x183   :  { %230 = vrot.lane.b32.xlu1 %v2659_v49, %s2510_s5 }
 0x186   :  { %236 = vrot.lane.b32.xlu0 %v2665_v50, %s2510_s5 }
 0x187   :  { %234 = vrot.lane.b32.xlu1 %v2667_v51, %s2510_s5 }
 0x18a   :  { %240 = vrot.lane.b32.xlu0 %v2673_v52, %s2510_s5 }
 0x18b   :  { %238 = vrot.lane.b32.xlu1 %v2675_v53, %s2510_s5 }
 0x18e   :  { %244 = vrot.lane.b32.xlu0 %v2681_v54, %s2510_s5 }
 0x18f   :  { %242 = vrot.lane.b32.xlu1 %v2683_v55, %s2510_s5 }
 0x192   :  { %294 = vrot.lane.b32.xlu0 %v2657_v48, %s2511_s25 }
 0x193   :  { %292 = vrot.lane.b32.xlu1 %v2659_v49, %s2511_s25 }
 0x196   :  { %298 = vrot.lane.b32.xlu0 %v2665_v50, %s2511_s25 }
 0x197   :  { %296 = vrot.lane.b32.xlu1 %v2667_v51, %s2511_s25 }
 0x19a   :  { %302 = vrot.lane.b32.xlu0 %v2673_v52, %s2511_s25 }
 0x19b   :  { %300 = vrot.lane.b32.xlu1 %v2675_v53, %s2511_s25 }
 0x19e   :  { %306 = vrot.lane.b32.xlu0 %v2681_v54, %s2511_s25 }
 0x19f   :  { %304 = vrot.lane.b32.xlu1 %v2683_v55, %s2511_s25 }
 0x1a0   :  { %v2737_v56 = vpop.permute.xlu0 %904 }
 0x1a1   :  { %v909_v57 = vpop.permute.xlu1 %908 }
 0x1a2   :  { %364 = vrot.lane.b32.xlu0 %v2657_v48, %s2506_s19  ;;  %v924_v29 = vsel %vm378_vm0, %v2737_v56, %v909_v57 }
 0x1a3   :  { %362 = vrot.lane.b32.xlu1 %v2659_v49, %s2506_s19  ;;  %v928_v43 = vmul.f32 %v924_v29, %v2803_v23 }
 0x1a4   :  { %v913_v58 = vpop.permute.xlu0 %912 }
 0x1a5   :  { %v915_v59 = vpop.permute.xlu1 %914  ;;  %v922_v10 = vsel %vm378_vm0, %v909_v57, %v913_v58 }
 0x1a6   :  { %368 = vrot.lane.b32.xlu0 %v2665_v50, %s2506_s19  ;;  %v929_v16 = vmul.f32 %v922_v10, %v2781_v9 }
 0x1a7   :  { %366 = vrot.lane.b32.xlu1 %v2667_v51, %s2506_s19 }
 0x1a8   :  { %v2747_v60 = vpop.permute.xlu0 %944 }
 0x1a9   :  { %v2749_v61 = vpop.permute.xlu1 %946 }
 0x1aa   :  { %372 = vrot.lane.b32.xlu0 %v2673_v52, %s2506_s19 }
 0x1ab   :  { %370 = vrot.lane.b32.xlu1 %v2675_v53, %s2506_s19 }
 0x1ac   :  { %v2755_v62 = vpop.permute.xlu0 %952 }
 0x1ad   :  { %v2757_v0 = vpop.permute.xlu1 %954 }
 0x1ae   :  { %376 = vrot.lane.b32.xlu0 %v2681_v54, %s2506_s19 }
 0x1af   :  { %374 = vrot.lane.b32.xlu1 %v2683_v55, %s2506_s19 }
 0x1b0   :  { %v2763_v1 = vpop.permute.xlu0 %984 }
 0x1b1   :  { %v2765_v3 = vpop.permute.xlu1 %986 }
 0x1b2   :  { %426 = vrot.lane.b32.xlu0 %v2657_v48, %s2512_s26 }
 0x1b3   :  { %424 = vrot.lane.b32.xlu1 %v2659_v49, %s2512_s26 }
 0x1b4   :  { %v917_v6 = vpop.permute.xlu0 %916 }
 0x1b5   :  { %v2775_v7 = vpop.permute.xlu1 %994  ;;  %v920_v30 = vsel %vm378_vm0, %v913_v58, %v917_v6  ;;  %v926_v34 = vsel %vm378_vm0, %v917_v6, %v2737_v56 }
 0x1b6   :  { %430 = vrot.lane.b32.xlu0 %v2665_v50, %s2512_s26  ;;  %v930_v44 = vmul.f32 %v920_v30, %v2806_v24  ;;  %v931_v47 = vmul.f32 %v926_v34, %v2812_v25 }
 0x1b7   :  { %428 = vrot.lane.b32.xlu1 %v2667_v51, %s2512_s26 }
 0x1b8   :  { %v949_v11 = vpop.permute.xlu0 %948 }
 0x1b9   :  { %v911_v12 = vpop.permute.xlu1 %910  ;;  %v962_v35 = vsel %vm502_vm1, %v949_v11, %v2755_v62  ;;  %v964_v36 = vsel %vm502_vm1, %v2747_v60, %v949_v11 }
 0x1ba   :  { %v923_v15 = vsel %vm378_vm0, %v911_v12, %v915_v59  ;;  %434 = vrot.lane.b32.xlu0 %v2673_v52, %s2512_s26  ;;  %v968_v56 = vmul.f32 %v964_v36, %v2815_v26  ;;  %v969_v57 = vmul.f32 %v962_v35, %v2818_v27 }
 0x1bb   :  { %v933_v18 = vmul.f32 %v923_v15, %v2781_v9  ;;  %432 = vrot.lane.b32.xlu1 %v2675_v53, %s2512_s26 }
 0x1bc   :  { %v957_v20 = vpop.permute.xlu0 %956 }
 0x1bd   :  { %v919_v21 = vpop.permute.xlu1 %918  ;;  %v937_v22 = vpack.c.bf16 %v933_v18, %v929_v16  ;;  %v966_v58 = vsel %vm502_vm1, %v957_v20, %v2747_v60 }
 0x1be   :  { %438 = vrot.lane.b32.xlu0 %v2681_v54, %s2512_s26  ;;  %v921_v32 = vsel %vm378_vm0, %v915_v59, %v919_v21  ;;  %v971_v18 = vmul.f32 %v966_v58, %v2842_v37 }
 0x1bf   :  { %1065 = vmatprep.subr.bf16.mxu0 %v937_v22  ;;  %436 = vrot.lane.b32.xlu1 %v2683_v55, %s2512_s26  ;;  %v934_v45 = vmul.f32 %v921_v32, %v2806_v24 }
 0x1c0   :  { %v989_v33 = vpop.permute.xlu0 %988 }
 0x1c1   :  { %v951_v38 = vpop.permute.xlu1 %950  ;;  %v938_v19 = vpack.c.bf16 %v934_v45, %v930_v44 }
 0x1c2   :  { %v963_v40 = vsel %vm502_vm1, %v951_v38, %v2757_v0  ;;  %488 = vrot.lane.b32.xlu0 %v2657_v48, %s2507_s1  ;;  %v965_v63 = vsel %vm502_vm1, %v2749_v61, %v951_v38 }
 0x1c3   :  { %486 = vrot.lane.b32.xlu1 %v2659_v49, %s2507_s1  ;;  %v973_v2 = vmul.f32 %v963_v40, %v2818_v27 }
 0x1c4   :  { %v907_v59 = vpop.permute.xlu0 %906 }
 0x1c5   :  { %v925_v6 = vsel %vm378_vm0, %v907_v59, %v911_v12  ;;  %v927_v8 = vsel %vm378_vm0, %v919_v21, %v907_v59  ;;  %v959_v10 = vpop.permute.xlu1 %958  ;;  %v960_v12 = vsel %vm502_vm1, %v2755_v62, %v957_v20  ;;  %v977_v32 = vpack.c.bf16 %v973_v2, %v969_v57 }
 0x1c6   :  { %v932_v11 = vmul.f32 %v925_v6, %v2803_v23  ;;  %v935_v15 = vmul.f32 %v927_v8, %v2812_v25  ;;  %v961_v60 = vsel %vm502_vm1, %v2757_v0, %v959_v10  ;;  %v967_v16 = vsel %vm502_vm1, %v959_v10, %v2749_v61  ;;  %492 = vrot.lane.b32.xlu0 %v2665_v50, %s2507_s1 }
 0x1c7   :  { %v975_v21 = vmul.f32 %v967_v16, %v2842_v37  ;;  %490 = vrot.lane.b32.xlu1 %v2667_v51, %s2507_s1  ;;  %v1004_v0 = vsel %vm564_vm2, %v2763_v1, %v989_v33  ;;  %v972_v61 = vmul.f32 %v965_v63, %v2815_v26  ;;  %v974_v30 = vmul.f32 %v961_v60, %v2828_v31 }
 0x1c8   :  { %v936_v22 = vpack.c.bf16 %v932_v11, %v928_v43  ;;  %v993_v28 = vpop.permute.xlu0 %992  ;;  %v939_v29 = vpack.c.bf16 %v935_v15, %v931_v47  ;;  %v970_v40 = vmul.f32 %v960_v12, %v2828_v31 }
 0x1c9   :  { %v1002_v62 = vsel %vm564_vm2, %v989_v33, %v993_v28  ;;  %v991_v20 = vpop.permute.xlu1 %990  ;;  %v979_v34 = vpack.c.bf16 %v975_v21, %v971_v18  ;;  %v1008_v33 = vmul.f32 %v1004_v0, %v2845_v39  ;;  %v976_v44 = vpack.c.bf16 %v972_v61, %v968_v56  ;;  %v81_v18 = vld [vmem:[#allocation4] ss:$8 sm:$0xf] }
 0x1ca   :  { %v1009_v35 = vmul.f32 %v1002_v62, %v2851_v41  ;;  %v1003_v36 = vsel %vm564_vm2, %v991_v20, %v2775_v7  ;;  %v1005_v38 = vsel %vm564_vm2, %v2765_v3, %v991_v20  ;;  %1066 = vmatpush1.bf16.msra.mxu0 %v936_v22  ;;  %1108 = vmatprep.subr.bf16.mxu1 %v939_v29 }
 0x1cb   :  { %v1013_v43 = vmul.f32 %v1003_v36, %v2851_v41  ;;  %1067 = vmatprep.subr.bf16.mxu0 %v977_v32  ;;  %1109 = vmatpush1.bf16.msra.mxu1 %v938_v19  ;;  %v1012_v45 = vmul.f32 %v1005_v38, %v2845_v39  ;;  %v978_v57 = vpack.c.bf16 %v974_v30, %v970_v40 }
 0x1cc   :  { %v997_v47 = vpop.permute.xlu0 %996  ;;  %1110 = vmatprep.subr.bf16.mxu1 %v979_v34  ;;  %496 = vrot.lane.b32.xlu0 %v2673_v52, %s2507_s1  ;;  %v2963_v0 = vrot.slane %v81_v18, %v2771_v5 }
 0x1cd   :  { %v1000_v58 = vsel %vm564_vm2, %v993_v28, %v997_v47  ;;  %v1006_v59 = vsel %vm564_vm2, %v997_v47, %v2763_v1  ;;  %v999_v63 = vpop.permute.xlu1 %998  ;;  %v1017_v2 = vpack.c.bf16 %v1013_v43, %v1009_v35  ;;  %494 = vrot.lane.b32.xlu1 %v2675_v53, %s2507_s1  ;;  %v1016_v15 = vpack.c.bf16 %v1012_v45, %v1008_v33 }
 0x1ce   :  { %v1010_v56 = vmul.f32 %v1000_v58, %v2854_v42  ;;  %v1011_v6 = vmul.f32 %v1006_v59, %v2862_v46  ;;  %v1001_v8 = vsel %vm564_vm2, %v2775_v7, %v999_v63  ;;  %v1007_v10 = vsel %vm564_vm2, %v999_v63, %v2765_v3  ;;  %1068 = vmatpush1.bf16.msra.mxu0 %v976_v44  ;;  %v2395_v7 = vld [vmem:[%s4210_s4] sm:$0xff]  }
 0x1cf   :  { %v1014_v1 = vmul.f32 %v1001_v8, %v2854_v42  ;;  %v1015_v11 = vmul.f32 %v1007_v10, %v2862_v46  ;;  %1069 = vmatprep.subr.bf16.mxu0 %v1017_v2  ;;  %1111 = vmatpush1.bf16.msra.mxu1 %v978_v57  ;;  %4289 = vst [vmem:[#allocation22_spill] sm:$0xff] %v2963_v0 }
 0x1d0   :  { %500 = vrot.lane.b32.xlu0 %v2681_v54, %s2507_s1  ;;  %v2972_v35 = vrot.slane %v81_v18, %v2787_v13  ;;  %v2981_v47 = vrot.slane %v81_v18, %v2789_v14  ;;  %v2988_v59 = vrot.slane %v81_v18, %v2796_v17  ;;  %v83_v18 = vld [vmem:[#allocation4 + $0x1] ss:$8 sm:$0xf] }
 0x1d1   :  { %v1018_v60 = vpack.c.bf16 %v1014_v1, %v1010_v56  ;;  %v1019_v16 = vpack.c.bf16 %v1015_v11, %v1011_v6  ;;  %498 = vrot.lane.b32.xlu1 %v2683_v55, %s2507_s1 }
 0x1d2   :  { %1070 = vmatpush1.bf16.msra.mxu0 %v1016_v15 }
 0x1d3   :  { %1112 = vmatprep.subr.bf16.mxu1 %v1019_v16 }
 0x1d4   :  { %1113 = vmatpush1.bf16.msra.mxu1 %v1018_v60  ;;  %550 = vrot.lane.b32.xlu0 %v2657_v48, %s2508_s21 }
 0x1d5   :  { %2306 = vmatmul.mubr.msk.bf16.vlgmr.msra.gmra.mrb[4].mxu0 %vm1059_vm3, %v2395_v7  ;;  %548 = vrot.lane.b32.xlu1 %v2659_v49, %s2508_s21 }
 0x1d7   :  { %2307 = vmatmul.mubr.msk.bf16.vlgmr.msra.gmra.mrb[4].mxu1 %vm1059_vm3, %v2395_v7 }
 0x1d8   :  { %554 = vrot.lane.b32.xlu0 %v2665_v50, %s2508_s21 }
 0x1d9   :  { %552 = vrot.lane.b32.xlu1 %v2667_v51, %s2508_s21 }
 0x1dc   :  { %558 = vrot.lane.b32.xlu0 %v2673_v52, %s2508_s21 }
 0x1dd   :  { %v2951_v3 = vpop.permute.xlu0 %1046  ;;  %556 = vrot.lane.b32.xlu1 %v2675_v53, %s2508_s21 }
 0x1de   :  { %v2955_v12 = vpop.permute.xlu1 %1051 }
 0x1e0   :  { %562 = vrot.lane.b32.xlu0 %v2681_v54, %s2508_s21 }
 0x1e1   :  { %v107_v19 = vpop.permute.xlu0 %106  ;;  %560 = vrot.lane.b32.xlu1 %v2683_v55, %s2508_s21 }
 0x1e2   :  { %v105_v21 = vpop.permute.xlu1 %104 }
 0x1e5   :  { %v111_v61 = vpop.permute.xlu0 %110 }
 0x1e6   :  { %v128_v22 = vsel %vm122_vm4, %v107_v19, %v111_v61  ;;  %v109_v28 = vpop.permute.xlu1 %108 }
 0x1e7   :  { %v157_v29 = vmul.f32 %v2963_v0, %v128_v22  ;;  %v127_v30 = vsel %vm122_vm4, %v105_v21, %v109_v28 }
 0x1e8   :  { %v153_v62 = vmul.f32 %v2963_v0, %v127_v30  ;;  %v3008_v30 = vrot.slane %v83_v18, %v2789_v14 }
 0x1e9   :  { %v115_v20 = vpop.permute.xlu0 %114 }
 0x1ea   :  { %v113_v32 = vpop.permute.xlu1 %112  ;;  %v161_v34 = vpack.c.bf16 %v157_v29, %v153_v62  ;;  %v126_v57 = vsel %vm122_vm4, %v111_v61, %v115_v20  ;;  %v3011_v62 = vrot.slane %v83_v18, %v2787_v13 }
 0x1eb   :  { %v125_v58 = vsel %vm122_vm4, %v109_v28, %v113_v32  ;;  %v158_v56 = vmul.f32 %v2981_v47, %v126_v57 }
 0x1ec   :  { %1574 = vmatprep.subr.bf16.mxu0 %v161_v34  ;;  %v154_v6 = vmul.f32 %v2981_v47, %v125_v58 }
 0x1ed   :  { %v119_v36 = vpop.permute.xlu0 %118 }
 0x1ee   :  { %v130_v38 = vsel %vm122_vm4, %v119_v36, %v107_v19  ;;  %v117_v40 = vpop.permute.xlu1 %116  ;;  %v124_v63 = vsel %vm122_vm4, %v115_v20, %v119_v36  ;;  %v162_v15 = vpack.c.bf16 %v158_v56, %v154_v6  ;;  %v3000_v19 = vrot.slane %v83_v18, %v2771_v5 }
 0x1ef   :  { %v156_v43 = vmul.f32 %v2972_v35, %v130_v38  ;;  %v129_v33 = vsel %vm122_vm4, %v117_v40, %v105_v21  ;;  %v123_v2 = vsel %vm122_vm4, %v113_v32, %v117_v40  ;;  %v159_v1 = vmul.f32 %v2988_v59, %v124_v63 }
 0x1f0   :  { %v152_v44 = vmul.f32 %v2972_v35, %v129_v33  ;;  %v155_v11 = vmul.f32 %v2988_v59, %v123_v2  ;;  %v3019_v36 = vrot.slane %v83_v18, %v2796_v17 }
 0x1f1   :  { %v171_v8 = vpop.permute.xlu0 %170 }
 0x1f2   :  { %v160_v45 = vpack.c.bf16 %v156_v43, %v152_v44  ;;  %v169_v10 = vpop.permute.xlu1 %168  ;;  %v163_v60 = vpack.c.bf16 %v159_v1, %v155_v11 }
 0x1f4   :  { %1575 = vmatpush1.bf16.msra.mxu0 %v160_v45  ;;  %1617 = vmatprep.subr.bf16.mxu1 %v163_v60 }
 0x1f5   :  { %v175_v16 = vpop.permute.xlu0 %174  ;;  %1618 = vmatpush1.bf16.msra.mxu1 %v162_v15 }
 0x1f6   :  { %v173_v7 = vpop.permute.xlu1 %172  ;;  %v190_v21 = vsel %vm184_vm5, %v171_v8, %v175_v16 }
 0x1f7   :  { %v189_v61 = vsel %vm184_vm5, %v169_v10, %v173_v7  ;;  %v219_v29 = vmul.f32 %v3000_v19, %v190_v21 }
 0x1f8   :  { %v215_v20 = vmul.f32 %v3000_v19, %v189_v61 }
 0x1f9   :  { %v179_v22 = vpop.permute.xlu0 %178 }
 0x1fa   :  { %v177_v28 = vpop.permute.xlu1 %176  ;;  %v188_v32 = vsel %vm184_vm5, %v175_v16, %v179_v22  ;;  %v223_v1 = vpack.c.bf16 %v219_v29, %v215_v20  ;;  %v85_v16 = vld [vmem:[#allocation4 + $0x2] ss:$8 sm:$0xf] }
 0x1fb   :  { %v187_v34 = vsel %vm184_vm5, %v173_v7, %v177_v28  ;;  %v220_v45 = vmul.f32 %v3008_v30, %v188_v32  ;;  %v3045_v32 = vrot.slane %v85_v16, %v2789_v14 }
 0x1fc   :  { %v216_v57 = vmul.f32 %v3008_v30, %v187_v34  ;;  %1576 = vmatprep.subr.bf16.mxu0 %v223_v1  ;;  %v3048_v34 = vrot.slane %v85_v16, %v2787_v13 }
 0x1fd   :  { %v183_v38 = vpop.permute.xlu0 %182 }
 0x1fe   :  { %v181_v40 = vpop.permute.xlu1 %180  ;;  %v186_v43 = vsel %vm184_vm5, %v179_v22, %v183_v38  ;;  %v192_v33 = vsel %vm184_vm5, %v183_v38, %v171_v8  ;;  %v224_v60 = vpack.c.bf16 %v220_v45, %v216_v57 }
 0x1ff   :  { %v185_v44 = vsel %vm184_vm5, %v177_v28, %v181_v40  ;;  %v218_v58 = vmul.f32 %v3011_v62, %v192_v33  ;;  %v191_v63 = vsel %vm184_vm5, %v181_v40, %v169_v10  ;;  %v221_v2 = vmul.f32 %v3019_v36, %v186_v43 }
 0x200   :  { %v214_v56 = vmul.f32 %v3011_v62, %v191_v63  ;;  %v217_v6 = vmul.f32 %v3019_v36, %v185_v44  ;;  %v3037_v10 = vrot.slane %v85_v16, %v2771_v5  ;;  %v3056_v33 = vrot.slane %v85_v16, %v2796_v17 }
 0x201   :  { %v233_v8 = vpop.permute.xlu0 %232 }
 0x202   :  { %v231_v11 = vpop.permute.xlu1 %230  ;;  %v222_v15 = vpack.c.bf16 %v218_v58, %v214_v56  ;;  %v225_v7 = vpack.c.bf16 %v221_v2, %v217_v6 }
 0x204   :  { %1577 = vmatpush1.bf16.msra.mxu0 %v222_v15  ;;  %1619 = vmatprep.subr.bf16.mxu1 %v225_v7 }
 0x205   :  { %v237_v18 = vpop.permute.xlu0 %236  ;;  %1620 = vmatpush1.bf16.msra.mxu1 %v224_v60 }
 0x206   :  { %v235_v21 = vpop.permute.xlu1 %234  ;;  %v252_v61 = vsel %vm246_vm6, %v233_v8, %v237_v18 }
 0x207   :  { %v251_v22 = vsel %vm246_vm6, %v231_v11, %v235_v21  ;;  %v281_v20 = vmul.f32 %v3037_v10, %v252_v61 }
 0x208   :  { %v277_v38 = vmul.f32 %v3037_v10, %v251_v22 }
 0x209   :  { %v241_v28 = vpop.permute.xlu0 %240 }
 0x20a   :  { %v239_v29 = vpop.permute.xlu1 %238  ;;  %v250_v40 = vsel %vm246_vm6, %v237_v18, %v241_v28  ;;  %v285_v7 = vpack.c.bf16 %v281_v20, %v277_v38 }
 0x20b   :  { %v249_v43 = vsel %vm246_vm6, %v235_v21, %v239_v29  ;;  %v282_v56 = vmul.f32 %v3045_v32, %v250_v40 }
 0x20c   :  { %v278_v6 = vmul.f32 %v3045_v32, %v249_v43  ;;  %1578 = vmatprep.subr.bf16.mxu0 %v285_v7 }
 0x20d   :  { %v245_v44 = vpop.permute.xlu0 %244 }
 0x20e   :  { %v243_v45 = vpop.permute.xlu1 %242  ;;  %v248_v57 = vsel %vm246_vm6, %v241_v28, %v245_v44  ;;  %v254_v58 = vsel %vm246_vm6, %v245_v44, %v233_v8  ;;  %v286_v61 = vpack.c.bf16 %v282_v56, %v278_v6 }
 0x20f   :  { %v247_v63 = vsel %vm246_vm6, %v239_v29, %v243_v45  ;;  %v253_v2 = vsel %vm246_vm6, %v243_v45, %v231_v11  ;;  %v280_v1 = vmul.f32 %v3048_v34, %v254_v58  ;;  %v283_v60 = vmul.f32 %v3056_v33, %v248_v57  ;;  %v87_v11 = vld [vmem:[#allocation4 + $0x3] ss:$8 sm:$0xf] }
 0x210   :  { %v276_v15 = vmul.f32 %v3048_v34, %v253_v2  ;;  %v279_v16 = vmul.f32 %v3056_v33, %v247_v63  ;;  %v3074_v40 = vrot.slane %v87_v11, %v2771_v5  ;;  %v3082_v57 = vrot.slane %v87_v11, %v2789_v14 }
 0x211   :  { %v295_v18 = vpop.permute.xlu0 %294  ;;  %v3085_v58 = vrot.slane %v87_v11, %v2787_v13  ;;  %v3093_v6 = vrot.slane %v87_v11, %v2796_v17 }
 0x212   :  { %v284_v8 = vpack.c.bf16 %v280_v1, %v276_v15  ;;  %v293_v21 = vpop.permute.xlu1 %292  ;;  %v287_v22 = vpack.c.bf16 %v283_v60, %v279_v16 }
 0x214   :  { %1579 = vmatpush1.bf16.msra.mxu0 %v284_v8  ;;  %1621 = vmatprep.subr.bf16.mxu1 %v287_v22 }
 0x215   :  { %v299_v28 = vpop.permute.xlu0 %298  ;;  %1622 = vmatpush1.bf16.msra.mxu1 %v286_v61 }
 0x216   :  { %v297_v29 = vpop.permute.xlu1 %296  ;;  %v314_v20 = vsel %vm308_vm7, %v295_v18, %v299_v28 }
 0x217   :  { %v313_v38 = vsel %vm308_vm7, %v293_v21, %v297_v29  ;;  %v343_v45 = vmul.f32 %v3074_v40, %v314_v20 }
 0x218   :  { %v339_v63 = vmul.f32 %v3074_v40, %v313_v38 }
 0x219   :  { %v303_v43 = vpop.permute.xlu0 %302 }
 0x21a   :  { %v301_v44 = vpop.permute.xlu1 %300  ;;  %v312_v2 = vsel %vm308_vm7, %v299_v28, %v303_v43  ;;  %v347_v38 = vpack.c.bf16 %v343_v45, %v339_v63 }
 0x21b   :  { %v311_v56 = vsel %vm308_vm7, %v297_v29, %v301_v44  ;;  %v344_v61 = vmul.f32 %v3082_v57, %v312_v2 }
 0x21c   :  { %v340_v22 = vmul.f32 %v3082_v57, %v311_v56  ;;  %1580 = vmatprep.subr.bf16.mxu0 %v347_v38 }
 0x21d   :  { %v307_v1 = vpop.permute.xlu0 %306 }
 0x21e   :  { %v305_v15 = vpop.permute.xlu1 %304  ;;  %v310_v60 = vsel %vm308_vm7, %v303_v43, %v307_v1  ;;  %v316_v16 = vsel %vm308_vm7, %v307_v1, %v295_v18 }
 0x21f   :  { %v309_v7 = vsel %vm308_vm7, %v301_v44, %v305_v15  ;;  %v315_v8 = vsel %vm308_vm7, %v305_v15, %v293_v21  ;;  %v342_v11 = vmul.f32 %v3085_v58, %v316_v16  ;;  %v345_v29 = vmul.f32 %v3093_v6, %v310_v60 }
 0x220   :  { %v338_v28 = vmul.f32 %v3085_v58, %v315_v8  ;;  %v341_v20 = vmul.f32 %v3093_v6, %v309_v7  ;;  %v348_v44 = vpack.c.bf16 %v344_v61, %v340_v22 }
 0x221   :  { %v365_v43 = vpop.permute.xlu0 %364 }
 0x222   :  { %v346_v18 = vpack.c.bf16 %v342_v11, %v338_v28  ;;  %v363_v1 = vpop.permute.xlu1 %362  ;;  %v349_v21 = vpack.c.bf16 %v345_v29, %v341_v20  ;;  %v355_v28 = vpack.c.bf16 %v2665_v50, %v2667_v51 }
 0x224   :  { %1581 = vmatpush1.bf16.msra.mxu0 %v346_v18  ;;  %1623 = vmatprep.subr.bf16.mxu1 %v349_v21  ;;  %v354_v18 = vpack.c.bf16 %v2657_v48, %v2659_v49  ;;  %v357_v49 = vpack.c.bf16 %v2681_v54, %v2683_v55 }
 0x225   :  { %v369_v15 = vpop.permute.xlu0 %368  ;;  %1624 = vmatpush1.bf16.msra.mxu1 %v348_v44  ;;  %1582 = vmatprep.subr.bf16.mxu0 %v355_v28 }
 0x226   :  { %v367_v2 = vpop.permute.xlu1 %366  ;;  %v384_v56 = vsel %vm378_vm0, %v365_v43, %v369_v15  ;;  %1625 = vmatprep.subr.bf16.mxu1 %v357_v49 }
 0x227   :  { %v383_v16 = vsel %vm378_vm0, %v363_v1, %v367_v2  ;;  %v412_v60 = vmul.f32 %v2803_v23, %v384_v56 }
 0x228   :  { %v408_v45 = vmul.f32 %v2803_v23, %v383_v16  ;;  %1583 = vmatpush1.bf16.msra.mxu0 %v354_v18  ;;  %v356_v16 = vpack.c.bf16 %v2673_v52, %v2675_v53 }
 0x229   :  { %v373_v63 = vpop.permute.xlu0 %372 }
 0x22a   :  { %v371_v7 = vpop.permute.xlu1 %370  ;;  %v382_v8 = vsel %vm378_vm0, %v369_v15, %v373_v63  ;;  %v416_v29 = vpack.c.bf16 %v412_v60, %v408_v45  ;;  %1626 = vmatpush1.bf16.msra.mxu1 %v356_v16 }
 0x22b   :  { %v381_v61 = vsel %vm378_vm0, %v367_v2, %v371_v7  ;;  %v413_v22 = vmul.f32 %v2781_v9, %v382_v8 }
 0x22c   :  { %v409_v11 = vmul.f32 %v2781_v9, %v381_v61 }
 0x22d   :  { %v377_v20 = vpop.permute.xlu0 %376 }
 0x22e   :  { %v375_v38 = vpop.permute.xlu1 %374  ;;  %v380_v44 = vsel %vm378_vm0, %v373_v63, %v377_v20  ;;  %v386_v21 = vsel %vm378_vm0, %v377_v20, %v365_v43  ;;  %v417_v43 = vpack.c.bf16 %v413_v22, %v409_v11  ;;  %v91_v63 = vld [vmem:[#allocation4 + $0x6] ss:$8 sm:$0xf] }
 0x22f   :  { %v379_v15 = vsel %vm378_vm0, %v371_v7, %v375_v38  ;;  %v385_v2 = vsel %vm378_vm0, %v375_v38, %v363_v1  ;;  %v414_v50 = vmul.f32 %v2806_v24, %v380_v44  ;;  %v415_v51 = vmul.f32 %v2812_v25, %v386_v21 }
 0x230   :  { %v410_v56 = vmul.f32 %v2806_v24, %v379_v15  ;;  %v411_v48 = vmul.f32 %v2812_v25, %v385_v2  ;;  %1584 = vmatprep.subr.bf16.mxu0 %v417_v43  ;;  %v3143_v61 = vrot.slane %v91_v63, %v2787_v13  ;;  %v3150_v55 = vrot.slane %v91_v63, %v2771_v5 }
 0x231   :  { %v427_v60 = vpop.permute.xlu0 %426  ;;  %1585 = vmatpush1.bf16.msra.mxu0 %v416_v29  ;;  %v3159_v38 = vrot.slane %v91_v63, %v2789_v14  ;;  %v3162_v18 = vrot.slane %v91_v63, %v2796_v17 }
 0x232   :  { %v425_v45 = vpop.permute.xlu1 %424  ;;  %v419_v1 = vpack.c.bf16 %v415_v51, %v411_v48  ;;  %v418_v7 = vpack.c.bf16 %v414_v50, %v410_v56  ;;  %4290 = vst [vmem:[#allocation23_spill] sm:$0xff] %v3143_v61  ;;  %4291 = vst [vmem:[#allocation24_spill] sm:$0xff] %v3150_v55 }
 0x233   :  { %4292 = vst [vmem:[#allocation25_spill] sm:$0xff] %v3159_v38  ;;  %4293 = vst [vmem:[#allocation26_spill] sm:$0xff] %v3162_v18 }
 0x234   :  { %1627 = vmatprep.subr.bf16.mxu1 %v419_v1 }
 0x235   :  { %v431_v8 = vpop.permute.xlu0 %430  ;;  %1628 = vmatpush1.bf16.msra.mxu1 %v418_v7 }
 0x236   :  { %v429_v54 = vpop.permute.xlu1 %428  ;;  %v446_v52 = vsel %vm440_vm8, %v427_v60, %v431_v8 }
 0x237   :  { %v445_v53 = vsel %vm440_vm8, %v425_v45, %v429_v54  ;;  %v474_v22 = vmul.f32 %v3143_v61, %v446_v52 }
 0x238   :  { %v470_v11 = vmul.f32 %v3143_v61, %v445_v53 }
 0x239   :  { %v435_v28 = vpop.permute.xlu0 %434 }
 0x23a   :  { %v433_v29 = vpop.permute.xlu1 %432  ;;  %v444_v13 = vsel %vm440_vm8, %v431_v8, %v435_v28  ;;  %v478_v21 = vpack.c.bf16 %v474_v22, %v470_v11 }
 0x23b   :  { %v443_v20 = vsel %vm440_vm8, %v429_v54, %v433_v29  ;;  %v475_v5 = vmul.f32 %v3150_v55, %v444_v13 }
 0x23c   :  { %v471_v44 = vmul.f32 %v3150_v55, %v443_v20 }
 0x23d   :  { %v439_v15 = vpop.permute.xlu0 %438 }
 0x23e   :  { %v437_v2 = vpop.permute.xlu1 %436  ;;  %v442_v50 = vsel %vm440_vm8, %v435_v28, %v439_v15  ;;  %v448_v51 = vsel %vm440_vm8, %v439_v15, %v427_v60  ;;  %v479_v16 = vpack.c.bf16 %v475_v5, %v471_v44 }
 0x23f   :  { %v441_v14 = vsel %vm440_vm8, %v433_v29, %v437_v2  ;;  %v447_v17 = vsel %vm440_vm8, %v437_v2, %v425_v45  ;;  %v476_v56 = vmul.f32 %v3159_v38, %v442_v50  ;;  %v477_v48 = vmul.f32 %v3162_v18, %v448_v51 }
 0x240   :  { %v472_v49 = vmul.f32 %v3159_v38, %v441_v14  ;;  %v473_v43 = vmul.f32 %v3162_v18, %v447_v17  ;;  %1586 = vmatprep.subr.bf16.mxu0 %v479_v16 }
 0x241   :  { %v489_v63 = vpop.permute.xlu0 %488  ;;  %1587 = vmatpush1.bf16.msra.mxu0 %v478_v21 }
 0x242   :  { %v480_v1 = vpack.c.bf16 %v476_v56, %v472_v49  ;;  %v487_v7 = vpop.permute.xlu1 %486  ;;  %v481_v8 = vpack.c.bf16 %v477_v48, %v473_v43 }
 0x244   :  { %1629 = vmatprep.subr.bf16.mxu1 %v481_v8 }
 0x245   :  { %1630 = vmatpush1.bf16.msra.mxu1 %v480_v1  ;;  %v493_v60 = vpop.permute.xlu0 %492 }
 0x246   :  { %v491_v54 = vpop.permute.xlu1 %490  ;;  %v508_v45 = vsel %vm502_vm1, %v489_v63, %v493_v60 }
 0x247   :  { %v507_v52 = vsel %vm502_vm1, %v487_v7, %v491_v54  ;;  %v536_v53 = vmul.f32 %v2815_v26, %v508_v45 }
 0x248   :  { %v532_v22 = vmul.f32 %v2815_v26, %v507_v52 }
 0x249   :  { %v497_v11 = vpop.permute.xlu0 %496 }
 0x24a   :  { %v495_v28 = vpop.permute.xlu1 %494  ;;  %v506_v29 = vsel %vm502_vm1, %v493_v60, %v497_v11  ;;  %v540_v44 = vpack.c.bf16 %v536_v53, %v532_v22 }
 0x24b   :  { %v505_v13 = vsel %vm502_vm1, %v491_v54, %v495_v28  ;;  %v537_v20 = vmul.f32 %v2818_v27, %v506_v29 }
 0x24c   :  { %v533_v5 = vmul.f32 %v2818_v27, %v505_v13 }
 0x24d   :  { %v501_v21 = vpop.permute.xlu0 %500 }
 0x24e   :  { %v499_v15 = vpop.permute.xlu1 %498  ;;  %v504_v2 = vsel %vm502_vm1, %v497_v11, %v501_v21  ;;  %v510_v50 = vsel %vm502_vm1, %v501_v21, %v489_v63  ;;  %v541_v43 = vpack.c.bf16 %v537_v20, %v533_v5 }
 0x24f   :  { %v503_v51 = vsel %vm502_vm1, %v495_v28, %v499_v15  ;;  %v509_v14 = vsel %vm502_vm1, %v499_v15, %v487_v7  ;;  %v538_v17 = vmul.f32 %v2828_v31, %v504_v2  ;;  %v539_v56 = vmul.f32 %v2842_v37, %v510_v50 }
 0x250   :  { %v534_v48 = vmul.f32 %v2828_v31, %v503_v51  ;;  %v535_v49 = vmul.f32 %v2842_v37, %v509_v14  ;;  %1588 = vmatprep.subr.bf16.mxu0 %v541_v43 }
 0x251   :  { %v551_v1 = vpop.permute.xlu0 %550  ;;  %1589 = vmatpush1.bf16.msra.mxu0 %v540_v44 }
 0x252   :  { %v542_v16 = vpack.c.bf16 %v538_v17, %v534_v48  ;;  %v549_v8 = vpop.permute.xlu1 %548  ;;  %v543_v60 = vpack.c.bf16 %v539_v56, %v535_v49 }
 0x254   :  { %1631 = vmatprep.subr.bf16.mxu1 %v543_v60 }
 0x255   :  { %1632 = vmatpush1.bf16.msra.mxu1 %v542_v16  ;;  %v555_v63 = vpop.permute.xlu0 %554 }
 0x256   :  { %v553_v54 = vpop.permute.xlu1 %552  ;;  %v570_v7 = vsel %vm564_vm2, %v551_v1, %v555_v63 }
 0x257   :  { %v569_v45 = vsel %vm564_vm2, %v549_v8, %v553_v54  ;;  %v598_v52 = vmul.f32 %v2845_v39, %v570_v7 }
 0x258   :  { %v594_v53 = vmul.f32 %v2845_v39, %v569_v45 }
 0x259   :  { %v559_v22 = vpop.permute.xlu0 %558 }
 0x25a   :  { %v557_v11 = vpop.permute.xlu1 %556  ;;  %v568_v28 = vsel %vm564_vm2, %v555_v63, %v559_v22  ;;  %v602_v5 = vpack.c.bf16 %v598_v52, %v594_v53 }
 0x25b   :  { %v567_v29 = vsel %vm564_vm2, %v553_v54, %v557_v11  ;;  %v599_v13 = vmul.f32 %v2851_v41, %v568_v28 }
 0x25c   :  { %v595_v20 = vmul.f32 %v2851_v41, %v567_v29 }
 0x25d   :  { %v563_v44 = vpop.permute.xlu0 %562 }
 0x25e   :  { %v561_v21 = vpop.permute.xlu1 %560  ;;  %v566_v15 = vsel %vm564_vm2, %v559_v22, %v563_v44  ;;  %v572_v2 = vsel %vm564_vm2, %v563_v44, %v551_v1  ;;  %v603_v49 = vpack.c.bf16 %v599_v13, %v595_v20 }
 0x25f   :  { %v565_v50 = vsel %vm564_vm2, %v557_v11, %v561_v21  ;;  %v571_v51 = vsel %vm564_vm2, %v561_v21, %v549_v8  ;;  %v600_v14 = vmul.f32 %v2854_v42, %v566_v15  ;;  %v601_v17 = vmul.f32 %v2862_v46, %v572_v2 }
 0x260   :  { %v596_v56 = vmul.f32 %v2854_v42, %v565_v50  ;;  %v597_v48 = vmul.f32 %v2862_v46, %v571_v51  ;;  %1590 = vmatprep.subr.bf16.mxu0 %v603_v49  ;;  %v2396_v50 = vld [vmem:[%s4213_s7 + $0x4] ss:$8 sps:$4 sm:$0xff]   ;;  %v2398_v51 = vld [vmem:[%s4213_s7] ss:$8 sps:$4 sm:$0xff]  }
 0x261   :  { %1591 = vmatpush1.bf16.msra.mxu0 %v602_v5  ;;  %2310 = vmatprep.mubr.msk.bf16.mxu0 %vm1570_vm9, %v2396_v50 }
 0x262   :  { %v604_v43 = vpack.c.bf16 %v600_v14, %v596_v56  ;;  %v605_v16 = vpack.c.bf16 %v601_v17, %v597_v48  ;;  %2311 = vmatprep.mubr.msk.bf16.mxu1 %vm1570_vm9, %v2396_v50 }
 0x264   :  { %1633 = vmatprep.subr.bf16.mxu1 %v605_v16  ;;  %1607 = vmatmul.mubr.bf16.vlgmr.msra.gmra.mrb[8].mxu0 %v2398_v51  ;;  %v2399_v16 = vld [vmem:[%s4212_s6 + $0x4] ss:$8 sps:$4 sm:$0xff]  }
 0x265   :  { %1634 = vmatpush1.bf16.msra.mxu1 %v604_v43  ;;  %2314 = vmatprep.mubr.msk.bf16.mxu0 %vm1570_vm9, %v2399_v16 }
 0x268   :  { %1650 = vmatmul.mubr.bf16.vlgmr.msra.gmra.mrb[8].mxu1 %v2398_v51 }
 0x269   :  { %2315 = vmatprep.mubr.msk.bf16.mxu1 %vm1570_vm9, %v2399_v16 }
 0x2a8   :  { %v1097_v1 = vpop.f32.mrb[4].mxu0 }
 0x2a9   :  { %v1098_v60 = vadd.f32 %v1097_v1, %v2951_v3  ;;  %v1099_v63 = vpop.f32.mrb[5].mxu0 }
 0x2aa   :  { %v1101_v8 = vpop.f32.mrb[6].mxu0  ;;  %v1140_v54 = vpop.f32.mrb[4].mxu1  ;;  %v1100_v15 = vadd.f32 %v1099_v63, %v2951_v3 }
 0x2ab   :  { %v3227_v7 = vmax.f32 %v1098_v60, 0.0  ;;  %v1102_v45 = vadd.f32 %v1101_v8, %v2955_v12  ;;  %v1141_v52 = vadd.f32 %v1140_v54, %v2951_v3  ;;  %v1103_v53 = vpop.f32.mrb[7].mxu0  ;;  %v1142_v22 = vpop.f32.mrb[5].mxu1  ;;  %v1758_v54 = vld [vmem:[%s4214_s8] sm:$0xff] }
 0x2ac   :  { %v1144_v11 = vpop.f32.mrb[6].mxu1  ;;  %v1104_v2 = vadd.f32 %v1103_v53, %v2955_v12  ;;  %v3312_v14 = vmax.f32 %v1100_v15, 0.0  ;;  %v1143_v17 = vadd.f32 %v1142_v22, %v2951_v3 }
 0x2ad   :  { %v3231_v28 = vmax.f32 %v1102_v45, 0.0  ;;  %v1145_v29 = vadd.f32 %v1144_v11, %v2955_v12  ;;  %v1146_v13 = vpop.f32.mrb[7].mxu1  ;;  %1157 = vrot.lane.b32.xlu1 %v3227_v7, %s2509_s24  ;;  %v3236_v20 = vmax.f32 %v1141_v52, 0.0  ;;  %v1759_v52 = vld [vmem:[%s4214_s8 + $0x8] sm:$0xff] }
 0x2ae   :  { %v3319_v56 = vmax.f32 %v1104_v2, 0.0  ;;  %v1147_v48 = vadd.f32 %v1146_v13, %v2955_v12  ;;  %v3324_v49 = vmax.f32 %v1143_v17, 0.0 }
 0x2af   :  { %4294 = vst [vmem:[#allocation27_spill] sm:$0xff] %v3236_v20  ;;  %v3238_v5 = vmax.f32 %v1145_v29, 0.0  ;;  %1159 = vrot.lane.b32.xlu0 %v3231_v28, %s2509_s24 }
 0x2b0   :  { %v3328_v3 = vmax.f32 %v1147_v48, 0.0 }
 0x2b1   :  { %4295 = vst [vmem:[#allocation28_spill] sm:$0xff] %v3238_v5  ;;  %1165 = vrot.lane.b32.xlu1 %v3236_v20, %s2509_s24 }
 0x2b3   :  { %1167 = vrot.lane.b32.xlu0 %v3238_v5, %s2509_s24 }
 0x2b5   :  { %1197 = vrot.lane.b32.xlu1 %v3227_v7, %s2504_s20 }
 0x2b7   :  { %1199 = vrot.lane.b32.xlu0 %v3231_v28, %s2504_s20 }
 0x2b9   :  { %1205 = vrot.lane.b32.xlu1 %v3236_v20, %s2504_s20 }
 0x2bb   :  { %1207 = vrot.lane.b32.xlu0 %v3238_v5, %s2504_s20 }
 0x2bd   :  { %1237 = vrot.lane.b32.xlu1 %v3227_v7, %s2510_s5 }
 0x2bf   :  { %1239 = vrot.lane.b32.xlu0 %v3231_v28, %s2510_s5 }
 0x2c1   :  { %1245 = vrot.lane.b32.xlu1 %v3236_v20, %s2510_s5 }
 0x2c3   :  { %1247 = vrot.lane.b32.xlu0 %v3238_v5, %s2510_s5 }
 0x2c5   :  { %1277 = vrot.lane.b32.xlu1 %v3227_v7, %s2511_s25 }
 0x2c7   :  { %1279 = vrot.lane.b32.xlu0 %v3231_v28, %s2511_s25 }
 0x2c9   :  { %1285 = vrot.lane.b32.xlu1 %v3236_v20, %s2511_s25 }
 0x2cb   :  { %1287 = vrot.lane.b32.xlu0 %v3238_v5, %s2511_s25 }
 0x2cd   :  { %1325 = vrot.lane.b32.xlu1 %v3227_v7, %s2506_s19 }
 0x2cf   :  { %1327 = vrot.lane.b32.xlu0 %v3231_v28, %s2506_s19 }
 0x2d1   :  { %1333 = vrot.lane.b32.xlu1 %v3236_v20, %s2506_s19 }
 0x2d3   :  { %1335 = vrot.lane.b32.xlu0 %v3238_v5, %s2506_s19 }
 0x2d5   :  { %1365 = vrot.lane.b32.xlu1 %v3227_v7, %s2512_s26 }
 0x2d7   :  { %1367 = vrot.lane.b32.xlu0 %v3231_v28, %s2512_s26 }
 0x2d9   :  { %1373 = vrot.lane.b32.xlu1 %v3236_v20, %s2512_s26 }
 0x2db   :  { %1375 = vrot.lane.b32.xlu0 %v3238_v5, %s2512_s26 }
 0x2dd   :  { %1405 = vrot.lane.b32.xlu1 %v3227_v7, %s2507_s1 }
 0x2df   :  { %1407 = vrot.lane.b32.xlu0 %v3231_v28, %s2507_s1 }
 0x2e1   :  { %1413 = vrot.lane.b32.xlu1 %v3236_v20, %s2507_s1 }
 0x2e3   :  { %1415 = vrot.lane.b32.xlu0 %v3238_v5, %s2507_s1 }
 0x2e5   :  { %1445 = vrot.lane.b32.xlu1 %v3227_v7, %s2508_s21 }
 0x2e7   :  { %1447 = vrot.lane.b32.xlu0 %v3231_v28, %s2508_s21 }
 0x2e9   :  { %1453 = vrot.lane.b32.xlu1 %v3236_v20, %s2508_s21 }
 0x2eb   :  { %1455 = vrot.lane.b32.xlu0 %v3238_v5, %s2508_s21 }
 0x2ed   :  { %1161 = vrot.lane.b32.xlu1 %v3312_v14, %s2509_s24 }
 0x2ef   :  { %1163 = vrot.lane.b32.xlu0 %v3319_v56, %s2509_s24 }
 0x2f1   :  { %1169 = vrot.lane.b32.xlu1 %v3324_v49, %s2509_s24 }
 0x2f3   :  { %1171 = vrot.lane.b32.xlu0 %v3328_v3, %s2509_s24 }
 0x2f5   :  { %1201 = vrot.lane.b32.xlu1 %v3312_v14, %s2504_s20 }
 0x2f7   :  { %1203 = vrot.lane.b32.xlu0 %v3319_v56, %s2504_s20 }
 0x2f9   :  { %1209 = vrot.lane.b32.xlu1 %v3324_v49, %s2504_s20 }
 0x2fb   :  { %1211 = vrot.lane.b32.xlu0 %v3328_v3, %s2504_s20 }
 0x2fd   :  { %1241 = vrot.lane.b32.xlu1 %v3312_v14, %s2510_s5 }
 0x2ff   :  { %1243 = vrot.lane.b32.xlu0 %v3319_v56, %s2510_s5 }
 0x301   :  { %1249 = vrot.lane.b32.xlu1 %v3324_v49, %s2510_s5 }
 0x303   :  { %1251 = vrot.lane.b32.xlu0 %v3328_v3, %s2510_s5 }
 0x305   :  { %1281 = vrot.lane.b32.xlu1 %v3312_v14, %s2511_s25 }
 0x307   :  { %1283 = vrot.lane.b32.xlu0 %v3319_v56, %s2511_s25 }
 0x309   :  { %1289 = vrot.lane.b32.xlu1 %v3324_v49, %s2511_s25 }
 0x30b   :  { %1291 = vrot.lane.b32.xlu0 %v3328_v3, %s2511_s25 }
 0x30d   :  { %1329 = vrot.lane.b32.xlu1 %v3312_v14, %s2506_s19 }
 0x30f   :  { %1331 = vrot.lane.b32.xlu0 %v3319_v56, %s2506_s19 }
 0x311   :  { %1337 = vrot.lane.b32.xlu1 %v3324_v49, %s2506_s19 }
 0x313   :  { %1339 = vrot.lane.b32.xlu0 %v3328_v3, %s2506_s19 }
 0x315   :  { %1369 = vrot.lane.b32.xlu1 %v3312_v14, %s2512_s26 }
 0x317   :  { %1371 = vrot.lane.b32.xlu0 %v3319_v56, %s2512_s26 }
 0x319   :  { %1377 = vrot.lane.b32.xlu1 %v3324_v49, %s2512_s26 }
 0x31b   :  { %1379 = vrot.lane.b32.xlu0 %v3328_v3, %s2512_s26 }
 0x31d   :  { %1409 = vrot.lane.b32.xlu1 %v3312_v14, %s2507_s1 }
 0x31f   :  { %1411 = vrot.lane.b32.xlu0 %v3319_v56, %s2507_s1  ;;  %v1158_v12 = vpop.permute.xlu1 %1157 }
 0x321   :  { %v1160_v43 = vpop.permute.xlu0 %1159  ;;  %1417 = vrot.lane.b32.xlu1 %v3324_v49, %s2507_s1 }
 0x323   :  { %1419 = vrot.lane.b32.xlu0 %v3328_v3, %s2507_s1  ;;  %v1166_v1 = vpop.permute.xlu1 %1165 }
 0x325   :  { %v1168_v60 = vpop.permute.xlu0 %1167  ;;  %1449 = vrot.lane.b32.xlu1 %v3312_v14, %s2508_s21 }
 0x327   :  { %1451 = vrot.lane.b32.xlu0 %v3319_v56, %s2508_s21  ;;  %v3391_v63 = vpop.permute.xlu1 %1197 }
 0x329   :  { %v3393_v8 = vpop.permute.xlu0 %1199  ;;  %1457 = vrot.lane.b32.xlu1 %v3324_v49, %s2508_s21 }
 0x32b   :  { %1459 = vrot.lane.b32.xlu0 %v3328_v3, %s2508_s21  ;;  %v3402_v45 = vpop.permute.xlu1 %1205 }
 0x32d   :  { %v3407_v53 = vpop.permute.xlu0 %1207  ;;  %1762 = vperm.xlu1 %2345, %v1758_v54  }
 0x32f   :  { %1767 = vperm.xlu0 %2344, %v1759_v52   ;;  %v3409_v22 = vpop.permute.xlu1 %1237 }
 0x331   :  { %v3411_v11 = vpop.permute.xlu0 %1239 }
 0x333   :  { %v3413_v29 = vpop.permute.xlu1 %1245 }
 0x335   :  { %v3415_v13 = vpop.permute.xlu0 %1247 }
 0x337   :  { %v3417_v15 = vpop.permute.xlu1 %1277 }
 0x339   :  { %v3419_v2 = vpop.permute.xlu0 %1279 }
 0x33b   :  { %v3421_v50 = vpop.permute.xlu1 %1285 }
 0x33d   :  { %v3423_v51 = vpop.permute.xlu0 %1287 }
 0x33f   :  { %v3425_v17 = vpop.permute.xlu1 %1325 }
 0x341   :  { %v3427_v48 = vpop.permute.xlu0 %1327 }
 0x343   :  { %v3429_v16 = vpop.permute.xlu1 %1333 }
 0x345   :  { %v3431_v54 = vpop.permute.xlu0 %1335 }
 0x347   :  { %v3433_v52 = vpop.permute.xlu1 %1365 }
 0x349   :  { %v3435_v21 = vpop.permute.xlu0 %1367 }
 0x34a   :  { %4296 = vst [vmem:[#allocation29_spill] sm:$0xff] %v3435_v21 }
 0x34b   :  { %v3437_v44 = vpop.permute.xlu1 %1373 }
 0x34d   :  { %v3439_v46 = vpop.permute.xlu0 %1375 }
 0x34e   :  { %4297 = vst [vmem:[#allocation30_spill] sm:$0xff] %v3439_v46 }
 0x34f   :  { %v3441_v42 = vpop.permute.xlu1 %1405 }
 0x350   :  { %4298 = vst [vmem:[#allocation31_spill] sm:$0xff] %v3441_v42 }
 0x351   :  { %v3443_v41 = vpop.permute.xlu0 %1407 }
 0x352   :  { %4299 = vst [vmem:[#allocation32_spill] sm:$0xff] %v3443_v41 }
 0x353   :  { %v3445_v39 = vpop.permute.xlu1 %1413 }
 0x354   :  { %4300 = vst [vmem:[#allocation33_spill] sm:$0xff] %v3445_v39 }
 0x355   :  { %v3447_v37 = vpop.permute.xlu0 %1415 }
 0x356   :  { %4301 = vst [vmem:[#allocation34_spill] sm:$0xff] %v3447_v37 }
 0x357   :  { %v3449_v31 = vpop.permute.xlu1 %1445 }
 0x358   :  { %4302 = vst [vmem:[#allocation35_spill] sm:$0xff] %v3449_v31 }
 0x359   :  { %v3451_v27 = vpop.permute.xlu0 %1447 }
 0x35a   :  { %4303 = vst [vmem:[#allocation36_spill] sm:$0xff] %v3451_v27 }
 0x35b   :  { %v3453_v26 = vpop.permute.xlu1 %1453 }
 0x35c   :  { %4304 = vst [vmem:[#allocation37_spill] sm:$0xff] %v3453_v26 }
 0x35d   :  { %v3455_v18 = vpop.permute.xlu0 %1455 }
 0x35e   :  { %4305 = vst [vmem:[#allocation38_spill] sm:$0xff] %v3455_v18 }
 0x35f   :  { %v1162_v38 = vpop.permute.xlu1 %1161 }
 0x360   :  { %v1177_v55 = vsel %vm122_vm4, %v1158_v12, %v1162_v38  ;;  %v1175_v39 = vsel %vm122_vm4, %v1162_v38, %v1166_v1 }
 0x361   :  { %v1164_v21 = vpop.permute.xlu0 %1163  ;;  %v1182_v42 = vmul.f32 %v1177_v55, %v2963_v0 }
 0x362   :  { %v1178_v41 = vsel %vm122_vm4, %v1160_v43, %v1164_v21  ;;  %v1176_v37 = vsel %vm122_vm4, %v1164_v21, %v1168_v60 }
 0x363   :  { %v1186_v31 = vmul.f32 %v1178_v41, %v2963_v0  ;;  %v1170_v27 = vpop.permute.xlu1 %1169  ;;  %v1187_v20 = vmul.f32 %v1176_v37, %v2981_v47 }
 0x364   :  { %v1173_v26 = vsel %vm122_vm4, %v1166_v1, %v1170_v27  ;;  %v1179_v18 = vsel %vm122_vm4, %v1170_v27, %v1158_v12 }
 0x365   :  { %v1172_v46 = vpop.permute.xlu0 %1171  ;;  %v1190_v61 = vpack.c.bf16 %v1186_v31, %v1182_v42  ;;  %v1181_v21 = vmul.f32 %v1179_v18, %v2972_v35  ;;  %v1184_v0 = vmul.f32 %v1173_v26, %v2988_v59  ;;  %v1183_v31 = vmul.f32 %v1175_v39, %v2981_v47 }
 0x366   :  { %v1174_v55 = vsel %vm122_vm4, %v1168_v60, %v1172_v46  ;;  %v1180_v41 = vsel %vm122_vm4, %v1172_v46, %v1160_v43 }
 0x367   :  { %v1185_v5 = vmul.f32 %v1180_v41, %v2972_v35  ;;  %v1188_v27 = vmul.f32 %v1174_v55, %v2988_v59  ;;  %v1202_v12 = vpop.permute.xlu1 %1201  ;;  %1672 = vmatprep.subr.bf16.mxu0 %v1190_v61  ;;  %v1191_v46 = vpack.c.bf16 %v1187_v20, %v1183_v31 }
 0x368   :  { %v1217_v37 = vsel %vm184_vm5, %v3391_v63, %v1202_v12 }
 0x369   :  { %v1189_v42 = vpack.c.bf16 %v1185_v5, %v1181_v21  ;;  %v1204_v38 = vpop.permute.xlu0 %1203  ;;  %v1192_v1 = vpack.c.bf16 %v1188_v27, %v1184_v0  ;;  %v1222_v18 = vmul.f32 %v1217_v37, %v3000_v19  ;;  %v1215_v5 = vsel %vm184_vm5, %v1202_v12, %v3402_v45 }
 0x36a   :  { %v1218_v26 = vsel %vm184_vm5, %v3393_v8, %v1204_v38  ;;  %v1216_v61 = vsel %vm184_vm5, %v1204_v38, %v3407_v53 }
 0x36b   :  { %v1226_v39 = vmul.f32 %v1218_v26, %v3000_v19  ;;  %v1210_v43 = vpop.permute.xlu1 %1209  ;;  %1673 = vmatpush1.bf16.msra.mxu0 %v1189_v42  ;;  %1715 = vmatprep.subr.bf16.mxu1 %v1192_v1  ;;  %v1227_v41 = vmul.f32 %v1216_v61, %v3008_v30  ;;  %v1223_v42 = vmul.f32 %v1215_v5, %v3008_v30 }
 0x36c   :  { %v1213_v0 = vsel %vm184_vm5, %v3402_v45, %v1210_v43  ;;  %v1219_v20 = vsel %vm184_vm5, %v1210_v43, %v3391_v63  ;;  %1716 = vmatpush1.bf16.msra.mxu1 %v1191_v46 }
 0x36d   :  { %v1212_v60 = vpop.permute.xlu0 %1211  ;;  %v1230_v55 = vpack.c.bf16 %v1226_v39, %v1222_v18  ;;  %v1221_v31 = vmul.f32 %v1219_v20, %v3011_v62  ;;  %v1224_v63 = vmul.f32 %v1213_v0, %v3019_v36 }
 0x36e   :  { %v1214_v21 = vsel %vm184_vm5, %v3407_v53, %v1212_v60  ;;  %v1220_v27 = vsel %vm184_vm5, %v1212_v60, %v3393_v8  ;;  %v1231_v8 = vpack.c.bf16 %v1227_v41, %v1223_v42 }
 0x36f   :  { %v1225_v37 = vmul.f32 %v1220_v27, %v3011_v62  ;;  %v1228_v45 = vmul.f32 %v1214_v21, %v3019_v36  ;;  %v1242_v12 = vpop.permute.xlu1 %1241  ;;  %1674 = vmatprep.subr.bf16.mxu0 %v1230_v55 }
 0x370   :  { %v1257_v53 = vsel %vm246_vm6, %v3409_v22, %v1242_v12  ;;  %v1255_v5 = vsel %vm246_vm6, %v1242_v12, %v3413_v29 }
 0x371   :  { %v1229_v38 = vpack.c.bf16 %v1225_v37, %v1221_v31  ;;  %v1244_v1 = vpop.permute.xlu0 %1243  ;;  %v1232_v46 = vpack.c.bf16 %v1228_v45, %v1224_v63  ;;  %v1262_v18 = vmul.f32 %v1257_v53, %v3037_v10  ;;  %v1263_v45 = vmul.f32 %v1255_v5, %v3045_v32 }
 0x372   :  { %v1258_v26 = vsel %vm246_vm6, %v3411_v11, %v1244_v1  ;;  %v1256_v61 = vsel %vm246_vm6, %v1244_v1, %v3415_v13 }
 0x373   :  { %v1266_v39 = vmul.f32 %v1258_v26, %v3037_v10  ;;  %v1250_v43 = vpop.permute.xlu1 %1249  ;;  %1675 = vmatpush1.bf16.msra.mxu0 %v1229_v38  ;;  %1717 = vmatprep.subr.bf16.mxu1 %v1232_v46  ;;  %v1267_v41 = vmul.f32 %v1256_v61, %v3045_v32 }
 0x374   :  { %v1253_v0 = vsel %vm246_vm6, %v3413_v29, %v1250_v43  ;;  %v1259_v20 = vsel %vm246_vm6, %v1250_v43, %v3409_v22  ;;  %1718 = vmatpush1.bf16.msra.mxu1 %v1231_v8 }
 0x375   :  { %v1252_v60 = vpop.permute.xlu0 %1251  ;;  %v1270_v55 = vpack.c.bf16 %v1266_v39, %v1262_v18  ;;  %v1261_v31 = vmul.f32 %v1259_v20, %v3048_v34  ;;  %v1264_v22 = vmul.f32 %v1253_v0, %v3056_v33 }
 0x376   :  { %v1254_v21 = vsel %vm246_vm6, %v3415_v13, %v1252_v60  ;;  %v1260_v27 = vsel %vm246_vm6, %v1252_v60, %v3411_v11  ;;  %v1271_v11 = vpack.c.bf16 %v1267_v41, %v1263_v45 }
 0x377   :  { %v1265_v63 = vmul.f32 %v1260_v27, %v3048_v34  ;;  %v1268_v29 = vmul.f32 %v1254_v21, %v3056_v33  ;;  %v1282_v37 = vpop.permute.xlu1 %1281  ;;  %1676 = vmatprep.subr.bf16.mxu0 %v1270_v55 }
 0x378   :  { %v1297_v13 = vsel %vm308_vm7, %v3417_v15, %v1282_v37  ;;  %v1295_v39 = vsel %vm308_vm7, %v1282_v37, %v3421_v50 }
 0x379   :  { %v1269_v12 = vpack.c.bf16 %v1265_v63, %v1261_v31  ;;  %v1284_v42 = vpop.permute.xlu0 %1283  ;;  %v1272_v53 = vpack.c.bf16 %v1268_v29, %v1264_v22  ;;  %v1302_v1 = vmul.f32 %v1297_v13, %v3074_v40  ;;  %v1303_v27 = vmul.f32 %v1295_v39, %v3082_v57 }
 0x37a   :  { %v1298_v38 = vsel %vm308_vm7, %v3419_v2, %v1284_v42  ;;  %v1296_v46 = vsel %vm308_vm7, %v1284_v42, %v3423_v51  ;;  %v1320_v13 = vpack.c.bf16 %v3328_v3, %v3324_v49  ;;  %v4306_v39 = vpack.c.bf16 %v3231_v28, %v3227_v7  ;;  %v4311_v28 = vld [vmem:[#allocation30_spill] sm:$0xff] }
 0x37b   :  { %v1306_v8 = vmul.f32 %v1298_v38, %v3074_v40  ;;  %v1290_v26 = vpop.permute.xlu1 %1289  ;;  %1677 = vmatpush1.bf16.msra.mxu0 %v1269_v12  ;;  %1719 = vmatprep.subr.bf16.mxu1 %v1272_v53  ;;  %v1307_v20 = vmul.f32 %v1296_v46, %v3082_v57 }
 0x37c   :  { %v1293_v18 = vsel %vm308_vm7, %v3421_v50, %v1290_v26  ;;  %v1299_v61 = vsel %vm308_vm7, %v1290_v26, %v3417_v15  ;;  %1720 = vmatpush1.bf16.msra.mxu1 %v1271_v11 }
 0x37d   :  { %v1292_v43 = vpop.permute.xlu0 %1291  ;;  %v1310_v0 = vpack.c.bf16 %v1306_v8, %v1302_v1  ;;  %v1301_v55 = vmul.f32 %v1299_v61, %v3085_v58  ;;  %v1304_v15 = vmul.f32 %v1293_v18, %v3093_v6  ;;  %v1311_v29 = vpack.c.bf16 %v1307_v20, %v1303_v27 }
 0x37e   :  { %v1294_v5 = vsel %vm308_vm7, %v3423_v51, %v1292_v43  ;;  %v1300_v60 = vsel %vm308_vm7, %v1292_v43, %v3419_v2  ;;  %v1318_v2 = vpack.c.bf16 %v3319_v56, %v3312_v14  ;;  %v4307_v43 = vld [vmem:[#allocation28_spill] sm:$0xff] }
 0x37f   :  { %v1305_v41 = vmul.f32 %v1300_v60, %v3085_v58  ;;  %v1308_v50 = vmul.f32 %v1294_v5, %v3093_v6  ;;  %v1330_v21 = vpop.permute.xlu1 %1329  ;;  %1678 = vmatprep.subr.bf16.mxu0 %v1310_v0  ;;  %v4308_v0 = vld [vmem:[#allocation27_spill] sm:$0xff] }
 0x380   :  { %v1343_v51 = vsel %vm378_vm0, %v1330_v21, %v3429_v16  ;;  %v1345_v12 = vsel %vm378_vm0, %v3425_v17, %v1330_v21  ;;  %v4309_v20 = vpack.c.bf16 %v4307_v43, %v4308_v0  ;;  %v4312_v21 = vld [vmem:[#allocation29_spill] sm:$0xff]  ;;  %v4321_v0 = vld [vmem:[#allocation15_spill] sm:$0xff] }
 0x381   :  { %v1309_v31 = vpack.c.bf16 %v1305_v41, %v1301_v55  ;;  %v1332_v22 = vpop.permute.xlu0 %1331  ;;  %v1312_v63 = vpack.c.bf16 %v1308_v50, %v1304_v15  ;;  %v1350_v42 = vmul.f32 %v1343_v51, %v2781_v9  ;;  %v1349_v1 = vmul.f32 %v1345_v12, %v2803_v23  ;;  %v4310_v41 = vld [vmem:[#allocation23_spill] sm:$0xff]  ;;  %v4313_v51 = vld [vmem:[#allocation24_spill] sm:$0xff] }
 0x382   :  { %v1344_v37 = vsel %vm378_vm0, %v1332_v22, %v3431_v54  ;;  %v1346_v45 = vsel %vm378_vm0, %v3427_v48, %v1332_v22 }
 0x383   :  { %v1354_v14 = vmul.f32 %v1344_v37, %v2781_v9  ;;  %v1338_v56 = vpop.permute.xlu1 %1337  ;;  %1679 = vmatpush1.bf16.msra.mxu0 %v1309_v31  ;;  %1721 = vmatprep.subr.bf16.mxu1 %v1312_v63  ;;  %v1353_v49 = vmul.f32 %v1346_v45, %v2803_v23 }
 0x384   :  { %v1341_v53 = vsel %vm378_vm0, %v3429_v16, %v1338_v56  ;;  %v1347_v11 = vsel %vm378_vm0, %v1338_v56, %v3425_v17  ;;  %1680 = vmatprep.subr.bf16.mxu0 %v1318_v2  ;;  %1722 = vmatpush1.bf16.msra.mxu1 %v1311_v29  ;;  %v4314_v56 = vld [vmem:[#allocation25_spill] sm:$0xff] }
 0x385   :  { %v1340_v3 = vpop.permute.xlu0 %1339  ;;  %1723 = vmatprep.subr.bf16.mxu1 %v1320_v13  ;;  %v1358_v38 = vpack.c.bf16 %v1354_v14, %v1350_v42  ;;  %v1351_v8 = vmul.f32 %v1341_v53, %v2806_v24  ;;  %v1352_v17 = vmul.f32 %v1347_v11, %v2812_v25  ;;  %v1357_v5 = vpack.c.bf16 %v1353_v49, %v1349_v1  ;;  %v4315_v11 = vld [vmem:[#allocation26_spill] sm:$0xff] }
 0x386   :  { %v1342_v46 = vsel %vm378_vm0, %v3431_v54, %v1340_v3  ;;  %v1348_v16 = vsel %vm378_vm0, %v1340_v3, %v3427_v48 }
 0x387   :  { %v1355_v26 = vmul.f32 %v1342_v46, %v2806_v24  ;;  %v1356_v18 = vmul.f32 %v1348_v16, %v2812_v25  ;;  %v1370_v61 = vpop.permute.xlu1 %1369  ;;  %1681 = vmatpush1.bf16.msra.mxu0 %v4306_v39  ;;  %v4317_v46 = vld [vmem:[#allocation31_spill] sm:$0xff]  ;;  %v4319_v39 = vld [vmem:[#allocation32_spill] sm:$0xff] }
 0x388   :  { %v1383_v54 = vsel %vm440_vm8, %v1370_v61, %v3437_v44  ;;  %v1385_v48 = vsel %vm440_vm8, %v3433_v52, %v1370_v61  ;;  %1682 = vmatprep.subr.bf16.mxu0 %v1358_v38  ;;  %1724 = vmatpush1.bf16.msra.mxu1 %v4309_v20  ;;  %v4316_v38 = vld [vmem:[#allocation33_spill] sm:$0xff] }
 0x389   :  { %v1359_v60 = vpack.c.bf16 %v1355_v26, %v1351_v8  ;;  %v1372_v55 = vpop.permute.xlu0 %1371  ;;  %v1360_v15 = vpack.c.bf16 %v1356_v18, %v1352_v17  ;;  %v1389_v7 = vmul.f32 %v1385_v48, %v4310_v41  ;;  %v1390_v31 = vmul.f32 %v1383_v54, %v4313_v51  ;;  %v4318_v18 = vld [vmem:[#allocation34_spill] sm:$0xff] }
 0x38a   :  { %v1384_v50 = vsel %vm440_vm8, %v1372_v55, %v4311_v28  ;;  %v1386_v27 = vsel %vm440_vm8, %v4312_v21, %v1372_v55  ;;  %v4320_v48 = vld [vmem:[#allocation14_spill] sm:$0xff] }
 0x38b   :  { %v1393_v22 = vmul.f32 %v1386_v27, %v4310_v41  ;;  %v1394_v63 = vmul.f32 %v1384_v50, %v4313_v51  ;;  %v1378_v2 = vpop.permute.xlu1 %1377  ;;  %1683 = vmatpush1.bf16.msra.mxu0 %v1357_v5  ;;  %1725 = vmatprep.subr.bf16.mxu1 %v1360_v15 }
 0x38c   :  { %v1381_v29 = vsel %vm440_vm8, %v3437_v44, %v1378_v2  ;;  %v1387_v37 = vsel %vm440_vm8, %v1378_v2, %v3433_v52  ;;  %1726 = vmatpush1.bf16.msra.mxu1 %v1359_v60  ;;  %v4323_v2 = vld [vmem:[#allocation17_spill] sm:$0xff] }
 0x38d   :  { %v1397_v45 = vpack.c.bf16 %v1393_v22, %v1389_v7  ;;  %v1380_v13 = vpop.permute.xlu0 %1379  ;;  %v1398_v12 = vpack.c.bf16 %v1394_v63, %v1390_v31  ;;  %v1391_v53 = vmul.f32 %v1381_v29, %v4314_v56  ;;  %v1392_v44 = vmul.f32 %v1387_v37, %v4315_v11  ;;  %v4322_v22 = vld [vmem:[#allocation16_spill] sm:$0xff] }
 0x38e   :  { %v1382_v42 = vsel %vm440_vm8, %v4311_v28, %v1380_v13  ;;  %v1388_v14 = vsel %vm440_vm8, %v1380_v13, %v4312_v21 }
 0x38f   :  { %v1395_v49 = vmul.f32 %v1382_v42, %v4314_v56  ;;  %v1396_v52 = vmul.f32 %v1388_v14, %v4315_v11  ;;  %v1410_v3 = vpop.permute.xlu1 %1409  ;;  %1684 = vmatprep.subr.bf16.mxu0 %v1398_v12  ;;  %v4324_v12 = vld [vmem:[#allocation37_spill] sm:$0xff]  ;;  %v4325_v14 = vld [vmem:[#allocation35_spill] sm:$0xff] }
 0x390   :  { %v1423_v1 = vsel %vm502_vm1, %v1410_v3, %v4316_v38  ;;  %v1425_v16 = vsel %vm502_vm1, %v4317_v46, %v1410_v3  ;;  %1685 = vmatpush1.bf16.msra.mxu0 %v1397_v45  ;;  %v4326_v3 = vld [vmem:[#allocation38_spill] sm:$0xff] }
 0x391   :  { %v1399_v8 = vpack.c.bf16 %v1395_v49, %v1391_v53  ;;  %v1412_v17 = vpop.permute.xlu0 %1411  ;;  %v1400_v26 = vpack.c.bf16 %v1396_v52, %v1392_v44  ;;  %v1429_v43 = vmul.f32 %v1425_v16, %v4320_v48  ;;  %v1430_v20 = vmul.f32 %v1423_v1, %v4321_v0  ;;  %v4327_v1 = vld [vmem:[#allocation36_spill] sm:$0xff]  ;;  %v4328_v16 = vld [vmem:[#allocation18_spill] sm:$0xff] }
 0x392   :  { %v1424_v61 = vsel %vm502_vm1, %v1412_v17, %v4318_v18  ;;  %v1426_v54 = vsel %vm502_vm1, %v4319_v39, %v1412_v17  ;;  %v4329_v17 = vld [vmem:[#allocation19_spill] sm:$0xff] }
 0x393   :  { %v1433_v5 = vmul.f32 %v1426_v54, %v4320_v48  ;;  %v1434_v60 = vmul.f32 %v1424_v61, %v4321_v0  ;;  %v1418_v55 = vpop.permute.xlu1 %1417  ;;  %1727 = vmatprep.subr.bf16.mxu1 %v1400_v26 }
 0x394   :  { %v1421_v15 = vsel %vm502_vm1, %v4316_v38, %v1418_v55  ;;  %v1427_v7 = vsel %vm502_vm1, %v1418_v55, %v4317_v46  ;;  %1728 = vmatpush1.bf16.msra.mxu1 %v1399_v8 }
 0x395   :  { %v1437_v28 = vpack.c.bf16 %v1433_v5, %v1429_v43  ;;  %v1420_v50 = vpop.permute.xlu0 %1419  ;;  %v1438_v21 = vpack.c.bf16 %v1434_v60, %v1430_v20  ;;  %v1431_v63 = vmul.f32 %v1421_v15, %v4322_v22  ;;  %v1432_v29 = vmul.f32 %v1427_v7, %v4323_v2  ;;  %v4330_v7 = vld [vmem:[#allocation20_spill] sm:$0xff] }
 0x396   :  { %v1422_v27 = vsel %vm502_vm1, %v4318_v18, %v1420_v50  ;;  %v1428_v31 = vsel %vm502_vm1, %v1420_v50, %v4319_v39  ;;  %v4331_v50 = vld [vmem:[#allocation21_spill] sm:$0xff] }
 0x397   :  { %v1435_v37 = vmul.f32 %v1422_v27, %v4322_v22  ;;  %v1436_v45 = vmul.f32 %v1428_v31, %v4323_v2  ;;  %v1450_v13 = vpop.permute.xlu1 %1449  ;;  %1686 = vmatprep.subr.bf16.mxu0 %v1438_v21 }
 0x398   :  { %v1463_v42 = vsel %vm564_vm2, %v1450_v13, %v4324_v12  ;;  %v1465_v53 = vsel %vm564_vm2, %v4325_v14, %v1450_v13  ;;  %1687 = vmatpush1.bf16.msra.mxu0 %v1437_v28 }
 0x399   :  { %v1439_v44 = vpack.c.bf16 %v1435_v37, %v1431_v63  ;;  %v1452_v49 = vpop.permute.xlu0 %1451  ;;  %v1440_v52 = vpack.c.bf16 %v1436_v45, %v1432_v29  ;;  %v1469_v8 = vmul.f32 %v1465_v53, %v4328_v16  ;;  %v1470_v26 = vmul.f32 %v1463_v42, %v4329_v17  ;;  %v2401_v63 = vld [vmem:[%s4212_s6] ss:$8 sps:$4 sm:$0xff]  }
 0x39a   :  { %v1464_v38 = vsel %vm564_vm2, %v1452_v49, %v4326_v3  ;;  %v1466_v46 = vsel %vm564_vm2, %v4327_v1, %v1452_v49 }
 0x39b   :  { %v1473_v18 = vmul.f32 %v1466_v46, %v4328_v16  ;;  %v1474_v61 = vmul.f32 %v1464_v38, %v4329_v17  ;;  %v1458_v39 = vpop.permute.xlu1 %1457  ;;  %1729 = vmatprep.subr.bf16.mxu1 %v1440_v52 }
 0x39c   :  { %v1461_v54 = vsel %vm564_vm2, %v4324_v12, %v1458_v39  ;;  %v1467_v43 = vsel %vm564_vm2, %v1458_v39, %v4325_v14  ;;  %1730 = vmatpush1.bf16.msra.mxu1 %v1439_v44 }
 0x39d   :  { %v1477_v20 = vpack.c.bf16 %v1473_v18, %v1469_v8  ;;  %v1460_v5 = vpop.permute.xlu0 %1459  ;;  %v1478_v60 = vpack.c.bf16 %v1474_v61, %v1470_v26  ;;  %v1471_v28 = vmul.f32 %v1461_v54, %v4330_v7  ;;  %v1472_v21 = vmul.f32 %v1467_v43, %v4331_v50 }
 0x39e   :  { %v1462_v55 = vsel %vm564_vm2, %v4326_v3, %v1460_v5  ;;  %v1468_v15 = vsel %vm564_vm2, %v1460_v5, %v4327_v1 }
 0x39f   :  { %v1475_v27 = vmul.f32 %v1462_v55, %v4330_v7  ;;  %v1476_v31 = vmul.f32 %v1468_v15, %v4331_v50  ;;  %1688 = vmatprep.subr.bf16.mxu0 %v1478_v60 }
 0x3a0   :  { %1689 = vmatpush1.bf16.msra.mxu0 %v1477_v20 }
 0x3a1   :  { %v1479_v29 = vpack.c.bf16 %v1475_v27, %v1471_v28  ;;  %v1480_v37 = vpack.c.bf16 %v1476_v31, %v1472_v21 }
 0x3a3   :  { %1705 = vmatmul.mubr.bf16.vlgmr.msra.gmra.mrb[8].mxu0 %v2401_v63  ;;  %1731 = vmatprep.subr.bf16.mxu1 %v1480_v37 }
 0x3a4   :  { %1732 = vmatpush1.bf16.msra.mxu1 %v1479_v29 }
 0x3a7   :  { %1748 = vmatmul.mubr.bf16.vlgmr.msra.gmra.mrb[8].mxu1 %v2401_v63  ;;  %v3857_v63 = vld [vmem:[%s4215_s9] sm:$0xff] }
 0x3a8   :  { %4334 = vst [vmem:[#allocation30_spill] sm:$0xff] %v3857_v63  ;;  %v2317_v37 = vcombine.high %v3857_v63, %v3857_v63 }
 0x3aa   :  { %2318 = vmatprep.mubr.msk.bf16.mxu0 %vm1570_vm9, %v2317_v37  ;;  %2319 = vmatprep.mubr.msk.bf16.mxu1 %vm1570_vm9, %v2317_v37 }
 0x3ac   :  { %v1763_v45 = vpop.permute.xlu1 %1762 }
 0x3ae   :  { %v1768_v14 = vpop.permute.xlu0 %1767 }
 0x476   :  { %v1706_v13 = vpop.f32.mrb[8].mxu0 }
 0x477   :  { %v1770_v12 = vadd.f32 %v1763_v45, %v1706_v13  ;;  %v1708_v42 = vpop.f32.mrb[9].mxu0 }
 0x478   :  { %v1710_v53 = vpop.f32.mrb[10].mxu0  ;;  %v1771_v20 = vadd.f32 %v1763_v45, %v1708_v42 }
 0x479   :  { %v3718_v44 = vmax.f32 %v1770_v12, 0.0  ;;  %v1774_v49 = vadd.f32 %v1768_v14, %v1710_v53  ;;  %v1712_v52 = vpop.f32.mrb[11].mxu0 }
 0x47a   :  { %v1749_v3 = vpop.f32.mrb[8].mxu1  ;;  %v1775_v5 = vadd.f32 %v1768_v14, %v1712_v52  ;;  %v3792_v60 = vmax.f32 %v1771_v20, 0.0 }
 0x47b   :  { %v3720_v38 = vmax.f32 %v1774_v49, 0.0  ;;  %v1772_v1 = vadd.f32 %v1763_v45, %v1749_v3  ;;  %v1751_v46 = vpop.f32.mrb[9].mxu1  ;;  %1786 = vrot.lane.b32.xlu1 %v3718_v44, %s2509_s24 }
 0x47c   :  { %v1753_v8 = vpop.f32.mrb[10].mxu1  ;;  %v1773_v55 = vadd.f32 %v1763_v45, %v1751_v46  ;;  %v3796_v15 = vmax.f32 %v1775_v5, 0.0 }
 0x47d   :  { %v3724_v26 = vmax.f32 %v1772_v1, 0.0  ;;  %v1776_v18 = vadd.f32 %v1768_v14, %v1753_v8  ;;  %v1755_v61 = vpop.f32.mrb[11].mxu1  ;;  %1788 = vrot.lane.b32.xlu0 %v3720_v38, %s2509_s24 }
 0x47e   :  { %v1777_v28 = vadd.f32 %v1768_v14, %v1755_v61  ;;  %v3800_v21 = vmax.f32 %v1773_v55, 0.0  ;;  %v2151_v14 = vld [vmem:[%s4216_s10] sm:$0xff]  ;;  %s2513_s10 = smov [#allocation10]  }
 0x47f   :  { %4332 = vst [vmem:[#allocation28_spill] sm:$0xff] %v3724_v26  ;;  %v3730_v54 = vmax.f32 %v1776_v18, 0.0  ;;  %1794 = vrot.lane.b32.xlu1 %v3724_v26, %s2509_s24 }
 0x480   :  { %v3804_v27 = vmax.f32 %v1777_v28, 0.0 }
 0x481   :  { %4333 = vst [vmem:[#allocation27_spill] sm:$0xff] %v3730_v54  ;;  %1796 = vrot.lane.b32.xlu0 %v3730_v54, %s2509_s24 }
 0x483   :  { %1826 = vrot.lane.b32.xlu1 %v3718_v44, %s2504_s20 }
 0x485   :  { %1828 = vrot.lane.b32.xlu0 %v3720_v38, %s2504_s20 }
 0x487   :  { %1834 = vrot.lane.b32.xlu1 %v3724_v26, %s2504_s20 }
 0x489   :  { %1836 = vrot.lane.b32.xlu0 %v3730_v54, %s2504_s20 }
 0x48b   :  { %1866 = vrot.lane.b32.xlu1 %v3718_v44, %s2510_s5 }
 0x48d   :  { %1868 = vrot.lane.b32.xlu0 %v3720_v38, %s2510_s5 }
 0x48f   :  { %1874 = vrot.lane.b32.xlu1 %v3724_v26, %s2510_s5 }
 0x491   :  { %1876 = vrot.lane.b32.xlu0 %v3730_v54, %s2510_s5 }
 0x493   :  { %1906 = vrot.lane.b32.xlu1 %v3718_v44, %s2511_s25 }
 0x495   :  { %1908 = vrot.lane.b32.xlu0 %v3720_v38, %s2511_s25 }
 0x497   :  { %1914 = vrot.lane.b32.xlu1 %v3724_v26, %s2511_s25 }
 0x499   :  { %1916 = vrot.lane.b32.xlu0 %v3730_v54, %s2511_s25 }
 0x49b   :  { %1954 = vrot.lane.b32.xlu1 %v3718_v44, %s2506_s19 }
 0x49d   :  { %1956 = vrot.lane.b32.xlu0 %v3720_v38, %s2506_s19 }
 0x49f   :  { %1962 = vrot.lane.b32.xlu1 %v3724_v26, %s2506_s19 }
 0x4a1   :  { %1964 = vrot.lane.b32.xlu0 %v3730_v54, %s2506_s19 }
 0x4a3   :  { %1994 = vrot.lane.b32.xlu1 %v3718_v44, %s2512_s26 }
 0x4a5   :  { %1996 = vrot.lane.b32.xlu0 %v3720_v38, %s2512_s26 }
 0x4a7   :  { %2002 = vrot.lane.b32.xlu1 %v3724_v26, %s2512_s26 }
 0x4a9   :  { %2004 = vrot.lane.b32.xlu0 %v3730_v54, %s2512_s26 }
 0x4ab   :  { %2034 = vrot.lane.b32.xlu1 %v3718_v44, %s2507_s1 }
 0x4ad   :  { %2036 = vrot.lane.b32.xlu0 %v3720_v38, %s2507_s1 }
 0x4af   :  { %2042 = vrot.lane.b32.xlu1 %v3724_v26, %s2507_s1 }
 0x4b1   :  { %2044 = vrot.lane.b32.xlu0 %v3730_v54, %s2507_s1 }
 0x4b3   :  { %2074 = vrot.lane.b32.xlu1 %v3718_v44, %s2508_s21 }
 0x4b5   :  { %2076 = vrot.lane.b32.xlu0 %v3720_v38, %s2508_s21 }
 0x4b7   :  { %2082 = vrot.lane.b32.xlu1 %v3724_v26, %s2508_s21 }
 0x4b9   :  { %2084 = vrot.lane.b32.xlu0 %v3730_v54, %s2508_s21 }
 0x4bb   :  { %1790 = vrot.lane.b32.xlu1 %v3792_v60, %s2509_s24 }
 0x4bd   :  { %1792 = vrot.lane.b32.xlu0 %v3796_v15, %s2509_s24 }
 0x4bf   :  { %1798 = vrot.lane.b32.xlu1 %v3800_v21, %s2509_s24 }
 0x4c1   :  { %1800 = vrot.lane.b32.xlu0 %v3804_v27, %s2509_s24 }
 0x4c3   :  { %1830 = vrot.lane.b32.xlu1 %v3792_v60, %s2504_s20 }
 0x4c5   :  { %1832 = vrot.lane.b32.xlu0 %v3796_v15, %s2504_s20 }
 0x4c7   :  { %1838 = vrot.lane.b32.xlu1 %v3800_v21, %s2504_s20 }
 0x4c9   :  { %1840 = vrot.lane.b32.xlu0 %v3804_v27, %s2504_s20 }
 0x4cb   :  { %1870 = vrot.lane.b32.xlu1 %v3792_v60, %s2510_s5 }
 0x4cd   :  { %1872 = vrot.lane.b32.xlu0 %v3796_v15, %s2510_s5 }
 0x4cf   :  { %1878 = vrot.lane.b32.xlu1 %v3800_v21, %s2510_s5 }
 0x4d1   :  { %1880 = vrot.lane.b32.xlu0 %v3804_v27, %s2510_s5 }
 0x4d3   :  { %1910 = vrot.lane.b32.xlu1 %v3792_v60, %s2511_s25 }
 0x4d5   :  { %1912 = vrot.lane.b32.xlu0 %v3796_v15, %s2511_s25 }
 0x4d7   :  { %1918 = vrot.lane.b32.xlu1 %v3800_v21, %s2511_s25 }
 0x4d9   :  { %1920 = vrot.lane.b32.xlu0 %v3804_v27, %s2511_s25 }
 0x4db   :  { %1958 = vrot.lane.b32.xlu1 %v3792_v60, %s2506_s19 }
 0x4dd   :  { %1960 = vrot.lane.b32.xlu0 %v3796_v15, %s2506_s19 }
 0x4df   :  { %1966 = vrot.lane.b32.xlu1 %v3800_v21, %s2506_s19 }
 0x4e1   :  { %1968 = vrot.lane.b32.xlu0 %v3804_v27, %s2506_s19  ;;  %s2262_s19 = sshll.u32 %s2513_s10, 4  ;;  %s2263_s19 = int_to_ptr.vmem [resolvable:$true] %s2262_s19 }
 0x4e2   :  { %p2475_p11 = scmp.lt.s32.totalorder %s2263_s19, %s2263_s19 }
 0x4e3   :  { %1998 = vrot.lane.b32.xlu1 %v3792_v60, %s2512_s26 }
 0x4e5   :  { %2000 = vrot.lane.b32.xlu0 %v3796_v15, %s2512_s26 }
 0x4e7   :  { %2006 = vrot.lane.b32.xlu1 %v3800_v21, %s2512_s26 }
 0x4e9   :  { %2008 = vrot.lane.b32.xlu0 %v3804_v27, %s2512_s26 }
 0x4eb   :  { %2038 = vrot.lane.b32.xlu1 %v3792_v60, %s2507_s1 }
 0x4ed   :  { %v1787_v31 = vpop.permute.xlu1 %1786  ;;  %2040 = vrot.lane.b32.xlu0 %v3796_v15, %s2507_s1 }
 0x4ef   :  { %2046 = vrot.lane.b32.xlu1 %v3800_v21, %s2507_s1  ;;  %v1789_v29 = vpop.permute.xlu0 %1788 }
 0x4f1   :  { %v1795_v45 = vpop.permute.xlu1 %1794  ;;  %2048 = vrot.lane.b32.xlu0 %v3804_v27, %s2507_s1  ;;  %s2470_s1 = scalar_lea.vmem %s2263_s19, 512 }
 0x4f2   :  { %p2471_p10 = scmp.ne.s32.totalorder %s2263_s19, %s2470_s1  ;;  %p2476_p12 = scmp.lt.s32.totalorder %s2470_s1, %s2470_s1 }
 0x4f3   :  { %2078 = vrot.lane.b32.xlu1 %v3792_v60, %s2508_s21  ;;  %v1797_v13 = vpop.permute.xlu0 %1796 }
 0x4f4   :  { %p2477_p13 = por %p2476_p12, %p2475_p11 }
 0x4f5   :  { %v3869_v12 = vpop.permute.xlu1 %1826  ;;  %2080 = vrot.lane.b32.xlu0 %v3796_v15, %s2508_s21 }
 0x4f6   :  { %p2478_p0 = pnand %p2477_p13, %p2471_p10 }
 0x4f7   :  { %2086 = vrot.lane.b32.xlu1 %v3800_v21, %s2508_s21  ;;  %v3875_v42 = vpop.permute.xlu0 %1828 }
 0x4f9   :  { %v3880_v53 = vpop.permute.xlu1 %1834  ;;  %2088 = vrot.lane.b32.xlu0 %v3804_v27, %s2508_s21 }
 0x4fb   :  { %2154 = vperm.xlu1 %2345, %v2151_v14   ;;  %v3884_v49 = vpop.permute.xlu0 %1836 }
 0x4fd   :  { %v3886_v52 = vpop.permute.xlu1 %1866 }
 0x4ff   :  { %v3888_v3 = vpop.permute.xlu0 %1868 }
 0x501   :  { %v3890_v1 = vpop.permute.xlu1 %1874 }
 0x503   :  { %v3892_v46 = vpop.permute.xlu0 %1876 }
 0x505   :  { %v3894_v8 = vpop.permute.xlu1 %1906 }
 0x507   :  { %v3896_v18 = vpop.permute.xlu0 %1908 }
 0x509   :  { %v3898_v61 = vpop.permute.xlu1 %1914 }
 0x50b   :  { %v3900_v20 = vpop.permute.xlu0 %1916 }
 0x50d   :  { %v3902_v5 = vpop.permute.xlu1 %1954 }
 0x50f   :  { %v3904_v55 = vpop.permute.xlu0 %1956 }
 0x511   :  { %v3906_v28 = vpop.permute.xlu1 %1962 }
 0x513   :  { %v3908_v37 = vpop.permute.xlu0 %1964 }
 0x515   :  { %v3910_v14 = vpop.permute.xlu1 %1994 }
 0x517   :  { %v3912_v43 = vpop.permute.xlu0 %1996 }
 0x518   :  { %4335 = vst [vmem:[#allocation29_spill] sm:$0xff] %v3912_v43 }
 0x519   :  { %v3914_v39 = vpop.permute.xlu1 %2002 }
 0x51b   :  { %v3916_v50 = vpop.permute.xlu0 %2004 }
 0x51c   :  { %4336 = vst [vmem:[#allocation33_spill] sm:$0xff] %v3916_v50 }
 0x51d   :  { %v3918_v7 = vpop.permute.xlu1 %2034 }
 0x51e   :  { %4337 = vst [vmem:[#allocation31_spill] sm:$0xff] %v3918_v7 }
 0x51f   :  { %v3920_v63 = vpop.permute.xlu0 %2036 }
 0x520   :  { %4338 = vst [vmem:[#allocation34_spill] sm:$0xff] %v3920_v63 }
 0x521   :  { %v3922_v17 = vpop.permute.xlu1 %2042 }
 0x522   :  { %4339 = vst [vmem:[#allocation32_spill] sm:$0xff] %v3922_v17 }
 0x523   :  { %v3924_v16 = vpop.permute.xlu0 %2044 }
 0x524   :  { %4340 = vst [vmem:[#allocation37_spill] sm:$0xff] %v3924_v16  ;;  %v4345_v16 = vld [vmem:[#allocation22_spill] sm:$0xff] }
 0x525   :  { %v3926_v2 = vpop.permute.xlu1 %2074 }
 0x526   :  { %4341 = vst [vmem:[#allocation35_spill] sm:$0xff] %v3926_v2 }
 0x527   :  { %v3928_v22 = vpop.permute.xlu0 %2076 }
 0x528   :  { %4342 = vst [vmem:[#allocation38_spill] sm:$0xff] %v3928_v22 }
 0x529   :  { %v3930_v0 = vpop.permute.xlu1 %2082 }
 0x52a   :  { %4343 = vst [vmem:[#allocation36_spill] sm:$0xff] %v3930_v0 }
 0x52b   :  { %v3932_v48 = vpop.permute.xlu0 %2084 }
 0x52c   :  { %4344 = vst [vmem:[#allocation39_spill] sm:$0xff] %v3932_v48 }
 0x52d   :  { %v1791_v11 = vpop.permute.xlu1 %1790 }
 0x52e   :  { %v1804_v56 = vsel %vm122_vm4, %v1791_v11, %v1795_v45  ;;  %v1806_v7 = vsel %vm122_vm4, %v1787_v31, %v1791_v11 }
 0x52f   :  { %v1793_v63 = vpop.permute.xlu0 %1792  ;;  %v1811_v22 = vmul.f32 %v1806_v7, %v4345_v16  ;;  %v1812_v0 = vmul.f32 %v1804_v56, %v2981_v47 }
 0x530   :  { %v1805_v17 = vsel %vm122_vm4, %v1793_v63, %v1797_v13  ;;  %v1807_v2 = vsel %vm122_vm4, %v1789_v29, %v1793_v63 }
 0x531   :  { %v1815_v48 = vmul.f32 %v1807_v2, %v4345_v16  ;;  %v1816_v51 = vmul.f32 %v1805_v17, %v2981_v47  ;;  %v1799_v43 = vpop.permute.xlu1 %1798 }
 0x532   :  { %v1802_v50 = vsel %vm122_vm4, %v1795_v45, %v1799_v43  ;;  %v1808_v11 = vsel %vm122_vm4, %v1799_v43, %v1787_v31 }
 0x533   :  { %v1820_v41 = vpack.c.bf16 %v1816_v51, %v1812_v0  ;;  %v1801_v26 = vpop.permute.xlu0 %1800  ;;  %v1819_v54 = vpack.c.bf16 %v1815_v48, %v1811_v22  ;;  %v1810_v2 = vmul.f32 %v1808_v11, %v2972_v35  ;;  %v1813_v47 = vmul.f32 %v1802_v50, %v2988_v59 }
 0x534   :  { %v1803_v63 = vsel %vm122_vm4, %v1797_v13, %v1801_v26  ;;  %v1809_v56 = vsel %vm122_vm4, %v1801_v26, %v1789_v29 }
 0x535   :  { %v1814_v16 = vmul.f32 %v1809_v56, %v2972_v35  ;;  %v1817_v17 = vmul.f32 %v1803_v63, %v2988_v59  ;;  %v1831_v7 = vpop.permute.xlu1 %1830  ;;  %2166 = vmatprep.subr.bf16.mxu0 %v1819_v54 }
 0x536   :  { %v1844_v51 = vsel %vm184_vm5, %v1831_v7, %v3880_v53  ;;  %v1846_v48 = vsel %vm184_vm5, %v3869_v12, %v1831_v7 }
 0x537   :  { %v1818_v0 = vpack.c.bf16 %v1814_v16, %v1810_v2  ;;  %v1833_v22 = vpop.permute.xlu0 %1832  ;;  %v1821_v26 = vpack.c.bf16 %v1817_v17, %v1813_v47  ;;  %v1851_v43 = vmul.f32 %v1846_v48, %v3000_v19  ;;  %v1852_v50 = vmul.f32 %v1844_v51, %v3008_v30 }
 0x538   :  { %v1845_v35 = vsel %vm184_vm5, %v1833_v22, %v3884_v49  ;;  %v1847_v59 = vsel %vm184_vm5, %v3875_v42, %v1833_v22 }
 0x539   :  { %v1855_v54 = vmul.f32 %v1847_v59, %v3000_v19  ;;  %v1856_v31 = vmul.f32 %v1845_v35, %v3008_v30  ;;  %v1839_v29 = vpop.permute.xlu1 %1838  ;;  %2167 = vmatpush1.bf16.msra.mxu0 %v1818_v0  ;;  %2207 = vmatprep.subr.bf16.mxu1 %v1821_v26 }
 0x53a   :  { %v1842_v45 = vsel %vm184_vm5, %v3880_v53, %v1839_v29  ;;  %v1848_v13 = vsel %vm184_vm5, %v1839_v29, %v3869_v12  ;;  %2208 = vmatpush1.bf16.msra.mxu1 %v1820_v41 }
 0x53b   :  { %v1860_v11 = vpack.c.bf16 %v1856_v31, %v1852_v50  ;;  %v1841_v63 = vpop.permute.xlu0 %1840  ;;  %v1859_v56 = vpack.c.bf16 %v1855_v54, %v1851_v43  ;;  %v1850_v2 = vmul.f32 %v1848_v13, %v3011_v62  ;;  %v1853_v53 = vmul.f32 %v1842_v45, %v3019_v36 }
 0x53c   :  { %v1843_v19 = vsel %vm184_vm5, %v3884_v49, %v1841_v63  ;;  %v1849_v30 = vsel %vm184_vm5, %v1841_v63, %v3875_v42 }
 0x53d   :  { %v1854_v47 = vmul.f32 %v1849_v30, %v3011_v62  ;;  %v1857_v12 = vmul.f32 %v1843_v19, %v3019_v36  ;;  %v1871_v41 = vpop.permute.xlu1 %1870  ;;  %2168 = vmatprep.subr.bf16.mxu0 %v1859_v56 }
 0x53e   :  { %v1884_v16 = vsel %vm246_vm6, %v1871_v41, %v3890_v1  ;;  %v1886_v49 = vsel %vm246_vm6, %v3886_v52, %v1871_v41 }
 0x53f   :  { %v1858_v17 = vpack.c.bf16 %v1854_v47, %v1850_v2  ;;  %v1873_v42 = vpop.permute.xlu0 %1872  ;;  %v1861_v7 = vpack.c.bf16 %v1857_v12, %v1853_v53  ;;  %v1891_v51 = vmul.f32 %v1886_v49, %v3037_v10  ;;  %v1892_v48 = vmul.f32 %v1884_v16, %v3045_v32 }
 0x540   :  { %v1885_v62 = vsel %vm246_vm6, %v1873_v42, %v3892_v46  ;;  %v1887_v36 = vsel %vm246_vm6, %v3888_v3, %v1873_v42 }
 0x541   :  { %v1895_v0 = vmul.f32 %v1887_v36, %v3037_v10  ;;  %v1896_v22 = vmul.f32 %v1885_v62, %v3045_v32  ;;  %v1879_v26 = vpop.permute.xlu1 %1878  ;;  %2169 = vmatpush1.bf16.msra.mxu0 %v1858_v17  ;;  %2209 = vmatprep.subr.bf16.mxu1 %v1861_v7 }
 0x542   :  { %v1882_v43 = vsel %vm246_vm6, %v3890_v1, %v1879_v26  ;;  %v1888_v35 = vsel %vm246_vm6, %v1879_v26, %v3886_v52  ;;  %2210 = vmatpush1.bf16.msra.mxu1 %v1860_v11 }
 0x543   :  { %v1900_v59 = vpack.c.bf16 %v1896_v22, %v1892_v48  ;;  %v1881_v50 = vpop.permute.xlu0 %1880  ;;  %v1899_v54 = vpack.c.bf16 %v1895_v0, %v1891_v51  ;;  %v1890_v31 = vmul.f32 %v1888_v35, %v3048_v34  ;;  %v1893_v1 = vmul.f32 %v1882_v43, %v3056_v33 }
 0x544   :  { %v1883_v10 = vsel %vm246_vm6, %v3892_v46, %v1881_v50  ;;  %v1889_v32 = vsel %vm246_vm6, %v1881_v50, %v3888_v3 }
 0x545   :  { %v1894_v29 = vmul.f32 %v1889_v32, %v3048_v34  ;;  %v1897_v52 = vmul.f32 %v1883_v10, %v3056_v33  ;;  %v1911_v45 = vpop.permute.xlu1 %1910  ;;  %2170 = vmatprep.subr.bf16.mxu0 %v1899_v54 }
 0x546   :  { %v1924_v13 = vsel %vm308_vm7, %v1911_v45, %v3898_v61  ;;  %v1926_v46 = vsel %vm308_vm7, %v3894_v8, %v1911_v45 }
 0x547   :  { %v1898_v11 = vpack.c.bf16 %v1894_v29, %v1890_v31  ;;  %v1913_v3 = vpop.permute.xlu0 %1912  ;;  %v1901_v63 = vpack.c.bf16 %v1897_v52, %v1893_v1  ;;  %v1931_v56 = vmul.f32 %v1926_v46, %v3074_v40  ;;  %v1932_v19 = vmul.f32 %v1924_v13, %v3082_v57  ;;  %v4347_v31 = vld [vmem:[#allocation27_spill] sm:$0xff]  ;;  %v4348_v1 = vld [vmem:[#allocation28_spill] sm:$0xff] }
 0x548   :  { %v1925_v34 = vsel %vm308_vm7, %v1913_v3, %v3900_v20  ;;  %v1927_v33 = vsel %vm308_vm7, %v3896_v18, %v1913_v3  ;;  %v4349_v29 = vpack.c.bf16 %v4347_v31, %v4348_v1  ;;  %v4350_v13 = vld [vmem:[#allocation23_spill] sm:$0xff]  ;;  %v4364_v1 = vld [vmem:[#allocation36_spill] sm:$0xff] }
 0x549   :  { %v1935_v30 = vmul.f32 %v1927_v33, %v3074_v40  ;;  %v1936_v2 = vmul.f32 %v1925_v34, %v3082_v57  ;;  %v1919_v53 = vpop.permute.xlu1 %1918  ;;  %2171 = vmatpush1.bf16.msra.mxu0 %v1898_v11  ;;  %2211 = vmatprep.subr.bf16.mxu1 %v1901_v63  ;;  %v4352_v11 = vld [vmem:[#allocation29_spill] sm:$0xff]  ;;  %v4353_v63 = vld [vmem:[#allocation24_spill] sm:$0xff] }
 0x54a   :  { %v1922_v47 = vsel %vm308_vm7, %v3898_v61, %v1919_v53  ;;  %v1928_v12 = vsel %vm308_vm7, %v1919_v53, %v3894_v8  ;;  %2212 = vmatpush1.bf16.msra.mxu1 %v1900_v59 }
 0x54b   :  { %v1940_v41 = vpack.c.bf16 %v1936_v2, %v1932_v19  ;;  %v1921_v16 = vpop.permute.xlu0 %1920  ;;  %v1939_v49 = vpack.c.bf16 %v1935_v30, %v1931_v56  ;;  %v1930_v17 = vmul.f32 %v1928_v12, %v3085_v58  ;;  %v1933_v61 = vmul.f32 %v1922_v47, %v3093_v6 }
 0x54c   :  { %v1923_v40 = vsel %vm308_vm7, %v3900_v20, %v1921_v16  ;;  %v1929_v57 = vsel %vm308_vm7, %v1921_v16, %v3896_v18 }
 0x54d   :  { %v1934_v42 = vmul.f32 %v1929_v57, %v3085_v58  ;;  %v1937_v8 = vmul.f32 %v1923_v40, %v3093_v6  ;;  %v1959_v7 = vpop.permute.xlu1 %1958  ;;  %2172 = vmatprep.subr.bf16.mxu0 %v1939_v49  ;;  %v1947_v58 = vpack.c.bf16 %v3796_v15, %v3792_v60  ;;  %v1949_v6 = vpack.c.bf16 %v3804_v27, %v3800_v21  ;;  %v4354_v49 = vld [vmem:[#allocation25_spill] sm:$0xff]  ;;  %v4355_v57 = vld [vmem:[#allocation26_spill] sm:$0xff] }
 0x54e   :  { %v1972_v51 = vsel %vm378_vm0, %v1959_v7, %v3906_v28  ;;  %v1974_v0 = vsel %vm378_vm0, %v3902_v5, %v1959_v7  ;;  %v4357_v7 = vld [vmem:[#allocation31_spill] sm:$0xff] }
 0x54f   :  { %v1938_v62 = vpack.c.bf16 %v1934_v42, %v1930_v17  ;;  %v1961_v20 = vpop.permute.xlu0 %1960  ;;  %v1941_v36 = vpack.c.bf16 %v1937_v8, %v1933_v61  ;;  %v1979_v22 = vmul.f32 %v1972_v51, %v2781_v9  ;;  %v4356_v42 = vld [vmem:[#allocation32_spill] sm:$0xff] }
 0x550   :  { %v1973_v18 = vsel %vm378_vm0, %v1961_v20, %v3908_v37  ;;  %v1975_v48 = vsel %vm378_vm0, %v3904_v55, %v1961_v20 }
 0x551   :  { %v1983_v26 = vmul.f32 %v1973_v18, %v2781_v9  ;;  %v1967_v43 = vpop.permute.xlu1 %1966  ;;  %2173 = vmatpush1.bf16.msra.mxu0 %v1938_v62  ;;  %2213 = vmatprep.subr.bf16.mxu1 %v1941_v36  ;;  %v1982_v15 = vmul.f32 %v1975_v48, %v2803_v23  ;;  %v1978_v9 = vmul.f32 %v1974_v0, %v2803_v23  ;;  %v4358_v18 = vld [vmem:[#allocation37_spill] sm:$0xff]  ;;  %v4360_v0 = vld [vmem:[#allocation14_spill] sm:$0xff] }
 0x552   :  { %v1970_v35 = vsel %vm378_vm0, %v3906_v28, %v1967_v43  ;;  %v1976_v60 = vsel %vm378_vm0, %v1967_v43, %v3902_v5  ;;  %2174 = vmatprep.subr.bf16.mxu0 %v1947_v58  ;;  %2214 = vmatpush1.bf16.msra.mxu1 %v1940_v41  ;;  %v4346_v23 = vpack.c.bf16 %v3720_v38, %v3718_v44  ;;  %v4351_v38 = vld [vmem:[#allocation33_spill] sm:$0xff]  ;;  %v4359_v58 = vld [vmem:[#allocation34_spill] sm:$0xff] }
 0x553   :  { %2215 = vmatprep.subr.bf16.mxu1 %v1949_v6  ;;  %v1969_v21 = vpop.permute.xlu0 %1968  ;;  %v1987_v27 = vpack.c.bf16 %v1983_v26, %v1979_v22  ;;  %v1980_v50 = vmul.f32 %v1970_v35, %v2806_v24  ;;  %v1981_v5 = vmul.f32 %v1976_v60, %v2812_v25  ;;  %v4361_v26 = vld [vmem:[#allocation15_spill] sm:$0xff] }
 0x554   :  { %v1971_v59 = vsel %vm378_vm0, %v3908_v37, %v1969_v21  ;;  %v1977_v28 = vsel %vm378_vm0, %v1969_v21, %v3904_v55 }
 0x555   :  { %v1984_v54 = vmul.f32 %v1971_v59, %v2806_v24  ;;  %v1985_v10 = vmul.f32 %v1977_v28, %v2812_v25  ;;  %v1999_v32 = vpop.permute.xlu1 %1998  ;;  %2175 = vmatpush1.bf16.msra.mxu0 %v4346_v23  ;;  %v1986_v24 = vpack.c.bf16 %v1982_v15, %v1978_v9 }
 0x556   :  { %v2012_v37 = vsel %vm440_vm8, %v1999_v32, %v3914_v39  ;;  %v2014_v55 = vsel %vm440_vm8, %v3910_v14, %v1999_v32  ;;  %2176 = vmatprep.subr.bf16.mxu0 %v1987_v27  ;;  %2216 = vmatpush1.bf16.msra.mxu1 %v4349_v29  ;;  %v4363_v32 = vld [vmem:[#allocation17_spill] sm:$0xff] }
 0x557   :  { %v1988_v25 = vpack.c.bf16 %v1984_v54, %v1980_v50  ;;  %v2001_v52 = vpop.permute.xlu0 %2000  ;;  %v1989_v45 = vpack.c.bf16 %v1985_v10, %v1981_v5  ;;  %v2018_v44 = vmul.f32 %v2014_v55, %v4350_v13  ;;  %v2019_v56 = vmul.f32 %v2012_v37, %v4353_v63  ;;  %v4362_v54 = vld [vmem:[#allocation16_spill] sm:$0xff] }
 0x558   :  { %v2013_v46 = vsel %vm440_vm8, %v2001_v52, %v4351_v38  ;;  %v2015_v3 = vsel %vm440_vm8, %v4352_v11, %v2001_v52 }
 0x559   :  { %v2022_v34 = vmul.f32 %v2015_v3, %v4350_v13  ;;  %v2023_v33 = vmul.f32 %v2013_v46, %v4353_v63  ;;  %v2007_v19 = vpop.permute.xlu1 %2006  ;;  %2177 = vmatpush1.bf16.msra.mxu0 %v1986_v24  ;;  %2217 = vmatprep.subr.bf16.mxu1 %v1989_v45  ;;  %v4365_v24 = vld [vmem:[#allocation35_spill] sm:$0xff]  ;;  %v4367_v46 = vld [vmem:[#allocation38_spill] sm:$0xff] }
 0x55a   :  { %v2010_v30 = vsel %vm440_vm8, %v3914_v39, %v2007_v19  ;;  %v2016_v2 = vsel %vm440_vm8, %v2007_v19, %v3910_v14  ;;  %2218 = vmatpush1.bf16.msra.mxu1 %v1988_v25  ;;  %v4368_v3 = vld [vmem:[#allocation18_spill] sm:$0xff] }
 0x55b   :  { %v2026_v53 = vpack.c.bf16 %v2022_v34, %v2018_v44  ;;  %v2009_v47 = vpop.permute.xlu0 %2008  ;;  %v2027_v12 = vpack.c.bf16 %v2023_v33, %v2019_v56  ;;  %v2020_v40 = vmul.f32 %v2010_v30, %v4354_v49  ;;  %v2021_v39 = vmul.f32 %v2016_v2, %v4355_v57  ;;  %v4366_v44 = vld [vmem:[#allocation39_spill] sm:$0xff] }
 0x55c   :  { %v2011_v41 = vsel %vm440_vm8, %v4351_v38, %v2009_v47  ;;  %v2017_v16 = vsel %vm440_vm8, %v2009_v47, %v4352_v11  ;;  %v4369_v56 = vld [vmem:[#allocation19_spill] sm:$0xff] }
 0x55d   :  { %v2024_v17 = vmul.f32 %v2011_v41, %v4354_v49  ;;  %v2025_v14 = vmul.f32 %v2017_v16, %v4355_v57  ;;  %v2039_v61 = vpop.permute.xlu1 %2038  ;;  %2178 = vmatprep.subr.bf16.mxu0 %v2027_v12 }
 0x55e   :  { %v2052_v8 = vsel %vm502_vm1, %v2039_v61, %v4356_v42  ;;  %v2054_v51 = vsel %vm502_vm1, %v4357_v7, %v2039_v61  ;;  %2179 = vmatpush1.bf16.msra.mxu0 %v2026_v53 }
 0x55f   :  { %v2028_v62 = vpack.c.bf16 %v2024_v17, %v2020_v40  ;;  %v2041_v20 = vpop.permute.xlu0 %2040  ;;  %v2029_v36 = vpack.c.bf16 %v2025_v14, %v2021_v39  ;;  %v2058_v22 = vmul.f32 %v2054_v51, %v4360_v0  ;;  %v2059_v43 = vmul.f32 %v2052_v8, %v4361_v26  ;;  %v4370_v40 = vld [vmem:[#allocation30_spill] sm:$0xff]  ;;  %v4371_v39 = vld [vmem:[#allocation20_spill] sm:$0xff]  ;;  %v4372_v14 = vld [vmem:[#allocation21_spill] sm:$0xff] }
 0x560   :  { %v2053_v48 = vsel %vm502_vm1, %v2041_v20, %v4358_v18  ;;  %v2055_v6 = vsel %vm502_vm1, %v4359_v58, %v2041_v20  ;;  %v2316_v57 = vcombine.low %v4370_v40, %v4370_v40 }
 0x561   :  { %v2062_v35 = vmul.f32 %v2055_v6, %v4360_v0  ;;  %v2063_v60 = vmul.f32 %v2053_v48, %v4361_v26  ;;  %v2047_v15 = vpop.permute.xlu1 %2046  ;;  %2219 = vmatprep.subr.bf16.mxu1 %v2029_v36 }
 0x562   :  { %v2050_v21 = vsel %vm502_vm1, %v4356_v42, %v2047_v15  ;;  %v2056_v27 = vsel %vm502_vm1, %v2047_v15, %v4357_v7  ;;  %2220 = vmatpush1.bf16.msra.mxu1 %v2028_v62 }
 0x563   :  { %v2066_v9 = vpack.c.bf16 %v2062_v35, %v2058_v22  ;;  %v2049_v59 = vpop.permute.xlu0 %2048  ;;  %v2067_v28 = vpack.c.bf16 %v2063_v60, %v2059_v43  ;;  %v2060_v10 = vmul.f32 %v2050_v21, %v4362_v54  ;;  %v2061_v23 = vmul.f32 %v2056_v27, %v4363_v32 }
 0x564   :  { %v2051_v50 = vsel %vm502_vm1, %v4358_v18, %v2049_v59  ;;  %v2057_v5 = vsel %vm502_vm1, %v2049_v59, %v4359_v58 }
 0x565   :  { %v2064_v37 = vmul.f32 %v2051_v50, %v4362_v54  ;;  %v2065_v55 = vmul.f32 %v2057_v5, %v4363_v32  ;;  %v2079_v31 = vpop.permute.xlu1 %2078  ;;  %2180 = vmatprep.subr.bf16.mxu0 %v2067_v28 }
 0x566   :  { %v2092_v29 = vsel %vm564_vm2, %v2079_v31, %v4364_v1  ;;  %v2094_v25 = vsel %vm564_vm2, %v4365_v24, %v2079_v31  ;;  %2181 = vmatpush1.bf16.msra.mxu0 %v2066_v9 }
 0x567   :  { %v2068_v52 = vpack.c.bf16 %v2064_v37, %v2060_v10  ;;  %v2081_v45 = vpop.permute.xlu0 %2080  ;;  %v2069_v13 = vpack.c.bf16 %v2065_v55, %v2061_v23  ;;  %v2098_v63 = vmul.f32 %v2094_v25, %v4368_v3  ;;  %v2099_v34 = vmul.f32 %v2092_v29, %v4369_v56 }
 0x568   :  { %v2093_v38 = vsel %vm564_vm2, %v2081_v45, %v4366_v44  ;;  %v2095_v11 = vsel %vm564_vm2, %v4367_v46, %v2081_v45 }
 0x569   :  { %v2102_v33 = vmul.f32 %v2095_v11, %v4368_v3  ;;  %v2103_v19 = vmul.f32 %v2093_v38, %v4369_v56  ;;  %v2087_v30 = vpop.permute.xlu1 %2086  ;;  %2221 = vmatprep.subr.bf16.mxu1 %v2069_v13 }
 0x56a   :  { %v2090_v2 = vsel %vm564_vm2, %v4364_v1, %v2087_v30  ;;  %v2096_v53 = vsel %vm564_vm2, %v2087_v30, %v4365_v24  ;;  %2222 = vmatpush1.bf16.msra.mxu1 %v2068_v52 }
 0x56b   :  { %v2106_v47 = vpack.c.bf16 %v2102_v33, %v2098_v63  ;;  %v2089_v12 = vpop.permute.xlu0 %2088  ;;  %v2107_v41 = vpack.c.bf16 %v2103_v19, %v2099_v34  ;;  %v2100_v17 = vmul.f32 %v2090_v2, %v4371_v39  ;;  %v2101_v61 = vmul.f32 %v2096_v53, %v4372_v14 }
 0x56c   :  { %v2091_v16 = vsel %vm564_vm2, %v4366_v44, %v2089_v12  ;;  %v2097_v49 = vsel %vm564_vm2, %v2089_v12, %v4367_v46 }
 0x56d   :  { %v2104_v42 = vmul.f32 %v2091_v16, %v4371_v39  ;;  %v2105_v8 = vmul.f32 %v2097_v49, %v4372_v14  ;;  %2182 = vmatprep.subr.bf16.mxu0 %v2107_v41 }
 0x56e   :  { %2183 = vmatpush1.bf16.msra.mxu0 %v2106_v47 }
 0x56f   :  { %v2108_v7 = vpack.c.bf16 %v2104_v42, %v2100_v17  ;;  %v2109_v51 = vpack.c.bf16 %v2105_v8, %v2101_v61 }
 0x571   :  { %2199 = vmatmul.mubr.bf16.vlgmr.msra.gmra.mrb[12].mxu0 %v2316_v57  ;;  %2223 = vmatprep.subr.bf16.mxu1 %v2109_v51 }
 0x572   :  { %2224 = vmatpush1.bf16.msra.mxu1 %v2108_v7 }
 0x575   :  { %2240 = vmatmul.mubr.bf16.vlgmr.msra.gmra.mrb[12].mxu1 %v2316_v57 }
 0x57a   :  { %v2155_v4 = vpop.permute.xlu1 %2154 }
 0x644   :  { %v2200_v62 = vpop.f32.mrb[12].mxu0 }
 0x645   :  { %v2201_v20 = vadd.f32 %v2200_v62, %v2155_v4  ;;  %v2202_v36 = vpop.f32.mrb[13].mxu0 }
 0x646   :  { %v2203_v18 = vadd.f32 %v2202_v36, %v2155_v4  ;;  %v2204_v48 = vpop.f32.mrb[14].mxu0 }
 0x647   :  { %v2248_v58 = vmax.f32 %v2201_v20, 0.0  ;;  %v2205_v6 = vpop.f32.mrb[15].mxu0 }
 0x648   :  { %v2249_v0 = vmax.f32 %v2203_v18, 0.0  ;;  %v2241_v22 = vpop.f32.mrb[12].mxu1 }
 0x649   :  { %2252 = vst [vmem:[#allocation10] sm:$0xff] %v2248_v58  ;;  %v2242_v26 = vadd.f32 %v2241_v22, %v2155_v4  ;;  %v2243_v43 = vpop.f32.mrb[13].mxu1 }
 0x64a   :  { %2253 = vst [vmem:[#allocation10 + $0x8] sm:$0xff] %v2249_v0  ;;  %v2244_v35 = vadd.f32 %v2243_v43, %v2155_v4  ;;  %v2245_v60 = vpop.f32.mrb[14].mxu1 }
 0x64b   :  { %v2250_v15 = vmax.f32 %v2242_v26, 0.0  ;;  %v2246_v21 = vpop.f32.mrb[15].mxu1 }
 0x64c   :  { %v2251_v27 = vmax.f32 %v2244_v35, 0.0 }
 0x64d   :  { %2254 = vst [vmem:[#allocation10 + $0x10] sm:$0xff] %v2250_v15 }
 0x64e   :  { %2255 = vst [vmem:[#allocation10 + $0x18] sm:$0xff] %v2251_v27 }
 0x64f   :  { %2481 = shalt.err (!%p2478_p0)
}
 0x650   :  { %s2482_s23 = scalar_lea.hbm %s4217_s11, 512 }
 0x651   :  { %p2483_p1 = scmp.ne.s32.totalorder %s4217_s11, %s2482_s23  ;;  %p2486_p2 = scmp.lt.u32.totalorder %s2482_s23, %s4217_s11 }
 0x653   :  { %p2488_p3 = pnand %p2486_p2, %p2483_p1 }
 0x655   :  { %2491 = shalt.err (!%p2488_p3)
}
 0x656   :  { %2265 = dma.vmem_to_hbm [thread:$0]  %s2263_s19, 512, %s4217_s11, [#allocation6]  }
 0x657   :  { %2496 = dma.done.wait [#allocation6], 512  }
 0x658   :  { %2497 = vsyncadd [#allocation6], 4294966784 }
 0x659   :  { %2269 = vsyncpa [#allocation5], 1 }
 0x65a   :  { %2270 = vsyncpa [#allocation8], 1 }
 0x65b   :  { %2271 = vsyncpa [#allocation6], 1 }

</bundles_post_ra>
